<compile_context>
chip_gen: v6e
topology: v6e:2x2x1
jax: 0.10.0
libtpu: 0.0.40
codegen_flags: <defaults>
</compile_context>

<pallas_src>
import jax
import jax.numpy as jnp
from jax.experimental import pallas as pl
from jax.experimental.pallas import tpu as pltpu

NEG_SLOPE = 0.1  # nn.LeakyReLU(negative_slope=0.1)


def _resblock_kernel(x_ref, w1_ref, w2_ref, w3_ref, w4_ref,
                     b1_ref, b2_ref, b3_ref, o_ref, pool_scr):
    # x_ref block: (B, H, W, Cin) f32.  w1/w2/w3: (9*C, F) bf16 (im2col layout,
    # BN scale pre-folded), w4: (Cin, F) bf16, b*: (1, F) f32 folded BN bias.
    B, H, W, Cin = x_ref.shape
    F = w4_ref.shape[-1]
    BHW = B * H * W
    H2, W2 = H // 2, W // 2

    x = x_ref[...]                                            # (B, H, W, Cin) f32

    # Boundary-column masks for the XLU rolls (zero the wrap-around column).
    # (1, 1, W, 1) broadcasts over batch / rows / lanes.
    col = jax.lax.broadcasted_iota(jnp.int32, (1, 1, W, 1), 2)
    not_first = (col != 0).astype(jnp.float32)                # kills col 0
    not_last = (col != W - 1).astype(jnp.float32)             # kills col W-1

    def conv3x3(a, w9_ref):
        """3x3 conv, stride 1, pad 1, as a single im2col matmul on the MXU.

        H padding: two zero rows via a major-dim concat (whole-tile copies).
        W shifts:  XLU rolls + boundary masks instead of unaligned sublane
                   slices of a (W+2)-wide pad.
        The three shifted variants are cast to bf16 once, so the 9*C im2col
        concat and the MXU operands are bf16; accumulation stays f32.
        """
        C = a.shape[-1]
        zrow = jnp.zeros((B, 1, W, C), jnp.float32)
        ap = jnp.concatenate([zrow, a, zrow], axis=1)         # (B, H+2, W, C)
        left = pltpu.roll(ap, shift=1, axis=2) * not_first    # col x-1, col 0 -> 0
        right = pltpu.roll(ap, shift=W - 1, axis=2) * not_last  # col x+1, col W-1 -> 0
        shifted = [v.astype(jnp.bfloat16) for v in (left, ap, right)]
        taps = [shifted[dx][:, dy:dy + H]                     # (dy, dx) weight order
                for dy in range(3) for dx in range(3)]
        im2col = jnp.concatenate(taps, axis=-1).reshape(BHW, 9 * C)   # bf16
        return jnp.dot(im2col, w9_ref[...],
                       preferred_element_type=jnp.float32)    # (BHW, F) f32

    def bias_lrelu(y, b_ref):
        # BN scale already folded into the weights; only bias + activation here.
        y = y + b_ref[...]                                    # (BHW, F) + (1, F)
        return jnp.maximum(y, NEG_SLOPE * y)                  # LeakyReLU(0.1)

    h = bias_lrelu(conv3x3(x, w1_ref), b1_ref)
    h = bias_lrelu(conv3x3(h.reshape(B, H, W, F), w2_ref), b2_ref)
    h = bias_lrelu(conv3x3(h.reshape(B, H, W, F), w3_ref), b3_ref)

    # Residual = conv4(x): 1x1 conv == plain channel matmul.  Computed right
    # before the add so the (BHW, F) f32 result is not live across the convs.
    residual = jnp.dot(x.reshape(BHW, Cin).astype(jnp.bfloat16), w4_ref[...],
                       preferred_element_type=jnp.float32)    # (BHW, F)

    out = (h + residual).reshape(B, H2, 2, W, F)              # major-dim split: free
    hmax = jnp.maximum(out[:, :, 0], out[:, :, 1])            # H-pool on values
    # W-pool: pair neighbouring columns with one XLU roll + max, one scratch
    # store and a single stride-2 sublane read (wrap column is never read).
    wmax = jnp.maximum(hmax, pltpu.roll(hmax, shift=W - 1, axis=2))
    pool_scr[...] = wmax
    pooled = pool_scr[:, :, pl.ds(0, W2, 2), :]               # (B, H2, W2, F)

    # Dropout(p=0.9): identity in eval mode.
    o_ref[...] = pooled.astype(o_ref.dtype)


def _fold_bn(bn):
    scale = bn["gamma"] / jnp.sqrt(bn["var"] + bn["eps"])     # (F,)
    bias = bn["beta"] - bn["mean"] * scale                    # (F,)
    return scale.astype(jnp.float32), bias.reshape(1, -1).astype(jnp.float32)


def _auto_images_per_block(n, h, w, cin, f, vmem_budget_bytes):
    """Largest image block whose live set fits the VMEM budget while leaving
    >= 2 grid steps (so v7x's two TensorCores can both get work)."""
    cmax = max(cin, f)
    per_img = (
        (h + 2) * w * cmax * (3 * 4 + 3 * 2)      # padded + 2 rolled f32 + bf16 copies
        + h * w * 9 * cmax * 2                    # bf16 im2col (largest buffer)
        + h * w * f * 4 * 2                       # conv output + residual/add (f32)
        + 2 * h * w * cin * 4                     # double-buffered input block
        + (h // 2) * w * f * 4                    # pool scratch
        + 2 * (h // 2) * (w // 2) * f * 4         # double-buffered output block
    )
    weight_bytes = 2 * (9 * cin * f + 2 * 9 * f * f + cin * f) + 3 * 4 * f
    budget = max(vmem_budget_bytes - weight_bytes, per_img)
    fits = [b for b in range(1, n + 1) if n % b == 0 and b * per_img <= budget]
    if not fits:
        return 1
    two_step = [b for b in fits if n // b >= 2]
    return max(two_step) if two_step else max(fits)
    # NOTE: if a production (H, W, F) makes even B=1 too large, the im2col
    # matmul should additionally be chunked over the BHW (M) dimension.


def resblock_forward(x_nchw, params, images_per_block=None):
    N, Cin, H, W = x_nchw.shape
    F = params["w1"].shape[0]
    assert H % 2 == 0 and W % 2 == 0, "maxpool(2,2) path assumes even H, W"
    H2, W2 = H // 2, W // 2

    # Per-generation VMEM budget: 3/4 of capacity (≈96 MiB v5e/v6e, ≈48 MiB v7x).
    try:
        vmem_cap = pltpu.get_tpu_info().vmem_capacity_bytes
    except Exception:
        vmem_cap = 64 * 1024 * 1024                    # conservative (v7x) fallback
    vmem_limit = int(vmem_cap * 3 // 4)

    if images_per_block is None:
        images_per_block = _auto_images_per_block(N, H, W, Cin, F, vmem_limit)
    B = images_per_block
    assert N % B == 0

    # NCHW -> NHWC for the kernel (channels map to TPU lanes).
    x = jnp.transpose(x_nchw, (0, 2, 3, 1)).astype(jnp.float32)

    s1, b1 = _fold_bn(params["bn1"])
    s2, b2 = _fold_bn(params["bn2"])
    s3, b3 = _fold_bn(params["bn3"])

    def w3x3(w, scale):
        # OIHW -> (dy, dx, I, O) -> (9*I, O); BN scale folded into the output
        # columns in f32 BEFORE the bf16 cast (removes 3 (BHW, F) f32 multiplies
        # from the kernel's VPU path).
        wt = jnp.transpose(w, (2, 3, 1, 0)).reshape(9 * w.shape[1], w.shape[0])
        return (wt * scale[None, :]).astype(jnp.bfloat16)

    w1 = w3x3(params["w1"], s1)
    w2 = w3x3(params["w2"], s2)
    w3 = w3x3(params["w3"], s3)
    w4 = jnp.transpose(params["w4"][:, :, 0, 0], (1, 0)).astype(jnp.bfloat16)  # (Cin, F)

    # Constant operands (weights / folded biases): index_map never changes, so
    # double-buffering them is pure VMEM waste -> single buffer.
    const = lambda *shape: pl.BlockSpec(shape, lambda n: (0,) * len(shape),
                                        pipeline_mode=pl.Buffered(1))

    out_nhwc = pl.pallas_call(
        _resblock_kernel,
        out_shape=jax.ShapeDtypeStruct((N, H2, W2, F), jnp.float32),
        grid_spec=pltpu.PrefetchScalarGridSpec(
            num_scalar_prefetch=0,
            grid=(N // B,),
            in_specs=[
                pl.BlockSpec((B, H, W, Cin), lambda n: (n, 0, 0, 0)),
                const(9 * Cin, F),         # w1 (im2col layout, BN1 scale folded)
                const(9 * F, F),           # w2 (BN2 scale folded)
                const(9 * F, F),           # w3 (BN3 scale folded)
                const(Cin, F),             # w4 (1x1 residual)
                const(1, F),               # bn1 bias
                const(1, F),               # bn2 bias
                const(1, F),               # bn3 bias
            ],
            out_specs=pl.BlockSpec((B, H2, W2, F), lambda n: (n, 0, 0, 0)),
            scratch_shapes=[pltpu.VMEM((B, H2, W, F), jnp.float32)]),  # W-pool staging
        compiler_params=pltpu.CompilerParams(
            # Batch blocks are independent -> shard across v7x's 2 TensorCores.
            dimension_semantics=("parallel",),
            vmem_limit_bytes=vmem_limit),
    )(x, w1, w2, w3, w4, b1, b2, b3)

    # NHWC -> NCHW to match the PyTorch module.
    return jnp.transpose(out_nhwc, (0, 3, 1, 2))


def make_params(key, in_channels, filters):
    k1, k2, k3, k4 = jax.random.split(key, 4)
    bn = dict(gamma=jnp.ones((filters,), jnp.float32),
              beta=jnp.zeros((filters,), jnp.float32),
              mean=jnp.zeros((filters,), jnp.float32),
              var=jnp.ones((filters,), jnp.float32),
              eps=1e-5)
    return dict(
        w1=0.1 * jax.random.normal(k1, (filters, in_channels, 3, 3), jnp.float32),
        w2=0.1 * jax.random.normal(k2, (filters, filters, 3, 3), jnp.float32),
        w3=0.1 * jax.random.normal(k3, (filters, filters, 3, 3), jnp.float32),
        w4=0.1 * jax.random.normal(k4, (filters, in_channels, 1, 1), jnp.float32),
        bn1=bn, bn2=bn, bn3=bn)


def reference_forward(x, p):
    """Pure-JAX reference of ResBlock.forward (eval-mode BN & dropout).

    Conv operands are rounded to bf16 with f32 accumulation to match the
    kernel's MXU precision choice, so the comparison isolates real bugs.
    """
    def conv2d(a, w, pad):
        return jax.lax.conv_general_dilated(
            a.astype(jnp.bfloat16), w.astype(jnp.bfloat16), (1, 1),
            [(pad, pad), (pad, pad)],
            dimension_numbers=("NCHW", "OIHW", "NCHW"),
            preferred_element_type=jnp.float32)

    def bn(a, bnp):
        s = bnp["gamma"] / jnp.sqrt(bnp["var"] + bnp["eps"])
        b = bnp["beta"] - bnp["mean"] * s
        return a * s[None, :, None, None] + b[None, :, None, None]

    lrelu = lambda a: jnp.where(a >= 0, a, NEG_SLOPE * a)

    residual = conv2d(x, p["w4"], 0)
    out = lrelu(bn(conv2d(x, p["w1"], 1), p["bn1"]))
    out = lrelu(bn(conv2d(out, p["w2"], 1), p["bn2"]))
    out = lrelu(bn(conv2d(out, p["w3"], 1), p["bn3"]))
    out = out + residual
    out = jax.lax.reduce_window(out, -jnp.inf, jax.lax.max,
                                (1, 1, 2, 2), (1, 1, 2, 2), "VALID")
    return out  # dropout = identity (eval mode)


if __name__ == "__main__":
    key = jax.random.PRNGKey(0)
    kx, kp = jax.random.split(key)

    N, Cin, H, W = 2, 4, 16, 16
    filters = 8

    x = jax.random.normal(kx, (N, Cin, H, W), jnp.float32)
    params = make_params(kp, Cin, filters)

    out = jax.block_until_ready(jax.jit(resblock_forward)(x, params))
    ref = jax.block_until_ready(reference_forward(x, params))

    assert out.shape == (N, filters, H // 2, W // 2), out.shape
    max_err = float(jnp.max(jnp.abs(out - ref)))
    assert jnp.allclose(out, ref, rtol=2e-3, atol=2e-3), max_err

    print("KERNEL_OK")
</pallas_src>

<mosaic_0001>
module attributes {stable_mosaic.version = 11 : i64} {
  func.func @_resblock_kernel(%arg0: i32, %arg1: memref<1x16x16x4xf32, #tpu.memory_space<vmem>>, %arg2: memref<36x8xbf16, #tpu.memory_space<vmem>>, %arg3: memref<72x8xbf16, #tpu.memory_space<vmem>>, %arg4: memref<72x8xbf16, #tpu.memory_space<vmem>>, %arg5: memref<4x8xbf16, #tpu.memory_space<vmem>>, %arg6: memref<1x8xf32, #tpu.memory_space<vmem>>, %arg7: memref<1x8xf32, #tpu.memory_space<vmem>>, %arg8: memref<1x8xf32, #tpu.memory_space<vmem>>, %arg9: memref<1x8x8x8xf32, #tpu.memory_space<vmem>>, %arg10: memref<1x8x16x8xf32, #tpu.memory_space<vmem>>) attributes {dimension_semantics = [#tpu.dimension_semantics<parallel>], iteration_bounds = array<i64: 2>, scalar_prefetch = 0 : i64, scratch_operands = 1 : i64, tpu.core_type = #tpu.core_type<tc>, window_params = [{transform_indices = @transform_0, window_bounds = array<i64: 1, 16, 16, 4>}, {pipeline_mode = #tpu.pipeline_mode<synchronous>, transform_indices = @transform_1, window_bounds = array<i64: 36, 8>}, {pipeline_mode = #tpu.pipeline_mode<synchronous>, transform_indices = @transform_2, window_bounds = array<i64: 72, 8>}, {pipeline_mode = #tpu.pipeline_mode<synchronous>, transform_indices = @transform_3, window_bounds = array<i64: 72, 8>}, {pipeline_mode = #tpu.pipeline_mode<synchronous>, transform_indices = @transform_4, window_bounds = array<i64: 4, 8>}, {pipeline_mode = #tpu.pipeline_mode<synchronous>, transform_indices = @transform_5, window_bounds = array<i64: 1, 8>}, {pipeline_mode = #tpu.pipeline_mode<synchronous>, transform_indices = @transform_6, window_bounds = array<i64: 1, 8>}, {pipeline_mode = #tpu.pipeline_mode<synchronous>, transform_indices = @transform_7, window_bounds = array<i64: 1, 8>}, {transform_indices = @transform_8, window_bounds = array<i64: 1, 8, 8, 8>}]} {
    %c0 = arith.constant 0 : index
    %c0_0 = arith.constant 0 : index
    %c0_1 = arith.constant 0 : index
    %c0_2 = arith.constant 0 : index
    %0 = vector.load %arg1[%c0, %c0_0, %c0_1, %c0_2] : memref<1x16x16x4xf32, #tpu.memory_space<vmem>>, vector<1x16x16x4xf32>
    %1 = tpu.iota {dimensions = array<i32: 2>} : vector<1x1x16x1xi32>
    %c0_i32 = arith.constant 0 : i32
    %2 = vector.broadcast %c0_i32 : i32 to vector<1x1x16x1xi32>
    %3 = arith.cmpi ne, %1, %2 : vector<1x1x16x1xi32>
    %4 = arith.extui %3 : vector<1x1x16x1xi1> to vector<1x1x16x1xi32>
    %5 = arith.sitofp %4 : vector<1x1x16x1xi32> to vector<1x1x16x1xf32>
    %c15_i32 = arith.constant 15 : i32
    %6 = vector.broadcast %c15_i32 : i32 to vector<1x1x16x1xi32>
    %7 = arith.cmpi ne, %1, %6 : vector<1x1x16x1xi32>
    %8 = arith.extui %7 : vector<1x1x16x1xi1> to vector<1x1x16x1xi32>
    %9 = arith.sitofp %8 : vector<1x1x16x1xi32> to vector<1x1x16x1xf32>
    %cst = arith.constant 0.000000e+00 : f32
    %10 = vector.broadcast %cst : f32 to vector<1x1x16x4xf32>
    %11 = tpu.concatenate %10, %0, %10 in 1 : vector<1x1x16x4xf32>, vector<1x16x16x4xf32>, vector<1x1x16x4xf32> -> vector<1x18x16x4xf32>
    %c1_i32 = arith.constant 1 : i32
    %12 = tpu.dynamic_rotate %11 by %c1_i32 dim 2 : vector<1x18x16x4xf32>, i32 -> vector<1x18x16x4xf32>
    %13 = vector.broadcast %5 : vector<1x1x16x1xf32> to vector<1x18x16x4xf32>
    %14 = arith.mulf %12, %13 : vector<1x18x16x4xf32>
    %c15_i32_3 = arith.constant 15 : i32
    %15 = tpu.dynamic_rotate %11 by %c15_i32_3 dim 2 : vector<1x18x16x4xf32>, i32 -> vector<1x18x16x4xf32>
    %16 = vector.broadcast %9 : vector<1x1x16x1xf32> to vector<1x18x16x4xf32>
    %17 = arith.mulf %15, %16 : vector<1x18x16x4xf32>
    %18 = arith.truncf %14 : vector<1x18x16x4xf32> to vector<1x18x16x4xbf16>
    %19 = arith.truncf %11 : vector<1x18x16x4xf32> to vector<1x18x16x4xbf16>
    %20 = arith.truncf %17 : vector<1x18x16x4xf32> to vector<1x18x16x4xbf16>
    %21 = vector.extract_strided_slice %18 {offsets = [0, 0, 0, 0], sizes = [1, 16, 16, 4], strides = [1, 1, 1, 1]} : vector<1x18x16x4xbf16> to vector<1x16x16x4xbf16>
    %22 = vector.extract_strided_slice %19 {offsets = [0, 0, 0, 0], sizes = [1, 16, 16, 4], strides = [1, 1, 1, 1]} : vector<1x18x16x4xbf16> to vector<1x16x16x4xbf16>
    %23 = vector.extract_strided_slice %20 {offsets = [0, 0, 0, 0], sizes = [1, 16, 16, 4], strides = [1, 1, 1, 1]} : vector<1x18x16x4xbf16> to vector<1x16x16x4xbf16>
    %24 = vector.extract_strided_slice %18 {offsets = [0, 1, 0, 0], sizes = [1, 16, 16, 4], strides = [1, 1, 1, 1]} : vector<1x18x16x4xbf16> to vector<1x16x16x4xbf16>
    %25 = vector.extract_strided_slice %19 {offsets = [0, 1, 0, 0], sizes = [1, 16, 16, 4], strides = [1, 1, 1, 1]} : vector<1x18x16x4xbf16> to vector<1x16x16x4xbf16>
    %26 = vector.extract_strided_slice %20 {offsets = [0, 1, 0, 0], sizes = [1, 16, 16, 4], strides = [1, 1, 1, 1]} : vector<1x18x16x4xbf16> to vector<1x16x16x4xbf16>
    %27 = vector.extract_strided_slice %18 {offsets = [0, 2, 0, 0], sizes = [1, 16, 16, 4], strides = [1, 1, 1, 1]} : vector<1x18x16x4xbf16> to vector<1x16x16x4xbf16>
    %28 = vector.extract_strided_slice %19 {offsets = [0, 2, 0, 0], sizes = [1, 16, 16, 4], strides = [1, 1, 1, 1]} : vector<1x18x16x4xbf16> to vector<1x16x16x4xbf16>
    %29 = vector.extract_strided_slice %20 {offsets = [0, 2, 0, 0], sizes = [1, 16, 16, 4], strides = [1, 1, 1, 1]} : vector<1x18x16x4xbf16> to vector<1x16x16x4xbf16>
    %30 = tpu.concatenate %21, %22, %23, %24, %25, %26, %27, %28, %29 in 3 : vector<1x16x16x4xbf16>, vector<1x16x16x4xbf16>, vector<1x16x16x4xbf16>, vector<1x16x16x4xbf16>, vector<1x16x16x4xbf16>, vector<1x16x16x4xbf16>, vector<1x16x16x4xbf16>, vector<1x16x16x4xbf16>, vector<1x16x16x4xbf16> -> vector<1x16x16x36xbf16>
    %31 = vector.shape_cast %30 : vector<1x16x16x36xbf16> to vector<256x36xbf16>
    %c0_4 = arith.constant 0 : index
    %c0_5 = arith.constant 0 : index
    %32 = vector.load %arg2[%c0_4, %c0_5] : memref<36x8xbf16, #tpu.memory_space<vmem>>, vector<36x8xbf16>
    %cst_6 = arith.constant dense<0.000000e+00> : vector<256x8xf32>
    %33 = tpu.matmul %31, %32, %cst_6 {dimension_numbers = #tpu.dot_dimension_numbers<[1], [0], [0], [1], [0, 0, 1, 1], [], []>} : vector<256x36xbf16>, vector<36x8xbf16>, vector<256x8xf32> -> vector<256x8xf32>
    %c0_7 = arith.constant 0 : index
    %c0_8 = arith.constant 0 : index
    %34 = vector.load %arg6[%c0_7, %c0_8] : memref<1x8xf32, #tpu.memory_space<vmem>>, vector<1x8xf32>
    %35 = vector.broadcast %34 : vector<1x8xf32> to vector<256x8xf32>
    %36 = arith.addf %33, %35 : vector<256x8xf32>
    %cst_9 = arith.constant 1.000000e-01 : f32
    %37 = vector.broadcast %cst_9 : f32 to vector<256x8xf32>
    %38 = arith.mulf %37, %36 : vector<256x8xf32>
    %39 = arith.maximumf %36, %38 : vector<256x8xf32>
    %40 = vector.shape_cast %39 : vector<256x8xf32> to vector<1x16x16x8xf32>
    %cst_10 = arith.constant 0.000000e+00 : f32
    %41 = vector.broadcast %cst_10 : f32 to vector<1x1x16x8xf32>
    %42 = tpu.concatenate %41, %40, %41 in 1 : vector<1x1x16x8xf32>, vector<1x16x16x8xf32>, vector<1x1x16x8xf32> -> vector<1x18x16x8xf32>
    %c1_i32_11 = arith.constant 1 : i32
    %43 = tpu.dynamic_rotate %42 by %c1_i32_11 dim 2 : vector<1x18x16x8xf32>, i32 -> vector<1x18x16x8xf32>
    %44 = vector.broadcast %5 : vector<1x1x16x1xf32> to vector<1x18x16x8xf32>
    %45 = arith.mulf %43, %44 : vector<1x18x16x8xf32>
    %c15_i32_12 = arith.constant 15 : i32
    %46 = tpu.dynamic_rotate %42 by %c15_i32_12 dim 2 : vector<1x18x16x8xf32>, i32 -> vector<1x18x16x8xf32>
    %47 = vector.broadcast %9 : vector<1x1x16x1xf32> to vector<1x18x16x8xf32>
    %48 = arith.mulf %46, %47 : vector<1x18x16x8xf32>
    %49 = arith.truncf %45 : vector<1x18x16x8xf32> to vector<1x18x16x8xbf16>
    %50 = arith.truncf %42 : vector<1x18x16x8xf32> to vector<1x18x16x8xbf16>
    %51 = arith.truncf %48 : vector<1x18x16x8xf32> to vector<1x18x16x8xbf16>
    %52 = vector.extract_strided_slice %49 {offsets = [0, 0, 0, 0], sizes = [1, 16, 16, 8], strides = [1, 1, 1, 1]} : vector<1x18x16x8xbf16> to vector<1x16x16x8xbf16>
    %53 = vector.extract_strided_slice %50 {offsets = [0, 0, 0, 0], sizes = [1, 16, 16, 8], strides = [1, 1, 1, 1]} : vector<1x18x16x8xbf16> to vector<1x16x16x8xbf16>
    %54 = vector.extract_strided_slice %51 {offsets = [0, 0, 0, 0], sizes = [1, 16, 16, 8], strides = [1, 1, 1, 1]} : vector<1x18x16x8xbf16> to vector<1x16x16x8xbf16>
    %55 = vector.extract_strided_slice %49 {offsets = [0, 1, 0, 0], sizes = [1, 16, 16, 8], strides = [1, 1, 1, 1]} : vector<1x18x16x8xbf16> to vector<1x16x16x8xbf16>
    %56 = vector.extract_strided_slice %50 {offsets = [0, 1, 0, 0], sizes = [1, 16, 16, 8], strides = [1, 1, 1, 1]} : vector<1x18x16x8xbf16> to vector<1x16x16x8xbf16>
    %57 = vector.extract_strided_slice %51 {offsets = [0, 1, 0, 0], sizes = [1, 16, 16, 8], strides = [1, 1, 1, 1]} : vector<1x18x16x8xbf16> to vector<1x16x16x8xbf16>
    %58 = vector.extract_strided_slice %49 {offsets = [0, 2, 0, 0], sizes = [1, 16, 16, 8], strides = [1, 1, 1, 1]} : vector<1x18x16x8xbf16> to vector<1x16x16x8xbf16>
    %59 = vector.extract_strided_slice %50 {offsets = [0, 2, 0, 0], sizes = [1, 16, 16, 8], strides = [1, 1, 1, 1]} : vector<1x18x16x8xbf16> to vector<1x16x16x8xbf16>
    %60 = vector.extract_strided_slice %51 {offsets = [0, 2, 0, 0], sizes = [1, 16, 16, 8], strides = [1, 1, 1, 1]} : vector<1x18x16x8xbf16> to vector<1x16x16x8xbf16>
    %61 = tpu.concatenate %52, %53, %54, %55, %56, %57, %58, %59, %60 in 3 : vector<1x16x16x8xbf16>, vector<1x16x16x8xbf16>, vector<1x16x16x8xbf16>, vector<1x16x16x8xbf16>, vector<1x16x16x8xbf16>, vector<1x16x16x8xbf16>, vector<1x16x16x8xbf16>, vector<1x16x16x8xbf16>, vector<1x16x16x8xbf16> -> vector<1x16x16x72xbf16>
    %62 = vector.shape_cast %61 : vector<1x16x16x72xbf16> to vector<256x72xbf16>
    %c0_13 = arith.constant 0 : index
    %c0_14 = arith.constant 0 : index
    %63 = vector.load %arg3[%c0_13, %c0_14] : memref<72x8xbf16, #tpu.memory_space<vmem>>, vector<72x8xbf16>
    %cst_15 = arith.constant dense<0.000000e+00> : vector<256x8xf32>
    %64 = tpu.matmul %62, %63, %cst_15 {dimension_numbers = #tpu.dot_dimension_numbers<[1], [0], [0], [1], [0, 0, 1, 1], [], []>} : vector<256x72xbf16>, vector<72x8xbf16>, vector<256x8xf32> -> vector<256x8xf32>
    %c0_16 = arith.constant 0 : index
    %c0_17 = arith.constant 0 : index
    %65 = vector.load %arg7[%c0_16, %c0_17] : memref<1x8xf32, #tpu.memory_space<vmem>>, vector<1x8xf32>
    %66 = vector.broadcast %65 : vector<1x8xf32> to vector<256x8xf32>
    %67 = arith.addf %64, %66 : vector<256x8xf32>
    %cst_18 = arith.constant 1.000000e-01 : f32
    %68 = vector.broadcast %cst_18 : f32 to vector<256x8xf32>
    %69 = arith.mulf %68, %67 : vector<256x8xf32>
    %70 = arith.maximumf %67, %69 : vector<256x8xf32>
    %71 = vector.shape_cast %70 : vector<256x8xf32> to vector<1x16x16x8xf32>
    %cst_19 = arith.constant 0.000000e+00 : f32
    %72 = vector.broadcast %cst_19 : f32 to vector<1x1x16x8xf32>
    %73 = tpu.concatenate %72, %71, %72 in 1 : vector<1x1x16x8xf32>, vector<1x16x16x8xf32>, vector<1x1x16x8xf32> -> vector<1x18x16x8xf32>
    %c1_i32_20 = arith.constant 1 : i32
    %74 = tpu.dynamic_rotate %73 by %c1_i32_20 dim 2 : vector<1x18x16x8xf32>, i32 -> vector<1x18x16x8xf32>
    %75 = vector.broadcast %5 : vector<1x1x16x1xf32> to vector<1x18x16x8xf32>
    %76 = arith.mulf %74, %75 : vector<1x18x16x8xf32>
    %c15_i32_21 = arith.constant 15 : i32
    %77 = tpu.dynamic_rotate %73 by %c15_i32_21 dim 2 : vector<1x18x16x8xf32>, i32 -> vector<1x18x16x8xf32>
    %78 = vector.broadcast %9 : vector<1x1x16x1xf32> to vector<1x18x16x8xf32>
    %79 = arith.mulf %77, %78 : vector<1x18x16x8xf32>
    %80 = arith.truncf %76 : vector<1x18x16x8xf32> to vector<1x18x16x8xbf16>
    %81 = arith.truncf %73 : vector<1x18x16x8xf32> to vector<1x18x16x8xbf16>
    %82 = arith.truncf %79 : vector<1x18x16x8xf32> to vector<1x18x16x8xbf16>
    %83 = vector.extract_strided_slice %80 {offsets = [0, 0, 0, 0], sizes = [1, 16, 16, 8], strides = [1, 1, 1, 1]} : vector<1x18x16x8xbf16> to vector<1x16x16x8xbf16>
    %84 = vector.extract_strided_slice %81 {offsets = [0, 0, 0, 0], sizes = [1, 16, 16, 8], strides = [1, 1, 1, 1]} : vector<1x18x16x8xbf16> to vector<1x16x16x8xbf16>
    %85 = vector.extract_strided_slice %82 {offsets = [0, 0, 0, 0], sizes = [1, 16, 16, 8], strides = [1, 1, 1, 1]} : vector<1x18x16x8xbf16> to vector<1x16x16x8xbf16>
    %86 = vector.extract_strided_slice %80 {offsets = [0, 1, 0, 0], sizes = [1, 16, 16, 8], strides = [1, 1, 1, 1]} : vector<1x18x16x8xbf16> to vector<1x16x16x8xbf16>
    %87 = vector.extract_strided_slice %81 {offsets = [0, 1, 0, 0], sizes = [1, 16, 16, 8], strides = [1, 1, 1, 1]} : vector<1x18x16x8xbf16> to vector<1x16x16x8xbf16>
    %88 = vector.extract_strided_slice %82 {offsets = [0, 1, 0, 0], sizes = [1, 16, 16, 8], strides = [1, 1, 1, 1]} : vector<1x18x16x8xbf16> to vector<1x16x16x8xbf16>
    %89 = vector.extract_strided_slice %80 {offsets = [0, 2, 0, 0], sizes = [1, 16, 16, 8], strides = [1, 1, 1, 1]} : vector<1x18x16x8xbf16> to vector<1x16x16x8xbf16>
    %90 = vector.extract_strided_slice %81 {offsets = [0, 2, 0, 0], sizes = [1, 16, 16, 8], strides = [1, 1, 1, 1]} : vector<1x18x16x8xbf16> to vector<1x16x16x8xbf16>
    %91 = vector.extract_strided_slice %82 {offsets = [0, 2, 0, 0], sizes = [1, 16, 16, 8], strides = [1, 1, 1, 1]} : vector<1x18x16x8xbf16> to vector<1x16x16x8xbf16>
    %92 = tpu.concatenate %83, %84, %85, %86, %87, %88, %89, %90, %91 in 3 : vector<1x16x16x8xbf16>, vector<1x16x16x8xbf16>, vector<1x16x16x8xbf16>, vector<1x16x16x8xbf16>, vector<1x16x16x8xbf16>, vector<1x16x16x8xbf16>, vector<1x16x16x8xbf16>, vector<1x16x16x8xbf16>, vector<1x16x16x8xbf16> -> vector<1x16x16x72xbf16>
    %93 = vector.shape_cast %92 : vector<1x16x16x72xbf16> to vector<256x72xbf16>
    %c0_22 = arith.constant 0 : index
    %c0_23 = arith.constant 0 : index
    %94 = vector.load %arg4[%c0_22, %c0_23] : memref<72x8xbf16, #tpu.memory_space<vmem>>, vector<72x8xbf16>
    %cst_24 = arith.constant dense<0.000000e+00> : vector<256x8xf32>
    %95 = tpu.matmul %93, %94, %cst_24 {dimension_numbers = #tpu.dot_dimension_numbers<[1], [0], [0], [1], [0, 0, 1, 1], [], []>} : vector<256x72xbf16>, vector<72x8xbf16>, vector<256x8xf32> -> vector<256x8xf32>
    %c0_25 = arith.constant 0 : index
    %c0_26 = arith.constant 0 : index
    %96 = vector.load %arg8[%c0_25, %c0_26] : memref<1x8xf32, #tpu.memory_space<vmem>>, vector<1x8xf32>
    %97 = vector.broadcast %96 : vector<1x8xf32> to vector<256x8xf32>
    %98 = arith.addf %95, %97 : vector<256x8xf32>
    %cst_27 = arith.constant 1.000000e-01 : f32
    %99 = vector.broadcast %cst_27 : f32 to vector<256x8xf32>
    %100 = arith.mulf %99, %98 : vector<256x8xf32>
    %101 = arith.maximumf %98, %100 : vector<256x8xf32>
    %102 = vector.shape_cast %0 : vector<1x16x16x4xf32> to vector<256x4xf32>
    %103 = arith.truncf %102 : vector<256x4xf32> to vector<256x4xbf16>
    %c0_28 = arith.constant 0 : index
    %c0_29 = arith.constant 0 : index
    %104 = vector.load %arg5[%c0_28, %c0_29] : memref<4x8xbf16, #tpu.memory_space<vmem>>, vector<4x8xbf16>
    %cst_30 = arith.constant dense<0.000000e+00> : vector<256x8xf32>
    %105 = tpu.matmul %103, %104, %cst_30 {dimension_numbers = #tpu.dot_dimension_numbers<[1], [0], [0], [1], [0, 0, 1, 1], [], []>} : vector<256x4xbf16>, vector<4x8xbf16>, vector<256x8xf32> -> vector<256x8xf32>
    %106 = arith.addf %101, %105 : vector<256x8xf32>
    %107 = vector.shape_cast %106 : vector<256x8xf32> to vector<1x8x2x16x8xf32>
    %108 = vector.extract_strided_slice %107 {offsets = [0, 0, 0, 0, 0], sizes = [1, 8, 1, 16, 8], strides = [1, 1, 1, 1, 1]} : vector<1x8x2x16x8xf32> to vector<1x8x1x16x8xf32>
    %109 = vector.shape_cast %108 : vector<1x8x1x16x8xf32> to vector<1x8x16x8xf32>
    %110 = vector.extract_strided_slice %107 {offsets = [0, 0, 1, 0, 0], sizes = [1, 8, 1, 16, 8], strides = [1, 1, 1, 1, 1]} : vector<1x8x2x16x8xf32> to vector<1x8x1x16x8xf32>
    %111 = vector.shape_cast %110 : vector<1x8x1x16x8xf32> to vector<1x8x16x8xf32>
    %112 = arith.maximumf %109, %111 : vector<1x8x16x8xf32>
    %c15_i32_31 = arith.constant 15 : i32
    %113 = tpu.dynamic_rotate %112 by %c15_i32_31 dim 2 : vector<1x8x16x8xf32>, i32 -> vector<1x8x16x8xf32>
    %114 = arith.maximumf %112, %113 : vector<1x8x16x8xf32>
    %c0_32 = arith.constant 0 : index
    %c0_33 = arith.constant 0 : index
    %c0_34 = arith.constant 0 : index
    %c0_35 = arith.constant 0 : index
    %115 = vector.load %arg10[%c0_32, %c0_33, %c0_34, %c0_35] : memref<1x8x16x8xf32, #tpu.memory_space<vmem>>, vector<1x8x16x8xf32>
    tpu.vector_store %arg10[%c0_32, %c0_33, %c0_34, %c0_35], %114 {strides = array<i32>} : memref<1x8x16x8xf32, #tpu.memory_space<vmem>>, vector<1x8x16x8xf32>,
    %c0_36 = arith.constant 0 : index
    %c0_37 = arith.constant 0 : index
    %c0_38 = arith.constant 0 : index
    %c0_39 = arith.constant 0 : index
    %116 = tpu.strided_load %arg10[%c0_36, %c0_37, %c0_38, %c0_39] {strides = array<i32: 1, 1, 2, 1>} : memref<1x8x16x8xf32, #tpu.memory_space<vmem>>, vector<1x8x8x8xf32>
    %c0_40 = arith.constant 0 : index
    %c0_41 = arith.constant 0 : index
    %c0_42 = arith.constant 0 : index
    %c0_43 = arith.constant 0 : index
    %117 = vector.load %arg9[%c0_40, %c0_41, %c0_42, %c0_43] : memref<1x8x8x8xf32, #tpu.memory_space<vmem>>, vector<1x8x8x8xf32>
    tpu.vector_store %arg9[%c0_40, %c0_41, %c0_42, %c0_43], %116 {strides = array<i32>} : memref<1x8x8x8xf32, #tpu.memory_space<vmem>>, vector<1x8x8x8xf32>,
    return
  }
  func.func @transform_0(%arg0: i32) -> (i32, i32, i32, i32) {
    %c0_i32 = arith.constant 0 : i32
    %c0_i32_0 = arith.constant 0 : i32
    %c0_i32_1 = arith.constant 0 : i32
    %c0_i32_2 = arith.constant 0 : i32
    return %arg0, %c0_i32, %c0_i32_0, %c0_i32_1 : i32, i32, i32, i32
  }
  func.func @transform_1(%arg0: i32) -> (i32, i32) {
    %c0_i32 = arith.constant 0 : i32
    %c0_i32_0 = arith.constant 0 : i32
    %c0_i32_1 = arith.constant 0 : i32
    return %c0_i32, %c0_i32_0 : i32, i32
  }
  func.func @transform_2(%arg0: i32) -> (i32, i32) {
    %c0_i32 = arith.constant 0 : i32
    %c0_i32_0 = arith.constant 0 : i32
    %c0_i32_1 = arith.constant 0 : i32
    return %c0_i32, %c0_i32_0 : i32, i32
  }
  func.func @transform_3(%arg0: i32) -> (i32, i32) {
    %c0_i32 = arith.constant 0 : i32
    %c0_i32_0 = arith.constant 0 : i32
    %c0_i32_1 = arith.constant 0 : i32
    return %c0_i32, %c0_i32_0 : i32, i32
  }
  func.func @transform_4(%arg0: i32) -> (i32, i32) {
    %c0_i32 = arith.constant 0 : i32
    %c0_i32_0 = arith.constant 0 : i32
    %c0_i32_1 = arith.constant 0 : i32
    return %c0_i32, %c0_i32_0 : i32, i32
  }
  func.func @transform_5(%arg0: i32) -> (i32, i32) {
    %c0_i32 = arith.constant 0 : i32
    %c0_i32_0 = arith.constant 0 : i32
    %c0_i32_1 = arith.constant 0 : i32
    return %c0_i32, %c0_i32_0 : i32, i32
  }
  func.func @transform_6(%arg0: i32) -> (i32, i32) {
    %c0_i32 = arith.constant 0 : i32
    %c0_i32_0 = arith.constant 0 : i32
    %c0_i32_1 = arith.constant 0 : i32
    return %c0_i32, %c0_i32_0 : i32, i32
  }
  func.func @transform_7(%arg0: i32) -> (i32, i32) {
    %c0_i32 = arith.constant 0 : i32
    %c0_i32_0 = arith.constant 0 : i32
    %c0_i32_1 = arith.constant 0 : i32
    return %c0_i32, %c0_i32_0 : i32, i32
  }
  func.func @transform_8(%arg0: i32) -> (i32, i32, i32, i32) {
    %c0_i32 = arith.constant 0 : i32
    %c0_i32_0 = arith.constant 0 : i32
    %c0_i32_1 = arith.constant 0 : i32
    %c0_i32_2 = arith.constant 0 : i32
    return %arg0, %c0_i32, %c0_i32_0, %c0_i32_1 : i32, i32, i32, i32
  }
}

</mosaic_0001>

<bundles_post_ra>
// kernel: resblock_forward.1
= control target key start
LH: loop header
LB: loop body
LE: loop exit
PB: predicated region body
PF: predicated region fallthrough
CT: control target
= control target key end

     0   :  { %s4544_s27 = smov 0   ;;  %s6751_s0 = inlined_call_operand.vmem [shape: f32[2,16,16,4], index: 0, kind: input, shape index: {}]   ;;  %s6752_s1 = inlined_call_operand.vmem [shape: bf16[36,8], index: 1, kind: input, shape index: {}]   ;;  %s6753_s2 = inlined_call_operand.vmem [shape: bf16[72,8], index: 2, kind: input, shape index: {}]   ;;  %s6754_s3 = inlined_call_operand.vmem [shape: bf16[72,8], index: 3, kind: input, shape index: {}]   ;;  %s6755_s4 = inlined_call_operand.vmem [shape: bf16[4,8], index: 4, kind: input, shape index: {}]   ;;  %s6756_s5 = inlined_call_operand.vmem [shape: f32[1,8], index: 5, kind: input, shape index: {}]   ;;  %s6757_s6 = inlined_call_operand.vmem [shape: f32[1,8], index: 6, kind: input, shape index: {}]   ;;  %s6758_s7 = inlined_call_operand.vmem [shape: f32[1,8], index: 7, kind: input, shape index: {}]   ;;  %s6759_s8 = inlined_call_operand.vmem [shape: f32[2,8,8,8], index: 8, kind: output, shape index: {}]  }
   0x1 LB: > { %s4107_s28 = sadd.s32 4294967295, %s4483_s27   ;;  %p4111_p0 = scmp.ge.s32.totalorder %s4483_s27, 1  ;;  %s4483_s27 = sphi %s4544_s27, %s18_s27  }
   0x2   : > { %p262_p1 = scmp.lt.s32.totalorder %s4483_s27, 3 }
   0x4   : > { %p263_p2 = pnand %p4111_p0, %p262_p1 }
   0x6   : > { %266 = sbr.rel (%p263_p2) target bundleno = 1341 (0x53d), region = 52 }
   0xb   : > { %p296_p3 = scmp.lt.s32.totalorder %s4107_s28, 1  ;;  %v339_v0 = vlaneseq  ;;  %v6760_v1 = vmov 0.0|0.0   ;;  %s4486_s29 = smov 4   ;;  %v4487_v11 = vmov 0.0   ;;  %v4463_v59 = vld [vmem:[%s6752_s1 + $0x8] sm:$0xff]   ;;  %vm1250_vm4 = vcmask 1041408  }
   0xc   : > { %619 = vrot.lane.b32.xlu0 %v6760_v1, %s4486_s29  ;;  %s4488_s12 = smov 16   ;;  %s4489_s13 = smov 8   ;;  %v4462_v55 = vld [vmem:[%s6752_s1 + $0x10] ss:$0 sps:$4 sm:$0x33]   ;;  %v4464_v62 = vld [vmem:[%s6752_s1] sm:$0xff]  }
   0xd   : > { %s6778_s28 = smov (!%p296_p3, %s4107_s28), 1  ;;  %v4556_v2 = vshrl.u32 %v339_v0, 7  ;;  %s4490_s14 = smov 12   ;;  %4436 = vmatprep.subr.msk.bf16.mxu0 %vm1250_vm4, %v4462_v55  ;;  %v1252_v60 = vsel %vm1250_vm4, %v4462_v55, 0  ;;  %vm910_vm5 = vcmask 31744   ;;  %vm959_vm6 = vcmask 64512  }
   0xe   : > { %s4200_s30 = sshll.u32 %s6778_s28, 8  ;;  %s4491_s15 = smov 20   ;;  %4281 = vmatpush3.bf16.msra.mxu0 %v1252_v60  ;;  %vm992_vm7 = vcmask 97280   ;;  %vm1025_vm8 = vcmask 130048   ;;  %vm1058_vm9 = vcmask 162816   ;;  %vm1091_vm10 = vcmask 195584  }
   0xf   : > { %v341_v3 = vadd.s32 8, %v4556_v2  ;;  %s4563_s11 = scalar_lea.vmem %s6751_s0, %s4200_s30  ;;  %vm342_vm0 = vcmp.ne.s32.totalorder %v4556_v2, 0  ;;  %vm386_vm2 = vcmp.lt.s32.totalorder %v4556_v2, 1  ;;  %vm485_vm3 = vcmp.lt.s32.totalorder %v4556_v2, 7  ;;  %s4492_s16 = smov 24   ;;  %4282 = vmatprep.subr.bf16.mxu0 %v4463_v59 }
  0x10   : > { %v309_v4 = vld [vmem:[%s4563_s11 + $0x10] sm:$0xff]  ;;  %v310_v5 = vld [vmem:[%s4563_s11 + $0x18] sm:$0xff]  ;;  %v307_v6 = vld [vmem:[%s4563_s11] sm:$0xff]  ;;  %v4585_v17 = vsel %vm342_vm0, 1.0, %v4487_v11  ;;  %s4493_s17 = smov 28   ;;  %s4494_s20 = smov 32  }
  0x11   : > { %vm349_vm1 = vcmp.ne.s32.totalorder %v341_v3, 15  ;;  %v4571_v7 = vpack.c.bf16 %v310_v5, %v309_v4  ;;  %v308_v8 = vld [vmem:[%s4563_s11 + $0x8] sm:$0xff]  ;;  %v354_v9 = vrot.slane %v307_v6, 7  ;;  %v453_v10 = vrot.slane %v307_v6, 1  ;;  %v311_v29 = vld [vmem:[%s4563_s11 + $0x20] sm:$0xff]  ;;  %v313_v53 = vld [vmem:[%s4563_s11 + $0x30] sm:$0xff] }
  0x12   : > { %v4575_v12 = vsel %vm349_vm1, 1.0, %v4487_v11  ;;  %v370_v13 = vrot.slane %v308_v8, 7  ;;  %v469_v14 = vrot.slane %v308_v8, 1  ;;  %v4577_v15 = vpack.c.bf16 %v308_v8, %v307_v6  ;;  %v312_v30 = vld [vmem:[%s4563_s11 + $0x28] sm:$0xff]  ;;  %v314_v54 = vld [vmem:[%s4563_s11 + $0x38] sm:$0xff]  ;;  %4283 = vmatpush3.bf16.msra.mxu0 %v4463_v59  ;;  %s4496_s30 = smov 48  }
  0x13   : > { %v519_v16 = vmul.f32 0.0, %v4575_v12  ;;  %750 = vrot.lane.b32.xlu1 %v4571_v7, %s4488_s12  ;;  %v355_v18 = vrot.slane %v309_v4, 7  ;;  %v371_v19 = vrot.slane %v310_v5, 7  ;;  %v454_v20 = vrot.slane %v309_v4, 1  ;;  %v316_v6 = vld [vmem:[%s4563_s11 + $0x48] sm:$0xff]  ;;  %4284 = vmatprep.subr.bf16.mxu0 %v4464_v62  ;;  %s4497_s9 = smov 64  }
  0x14   : > { %621 = vrot.lane.b32.xlu0 %v4577_v15, %s4486_s29  ;;  %v486_v22 = vsel %vm485_vm3, %v453_v10, %v469_v14  ;;  %v502_v23 = vsel %vm485_vm3, %v469_v14, %v453_v10  ;;  %v470_v24 = vrot.slane %v310_v5, 1  ;;  %v387_v26 = vsel %vm386_vm2, %v354_v9, %v370_v13  ;;  %v315_v5 = vld [vmem:[%s4563_s11 + $0x40] sm:$0xff]  ;;  %s4498_s10 = smov 40  }
  0x15   : > { %v4590_v21 = vpack.c.bf16 %v519_v16, %v4487_v11  ;;  %v521_v25 = vmul.f32 %v4575_v12, %v502_v23  ;;  %v403_v27 = vsel %vm386_vm2, %v370_v13, %v354_v9  ;;  %v404_v28 = vsel %vm386_vm2, %v371_v19, %v355_v18 }
  0x16   : > { %v421_v31 = vmul.f32 %v4585_v17, %v403_v27  ;;  %v388_v33 = vsel %vm386_vm2, %v355_v18, %v371_v19  ;;  %v423_v34 = vmul.f32 %v4585_v17, %v404_v28  ;;  %v503_v36 = vsel %vm485_vm3, %v470_v24, %v454_v20  ;;  %4285 = vmatpush3.bf16.msra.mxu0 %v4464_v62 }
  0x17   : > { %667 = vrot.lane.b32.xlu1 %v4590_v21, %s4489_s13  ;;  %v587_v32 = vpack.c.bf16 %v521_v25, %v486_v22  ;;  %v356_v37 = vrot.slane %v311_v29, 7  ;;  %v372_v38 = vrot.slane %v312_v30, 7  ;;  %v523_v40 = vmul.f32 %v4575_v12, %v503_v36 }
  0x18   : > { %748 = vrot.lane.b32.xlu0 %v4577_v15, %s4488_s12  ;;  %v4613_v35 = vpack.c.bf16 %v387_v26, %v421_v31  ;;  %v4618_v39 = vpack.c.bf16 %v388_v33, %v423_v34  ;;  %v487_v41 = vsel %vm485_vm3, %v454_v20, %v470_v24  ;;  %v455_v46 = vrot.slane %v311_v29, 1  ;;  %v317_v31 = vld [vmem:[%s4563_s11 + $0x50] sm:$0xff] }
  0x19   : > { %v405_v42 = vsel %vm386_vm2, %v372_v38, %v356_v37  ;;  %v588_v43 = vpack.c.bf16 %v523_v40, %v487_v41  ;;  %v389_v45 = vsel %vm386_vm2, %v356_v37, %v372_v38  ;;  %v471_v47 = vrot.slane %v312_v30, 1 }
  0x1a   : > { %v425_v44 = vmul.f32 %v4585_v17, %v405_v42  ;;  %v4642_v50 = vpack.c.bf16 %v312_v30, %v311_v29  ;;  %v357_v57 = vrot.slane %v313_v53, 7  ;;  %v373_v58 = vrot.slane %v314_v54, 7 }
  0x1b   : > { %669 = vrot.lane.b32.xlu1 %v587_v32, %s4489_s13  ;;  %v504_v49 = vsel %vm485_vm3, %v471_v47, %v455_v46  ;;  %v488_v52 = vsel %vm485_vm3, %v455_v46, %v471_v47  ;;  %v456_v3 = vrot.slane %v313_v53, 1  ;;  %v472_v4 = vrot.slane %v314_v54, 1 }
  0x1c   : > { %715 = vrot.lane.b32.xlu0 %v4613_v35, %s4490_s14  ;;  %v4634_v48 = vpack.c.bf16 %v389_v45, %v425_v44  ;;  %v525_v51 = vmul.f32 %v4575_v12, %v504_v49  ;;  %v406_v61 = vsel %vm386_vm2, %v373_v58, %v357_v57  ;;  %v390_v0 = vsel %vm386_vm2, %v357_v57, %v373_v58  ;;  %v320_v44 = vld [vmem:[%s4563_s11 + $0x68] sm:$0xff] }
  0x1d   : > { %v427_v63 = vmul.f32 %v4585_v17, %v406_v61  ;;  %v505_v9 = vsel %vm485_vm3, %v472_v4, %v456_v3  ;;  %v358_v10 = vrot.slane %v315_v5, 7  ;;  %v374_v13 = vrot.slane %v316_v6, 7 }
  0x1e   : > { %v589_v56 = vpack.c.bf16 %v525_v51, %v488_v52  ;;  %v4687_v14 = vpack.c.bf16 %v314_v54, %v313_v53  ;;  %v527_v16 = vmul.f32 %v4575_v12, %v505_v9  ;;  %v489_v18 = vsel %vm485_vm3, %v456_v3, %v472_v4  ;;  %v321_v3 = vld [vmem:[%s4563_s11 + $0x70] sm:$0xff]  ;;  %v322_v4 = vld [vmem:[%s4563_s11 + $0x78] sm:$0xff] }
  0x1f   : > { %717 = vrot.lane.b32.xlu1 %v4618_v39, %s4490_s14  ;;  %v4679_v8 = vpack.c.bf16 %v390_v0, %v427_v63  ;;  %v407_v19 = vsel %vm386_vm2, %v374_v13, %v358_v10  ;;  %v391_v23 = vsel %vm386_vm2, %v358_v10, %v374_v13  ;;  %v457_v24 = vrot.slane %v315_v5, 1 }
  0x20   : > { %781 = vrot.lane.b32.xlu0 %v587_v32, %s4491_s15  ;;  %v590_v20 = vpack.c.bf16 %v527_v16, %v489_v18  ;;  %v429_v22 = vmul.f32 %v4585_v17, %v407_v19  ;;  %v473_v25 = vrot.slane %v316_v6, 1  ;;  %v4711_v28 = vpack.c.bf16 %v316_v6, %v315_v5  ;;  %v318_v32 = vld [vmem:[%s4563_s11 + $0x58] sm:$0xff] }
  0x21   : > { %v359_v34 = vrot.slane %v317_v31, 7  ;;  %v375_v36 = vrot.slane %v318_v32, 7  ;;  %v458_v41 = vrot.slane %v317_v31, 1  ;;  %v474_v42 = vrot.slane %v318_v32, 1 }
  0x22   : > { %v4703_v26 = vpack.c.bf16 %v391_v23, %v429_v22  ;;  %v506_v27 = vsel %vm485_vm3, %v473_v25, %v457_v24  ;;  %v490_v30 = vsel %vm485_vm3, %v457_v24, %v473_v25  ;;  %v376_v49 = vrot.slane %v320_v44, 7  ;;  %v324_v22 = vld [vmem:[%s4563_s11 + $0x88] sm:$0xff] }
  0x23   : > { %783 = vrot.lane.b32.xlu1 %v588_v43, %s4491_s15  ;;  %v529_v29 = vmul.f32 %v4575_v12, %v506_v27  ;;  %v408_v37 = vsel %vm386_vm2, %v375_v36, %v359_v34  ;;  %v392_v40 = vsel %vm386_vm2, %v359_v34, %v375_v36  ;;  %v507_v46 = vsel %vm485_vm3, %v474_v42, %v458_v41 }
  0x24   : > { %814 = vrot.lane.b32.xlu0 %v4618_v39, %s4492_s16  ;;  %v431_v38 = vmul.f32 %v4585_v17, %v408_v37  ;;  %v4745_v51 = vpack.c.bf16 %v318_v32, %v317_v31  ;;  %v531_v52 = vmul.f32 %v4575_v12, %v507_v46  ;;  %v491_v53 = vsel %vm485_vm3, %v458_v41, %v474_v42 }
  0x25   : > { %v591_v33 = vpack.c.bf16 %v529_v29, %v490_v30  ;;  %v475_v59 = vrot.slane %v320_v44, 1  ;;  %v361_v6 = vrot.slane %v321_v3, 7  ;;  %v377_v9 = vrot.slane %v322_v4, 7 }
  0x26   : > { %v4737_v45 = vpack.c.bf16 %v392_v40, %v431_v38  ;;  %v592_v55 = vpack.c.bf16 %v531_v52, %v491_v53  ;;  %v460_v18 = vrot.slane %v321_v3, 1  ;;  %v476_v19 = vrot.slane %v322_v4, 1  ;;  %v325_v53 = vld [vmem:[%s4563_s11 + $0x90] sm:$0xff] }
  0x27   : > { %816 = vrot.lane.b32.xlu1 %v4634_v48, %s4492_s16  ;;  %v410_v10 = vsel %vm386_vm2, %v377_v9, %v361_v6  ;;  %v394_v16 = vsel %vm386_vm2, %v361_v6, %v377_v9  ;;  %v378_v27 = vrot.slane %v324_v22, 7  ;;  %v4803_v29 = vpack.c.bf16 %v322_v4, %v321_v3 }
  0x28   : > { %846 = vrot.lane.b32.xlu0 %v4571_v7, %s4493_s17  ;;  %v435_v13 = vmul.f32 %v4585_v17, %v410_v10  ;;  %v509_v24 = vsel %vm485_vm3, %v476_v19, %v460_v18  ;;  %v493_v31 = vsel %vm485_vm3, %v460_v18, %v476_v19  ;;  %v477_v40 = vrot.slane %v324_v22, 1  ;;  %v4860_v18 = vld [vmem:[%s4563_s11 + $0xa0] sm:$0xff] }
  0x29   : > { %v535_v30 = vmul.f32 %v4575_v12, %v509_v24  ;;  %v462_v10 = vrot.slane %v325_v53, 1  ;;  %vm1124_vm11 = vcmask 228352   ;;  %vm1157_vm12 = vcmask 261120  }
  0x2a   : > { %v4795_v23 = vpack.c.bf16 %v394_v16, %v435_v13  ;;  %vm1217_vm13 = vcmask 293888   ;;  %vm2374_vm14 = vcmask 1043456   ;;  %vm2166_vm15 = vcmask 326656  }
  0x2b   : > { %848 = vrot.lane.b32.xlu1 %v4642_v50, %s4493_s17  ;;  %vm2199_vm0 = vcmask 392192   ;;  %vm2232_vm1 = vcmask 457728  }
  0x2c   : > { %878 = vrot.lane.b32.xlu0 %v588_v43, %s4494_s20 }
  0x2f   : > { %623 = vrot.lane.b32.xlu1 %v4571_v7, %s4486_s29 }
  0x30   : > { %880 = vrot.lane.b32.xlu0 %v589_v56, %s4494_s20 }
  0x33   : > { %625 = vrot.lane.b32.xlu1 %v4642_v50, %s4486_s29 }
  0x34   : > { %671 = vrot.lane.b32.xlu0 %v588_v43, %s4489_s13  ;;  %v319_v43 = vld [vmem:[%s4563_s11 + $0x60] sm:$0xff] }
  0x35   : > { %v360_v47 = vrot.slane %v319_v43, 7  ;;  %v459_v58 = vrot.slane %v319_v43, 1  ;;  %v4769_v62 = vpack.c.bf16 %v320_v44, %v319_v43 }
  0x37   : > { %673 = vrot.lane.b32.xlu1 %v589_v56, %s4489_s13  ;;  %v409_v54 = vsel %vm386_vm2, %v376_v49, %v360_v47  ;;  %v393_v57 = vsel %vm386_vm2, %v360_v47, %v376_v49  ;;  %v508_v61 = vsel %vm485_vm3, %v475_v59, %v459_v58  ;;  %v492_v0 = vsel %vm485_vm3, %v459_v58, %v475_v59 }
  0x38   : > { %719 = vrot.lane.b32.xlu0 %v4634_v48, %s4490_s14  ;;  %v533_v63 = vmul.f32 %v4575_v12, %v508_v61  ;;  %v419_v61 = vmul.f32 0.0, %v4585_v17 }
  0x3a   : > { %v593_v5 = vpack.c.bf16 %v533_v63, %v492_v0  ;;  %v4851_v4 = vpack.c.bf16 %v4487_v11, %v419_v61  ;;  %v4863_v11 = vld [vmem:[%s4563_s11 + $0xa8] sm:$0xff] }
  0x3b   : > { %721 = vrot.lane.b32.xlu1 %v4679_v8, %s4490_s14 }
  0x3c   : > { %752 = vrot.lane.b32.xlu0 %v4642_v50, %s4488_s12 }
  0x3f   : > { %754 = vrot.lane.b32.xlu1 %v4687_v14, %s4488_s12 }
  0x40   : > { %785 = vrot.lane.b32.xlu0 %v589_v56, %s4491_s15  ;;  %v433_v56 = vmul.f32 %v4585_v17, %v409_v54  ;;  %v326_v54 = vld [vmem:[%s4563_s11 + $0x98] sm:$0xff] }
  0x41   : > { %v379_v58 = vrot.slane %v326_v54, 7  ;;  %v478_v13 = vrot.slane %v326_v54, 1 }
  0x42   : > { %v4761_v60 = vpack.c.bf16 %v393_v57, %v433_v56  ;;  %v363_v57 = vrot.slane %v325_v53, 7 }
  0x43   : > { %787 = vrot.lane.b32.xlu1 %v590_v20, %s4491_s15 }
  0x44   : > { %818 = vrot.lane.b32.xlu0 %v4679_v8, %s4492_s16  ;;  %v412_v0 = vsel %vm386_vm2, %v379_v58, %v363_v57  ;;  %v396_v9 = vsel %vm386_vm2, %v363_v57, %v379_v58 }
  0x45   : > { %v439_v6 = vmul.f32 %v4585_v17, %v412_v0 }
  0x47   : > { %820 = vrot.lane.b32.xlu1 %v4703_v26, %s4492_s16  ;;  %v4870_v24 = vpack.c.bf16 %v396_v9, %v439_v6 }
  0x48   : > { %850 = vrot.lane.b32.xlu0 %v4687_v14, %s4493_s17 }
  0x4b   : > { %852 = vrot.lane.b32.xlu1 %v4711_v28, %s4493_s17 }
  0x4c   : > { %882 = vrot.lane.b32.xlu0 %v590_v20, %s4494_s20 }
  0x4f   : > { %627 = vrot.lane.b32.xlu1 %v4687_v14, %s4486_s29 }
  0x50   : > { %884 = vrot.lane.b32.xlu0 %v591_v33, %s4494_s20 }
  0x53   : > { %629 = vrot.lane.b32.xlu1 %v4711_v28, %s4486_s29 }
  0x54   : > { %675 = vrot.lane.b32.xlu0 %v590_v20, %s4489_s13  ;;  %v323_v20 = vld [vmem:[%s4563_s11 + $0x80] sm:$0xff] }
  0x55   : > { %v362_v25 = vrot.slane %v323_v20, 7  ;;  %v461_v38 = vrot.slane %v323_v20, 1  ;;  %v4829_v46 = vpack.c.bf16 %v324_v22, %v323_v20 }
  0x57   : > { %677 = vrot.lane.b32.xlu1 %v591_v33, %s4489_s13  ;;  %v411_v32 = vsel %vm386_vm2, %v378_v27, %v362_v25  ;;  %v395_v37 = vsel %vm386_vm2, %v362_v25, %v378_v27  ;;  %v510_v43 = vsel %vm485_vm3, %v477_v40, %v461_v38  ;;  %v494_v52 = vsel %vm485_vm3, %v461_v38, %v477_v40 }
  0x58   : > { %723 = vrot.lane.b32.xlu0 %v4703_v26, %s4490_s14  ;;  %v437_v34 = vmul.f32 %v4585_v17, %v411_v32  ;;  %v537_v47 = vmul.f32 %v4575_v12, %v510_v43  ;;  %v511_v27 = vsel %vm485_vm3, %v478_v13, %v462_v10 }
  0x59   : > { %v539_v40 = vmul.f32 %v4575_v12, %v511_v27 }
  0x5a   : > { %v4819_v41 = vpack.c.bf16 %v395_v37, %v437_v34  ;;  %v4841_v56 = vpack.c.bf16 %v537_v47, %v494_v52 }
  0x5b   : > { %725 = vrot.lane.b32.xlu1 %v4737_v45, %s4490_s14 }
  0x5c   : > { %756 = vrot.lane.b32.xlu0 %v4711_v28, %s4488_s12 }
  0x5f   : > { %758 = vrot.lane.b32.xlu1 %v4745_v51, %s4488_s12 }
  0x60   : > { %789 = vrot.lane.b32.xlu0 %v591_v33, %s4491_s15  ;;  %v594_v33 = vpack.c.bf16 %v535_v30, %v493_v31  ;;  %v364_v30 = vrot.slane %v4860_v18, 7  ;;  %v380_v31 = vrot.slane %v4863_v11, 7 }
  0x63   : > { %791 = vrot.lane.b32.xlu1 %v592_v55, %s4491_s15 }
  0x64   : > { %822 = vrot.lane.b32.xlu0 %v4737_v45, %s4492_s16 }
  0x67   : > { %824 = vrot.lane.b32.xlu1 %v4761_v60, %s4492_s16 }
  0x68   : > { %854 = vrot.lane.b32.xlu0 %v4745_v51, %s4493_s17 }
  0x6b   : > { %856 = vrot.lane.b32.xlu1 %v4769_v62, %s4493_s17 }
  0x6c   : > { %886 = vrot.lane.b32.xlu0 %v592_v55, %s4494_s20 }
  0x6f   : > { %631 = vrot.lane.b32.xlu1 %v4745_v51, %s4486_s29 }
  0x70   : > { %888 = vrot.lane.b32.xlu0 %v593_v5, %s4494_s20 }
  0x73   : > { %633 = vrot.lane.b32.xlu1 %v4769_v62, %s4486_s29 }
  0x74   : > { %679 = vrot.lane.b32.xlu0 %v592_v55, %s4489_s13 }
  0x77   : > { %681 = vrot.lane.b32.xlu1 %v593_v5, %s4489_s13 }
  0x78   : > { %727 = vrot.lane.b32.xlu0 %v4761_v60, %s4490_s14 }
  0x7b   : > { %729 = vrot.lane.b32.xlu1 %v4795_v23, %s4490_s14 }
  0x7c   : > { %760 = vrot.lane.b32.xlu0 %v4769_v62, %s4488_s12 }
  0x7e   : > { %v620_v36 = vpop.permute.xlu0 %619 }
  0x7f   : > { %762 = vrot.lane.b32.xlu1 %v4803_v29, %s4488_s12  ;;  %v913_v19 = vsel %vm910_vm5, %v4851_v4, %v620_v36  ;;  %v4881_v36 = vpack.c.bf16 %v326_v54, %v325_v53 }
  0x80   : > { %793 = vrot.lane.b32.xlu0 %v593_v5, %s4491_s15 }
  0x83   : > { %795 = vrot.lane.b32.xlu1 %v594_v33, %s4491_s15 }
  0x84   : > { %826 = vrot.lane.b32.xlu0 %v4795_v23, %s4492_s16 }
  0x85   : > { %v4823_v42 = vpop.permute.xlu1 %750 }
  0x86   : > { %v622_v44 = vpop.permute.xlu0 %621 }
  0x87   : > { %828 = vrot.lane.b32.xlu1 %v4819_v41, %s4492_s16 }
  0x88   : > { %858 = vrot.lane.b32.xlu0 %v4803_v29, %s4493_s17 }
  0x89   : > { %v668_v49 = vpop.permute.xlu1 %667 }
  0x8a   : > { %v749_v55 = vpop.permute.xlu0 %748  ;;  %v961_v22 = vsel %vm959_vm6, %v913_v19, %v668_v49 }
  0x8b   : > { %860 = vrot.lane.b32.xlu1 %v4829_v46, %s4493_s17 }
  0x8c   : > { %890 = vrot.lane.b32.xlu0 %v594_v33, %s4494_s20 }
  0x8d   : > { %v670_v59 = vpop.permute.xlu1 %669 }
  0x8e   : > { %v716_v63 = vpop.permute.xlu0 %715 }
  0x8f   : > { %635 = vrot.lane.b32.xlu1 %v4803_v29, %s4486_s29  ;;  %v994_v25 = vsel %vm992_vm7, %v961_v22, %v716_v63  ;;  %v397_v63 = vsel %vm386_vm2, %v364_v30, %v380_v31 }
  0x90   : > { %892 = vrot.lane.b32.xlu0 %v4841_v56, %s4494_s20  ;;  %v1027_v38 = vsel %vm1025_vm8, %v994_v25, %v749_v55 }
  0x91   : > { %v718_v3 = vpop.permute.xlu1 %717 }
  0x92   : > { %v782_v5 = vpop.permute.xlu0 %781 }
  0x93   : > { %637 = vrot.lane.b32.xlu1 %v4829_v46, %s4486_s29  ;;  %v1060_v47 = vsel %vm1058_vm9, %v1027_v38, %v782_v5  ;;  %v479_v5 = vrot.slane %v4863_v11, 1 }
  0x94   : > { %683 = vrot.lane.b32.xlu0 %v594_v33, %s4489_s13  ;;  %v916_v33 = vsel %vm910_vm5, %v4613_v35, %v622_v44  ;;  %v495_v35 = vsel %vm485_vm3, %v462_v10, %v478_v13  ;;  %v413_v44 = vsel %vm386_vm2, %v380_v31, %v364_v30  ;;  %v329_v30 = vld [vmem:[%s4563_s11 + $0xb0] sm:$0xff]  ;;  %v330_v31 = vld [vmem:[%s4563_s11 + $0xb8] sm:$0xff] }
  0x95   : > { %v784_v16 = vpop.permute.xlu1 %783  ;;  %v963_v37 = vsel %vm959_vm6, %v916_v33, %v670_v59  ;;  %v596_v58 = vpack.c.bf16 %v539_v40, %v495_v35  ;;  %v441_v59 = vmul.f32 %v4585_v17, %v413_v44  ;;  %v464_v44 = vrot.slane %v329_v30, 1 }
  0x96   : > { %v815_v20 = vpop.permute.xlu0 %814  ;;  %v996_v43 = vsel %vm992_vm7, %v963_v37, %v718_v3  ;;  %v463_v3 = vrot.slane %v4860_v18, 1 }
  0x97   : > { %685 = vrot.lane.b32.xlu1 %v4841_v56, %s4489_s13  ;;  %v1093_v49 = vsel %vm1091_vm10, %v1060_v47, %v815_v20  ;;  %v1029_v55 = vsel %vm1025_vm8, %v996_v43, %v4823_v42  ;;  %v4927_v20 = vpack.c.bf16 %v4863_v11, %v4860_v18  ;;  %v365_v18 = vrot.slane %v329_v30, 7 }
  0x98   : > { %731 = vrot.lane.b32.xlu0 %v4819_v41, %s4490_s14  ;;  %v1062_v61 = vsel %vm1058_vm9, %v1029_v55, %v784_v16  ;;  %v512_v16 = vsel %vm485_vm3, %v479_v5, %v463_v3  ;;  %v496_v27 = vsel %vm485_vm3, %v463_v3, %v479_v5  ;;  %v381_v11 = vrot.slane %v330_v31, 7 }
  0x99   : > { %v817_v32 = vpop.permute.xlu1 %816  ;;  %v541_v22 = vmul.f32 %v4575_v12, %v512_v16 }
  0x9a   : > { %v847_v34 = vpop.permute.xlu0 %846  ;;  %v1095_v42 = vsel %vm1091_vm10, %v1062_v61, %v817_v32  ;;  %v414_v38 = vsel %vm386_vm2, %v381_v11, %v365_v18  ;;  %v398_v35 = vsel %vm386_vm2, %v365_v18, %v381_v11 }
  0x9b   : > { %733 = vrot.lane.b32.xlu1 %v4870_v24, %s4490_s14  ;;  %v1126_v53 = vsel %vm1124_vm11, %v1093_v49, %v847_v34  ;;  %v597_v33 = vpack.c.bf16 %v541_v22, %v496_v27  ;;  %v443_v47 = vmul.f32 %v4585_v17, %v414_v38  ;;  %v480_v49 = vrot.slane %v330_v31, 1 }
  0x9c   : > { %764 = vrot.lane.b32.xlu0 %v4829_v46, %s4488_s12 }
  0x9d   : > { %v849_v52 = vpop.permute.xlu1 %848 }
  0x9e   : > { %v879_v54 = vpop.permute.xlu0 %878  ;;  %v1128_v6 = vsel %vm1124_vm11, %v1095_v42, %v849_v52 }
  0x9f   : > { %766 = vrot.lane.b32.xlu1 %v4881_v36, %s4488_s12  ;;  %v1159_v57 = vsel %vm1157_vm12, %v1126_v53, %v879_v54  ;;  %v331_v53 = vld [vmem:[%s4563_s11 + $0xc0] sm:$0xff]  ;;  %v332_v54 = vld [vmem:[%s4563_s11 + $0xc8] sm:$0xff] }
  0xa0   : > { %797 = vrot.lane.b32.xlu0 %v4841_v56, %s4491_s15  ;;  %4286 = vmatprep.mubr.msk.bf16.mxu0 %vm1217_vm13, %v1159_v57  ;;  %v4916_v56 = vpack.c.bf16 %v397_v63, %v441_v59  ;;  %v4955_v59 = vpack.c.bf16 %v398_v35, %v443_v47  ;;  %v366_v61 = vrot.slane %v331_v53, 7  ;;  %v382_v63 = vrot.slane %v332_v54, 7 }
  0xa1   : > { %v624_v0 = vpop.permute.xlu1 %623  ;;  %v465_v47 = vrot.slane %v331_v53, 1  ;;  %v481_v35 = vrot.slane %v332_v54, 1 }
  0xa2   : > { %v881_v9 = vpop.permute.xlu0 %880  ;;  %v919_v55 = vsel %vm910_vm5, %v4618_v39, %v624_v0 }
  0xa3   : > { %v1161_v10 = vsel %vm1157_vm12, %v1128_v6, %v881_v9  ;;  %799 = vrot.lane.b32.xlu1 %v596_v58, %s4491_s15  ;;  %v4968_v9 = vpack.c.bf16 %v330_v31, %v329_v30 }
  0xa4   : > { %830 = vrot.lane.b32.xlu0 %v4870_v24, %s4492_s16  ;;  %4287 = vmatmul.mubr.msk.bf16.vlgmr.msra.gmra.mxu0 %vm1217_vm13, %v1161_v10 }
  0xa5   : > { %v626_v13 = vpop.permute.xlu1 %625 }
  0xa6   : > { %v672_v19 = vpop.permute.xlu0 %671  ;;  %v922_v5 = vsel %vm910_vm5, %v4634_v48, %v626_v13  ;;  %v497_v48 = vsel %vm485_vm3, %v464_v44, %v480_v49  ;;  %v415_v13 = vsel %vm386_vm2, %v382_v63, %v366_v61 }
  0xa7   : > { %832 = vrot.lane.b32.xlu1 %v4916_v56, %s4492_s16  ;;  %v965_v42 = vsel %vm959_vm6, %v919_v55, %v672_v19  ;;  %v445_v38 = vmul.f32 %v4585_v17, %v415_v13 }
  0xa8   : > { %862 = vrot.lane.b32.xlu0 %v4881_v36, %s4493_s17 }
  0xa9   : > { %v674_v25 = vpop.permute.xlu1 %673 }
  0xaa   : > { %v720_v32 = vpop.permute.xlu0 %719  ;;  %v967_v19 = vsel %vm959_vm6, %v922_v5, %v674_v25  ;;  %v333_v5 = vld [vmem:[%s4563_s11 + $0xd0] sm:$0xff] }
  0xab   : > { %864 = vrot.lane.b32.xlu1 %v4927_v20, %s4493_s17  ;;  %v998_v39 = vsel %vm992_vm7, %v965_v42, %v720_v32 }
  0xac   : > { %894 = vrot.lane.b32.xlu0 %v596_v58, %s4494_s20 }
  0xad   : > { %v722_v34 = vpop.permute.xlu1 %721 }
  0xae   : > { %v753_v37 = vpop.permute.xlu0 %752  ;;  %v1000_v30 = vsel %vm992_vm7, %v967_v19, %v722_v34  ;;  %v399_v34 = vsel %vm386_vm2, %v366_v61, %v382_v63  ;;  %v5005_v61 = vpack.c.bf16 %v332_v54, %v331_v53  ;;  %v367_v53 = vrot.slane %v333_v5, 7 }
  0xaf   : > { %639 = vrot.lane.b32.xlu1 %v4881_v36, %s4486_s29  ;;  %v1031_v6 = vsel %vm1025_vm8, %v998_v39, %v753_v37  ;;  %v334_v39 = vld [vmem:[%s4563_s11 + $0xd8] sm:$0xff] }
  0xb0   : > { %896 = vrot.lane.b32.xlu0 %v597_v33, %s4494_s20  ;;  %6766 = vst [vmem:[#allocation3_spill] sm:$0xff] %v5005_v61  ;;  %v383_v54 = vrot.slane %v334_v39, 7 }
  0xb1   : > { %v755_v40 = vpop.permute.xlu1 %754 }
  0xb2   : > { %v786_v43 = vpop.permute.xlu0 %785  ;;  %v1033_v18 = vsel %vm1025_vm8, %v1000_v30, %v755_v40  ;;  %v466_v30 = vrot.slane %v333_v5, 1 }
  0xb3   : > { %641 = vrot.lane.b32.xlu1 %v4927_v20, %s4486_s29  ;;  %v1064_v16 = vsel %vm1058_vm9, %v1031_v6, %v786_v43 }
  0xb4   : > { %687 = vrot.lane.b32.xlu0 %v596_v58, %s4489_s13  ;;  %v513_v58 = vsel %vm485_vm3, %v480_v49, %v464_v44 }
  0xb5   : > { %v788_v52 = vpop.permute.xlu1 %787  ;;  %v543_v10 = vmul.f32 %v4575_v12, %v513_v58 }
  0xb6   : > { %v819_v57 = vpop.permute.xlu0 %818  ;;  %v1066_v25 = vsel %vm1058_vm9, %v1033_v18, %v788_v52  ;;  %v335_v18 = vld [vmem:[%s4563_s11 + $0xe0] sm:$0xff] }
  0xb7   : > { %689 = vrot.lane.b32.xlu1 %v597_v33, %s4489_s13  ;;  %v1097_v22 = vsel %vm1091_vm10, %v1064_v16, %v819_v57  ;;  %v598_v37 = vpack.c.bf16 %v543_v10, %v497_v48  ;;  %v514_v57 = vsel %vm485_vm3, %v481_v35, %v465_v47  ;;  %v416_v48 = vsel %vm386_vm2, %v383_v54, %v367_v53 }
  0xb8   : > { %735 = vrot.lane.b32.xlu0 %v4916_v56, %s4490_s14  ;;  %v545_v63 = vmul.f32 %v4575_v12, %v514_v57  ;;  %v5046_v57 = vpack.c.bf16 %v334_v39, %v333_v5 }
  0xb9   : > { %v821_v3 = vpop.permute.xlu1 %820 }
  0xba   : > { %v851_v0 = vpop.permute.xlu0 %850  ;;  %v1099_v43 = vsel %vm1091_vm10, %v1066_v25, %v821_v3  ;;  %v498_v3 = vsel %vm485_vm3, %v465_v47, %v481_v35  ;;  %6767 = vst [vmem:[#allocation4_spill] sm:$0xff] %v5046_v57 }
  0xbb   : > { %737 = vrot.lane.b32.xlu1 %v4955_v59, %s4490_s14  ;;  %v1130_v31 = vsel %vm1124_vm11, %v1097_v22, %v851_v0  ;;  %v599_v6 = vpack.c.bf16 %v545_v63, %v498_v3  ;;  %v447_v22 = vmul.f32 %v4585_v17, %v416_v48 }
  0xbc   : > { %768 = vrot.lane.b32.xlu0 %v4927_v20, %s4488_s12 }
  0xbd   : > { %v853_v27 = vpop.permute.xlu1 %852 }
  0xbe   : > { %v883_v32 = vpop.permute.xlu0 %882  ;;  %v1132_v44 = vsel %vm1124_vm11, %v1099_v43, %v853_v27  ;;  %v400_v27 = vsel %vm386_vm2, %v367_v53, %v383_v54  ;;  %v368_v43 = vrot.slane %v335_v18, 7 }
  0xbf   : > { %v1163_v11 = vsel %vm1157_vm12, %v1130_v31, %v883_v32  ;;  %770 = vrot.lane.b32.xlu1 %v4968_v9, %s4488_s12  ;;  %v482_v31 = vrot.slane %v334_v39, 1 }
  0xc0   : > { %801 = vrot.lane.b32.xlu0 %v597_v33, %s4491_s15  ;;  %4290 = vmatprep.mubr.msk.bf16.mxu0 %vm1217_vm13, %v1163_v11  ;;  %v4996_v33 = vpack.c.bf16 %v399_v34, %v445_v38  ;;  %v336_v11 = vld [vmem:[%s4563_s11 + $0xe8] sm:$0xff]  ;;  %v5033_v34 = vpack.c.bf16 %v400_v27, %v447_v22 }
  0xc1   : > { %v628_v40 = vpop.permute.xlu1 %627  ;;  %v384_v47 = vrot.slane %v336_v11, 7 }
  0xc2   : > { %v885_v49 = vpop.permute.xlu0 %884  ;;  %v925_v38 = vsel %vm910_vm5, %v4679_v8, %v628_v40 }
  0xc3   : > { %v1165_v55 = vsel %vm1157_vm12, %v1132_v44, %v885_v49  ;;  %803 = vrot.lane.b32.xlu1 %v598_v37, %s4491_s15 }
  0xc4   : > { %834 = vrot.lane.b32.xlu0 %v4955_v59, %s4492_s16  ;;  %4291 = vmatmul.mubr.msk.bf16.gmra.mxu0 %vm1217_vm13, %v1165_v55 }
  0xc5   : > { %v630_v52 = vpop.permute.xlu1 %629 }
  0xc6   : > { %v676_v58 = vpop.permute.xlu0 %675  ;;  %v928_v49 = vsel %vm910_vm5, %v4703_v26, %v630_v52  ;;  %v499_v26 = vsel %vm485_vm3, %v466_v30, %v482_v31  ;;  %v417_v52 = vsel %vm386_vm2, %v384_v47, %v368_v43 }
  0xc7   : > { %836 = vrot.lane.b32.xlu1 %v4996_v33, %s4492_s16  ;;  %v969_v35 = vsel %vm959_vm6, %v925_v38, %v676_v58  ;;  %v449_v22 = vmul.f32 %v4585_v17, %v417_v52 }
  0xc8   : > { %866 = vrot.lane.b32.xlu0 %v4968_v9, %s4493_s17 }
  0xc9   : > { %v678_v42 = vpop.permute.xlu1 %677 }
  0xca   : > { %v724_v0 = vpop.permute.xlu0 %723  ;;  %v971_v58 = vsel %vm959_vm6, %v928_v49, %v678_v42 }
  0xcb   : > { %868 = vrot.lane.b32.xlu1 %v5005_v61, %s4493_s17  ;;  %v1002_v8 = vsel %vm992_vm7, %v969_v35, %v724_v0  ;;  %v5083_v35 = vpack.c.bf16 %v336_v11, %v335_v18 }
  0xcc   : > { %898 = vrot.lane.b32.xlu0 %v598_v37, %s4494_s20 }
  0xcd   : > { %v726_v10 = vpop.permute.xlu1 %725  ;;  %6768 = vst [vmem:[#allocation5_spill] sm:$0xff] %v5083_v35 }
  0xce   : > { %v757_v16 = vpop.permute.xlu0 %756  ;;  %v1004_v5 = vsel %vm992_vm7, %v971_v58, %v726_v10  ;;  %v401_v10 = vsel %vm386_vm2, %v368_v43, %v384_v47 }
  0xcf   : > { %643 = vrot.lane.b32.xlu1 %v4968_v9, %s4486_s29  ;;  %v1035_v55 = vsel %vm1025_vm8, %v1002_v8, %v757_v16 }
  0xd0   : > { %900 = vrot.lane.b32.xlu0 %v599_v6, %s4494_s20 }
  0xd1   : > { %v759_v13 = vpop.permute.xlu1 %758 }
  0xd2   : > { %v790_v19 = vpop.permute.xlu0 %789  ;;  %v1037_v16 = vsel %vm1025_vm8, %v1004_v5, %v759_v13 }
  0xd3   : > { %645 = vrot.lane.b32.xlu1 %v5005_v61, %s4486_s29  ;;  %v1068_v3 = vsel %vm1058_vm9, %v1035_v55, %v790_v19  ;;  %v338_v55 = vld [vmem:[%s4563_s11 + $0xf8] sm:$0xff] }
  0xd4   : > { %691 = vrot.lane.b32.xlu0 %v598_v37, %s4489_s13  ;;  %v515_v37 = vsel %vm485_vm3, %v482_v31, %v466_v30  ;;  %v467_v30 = vrot.slane %v335_v18, 1  ;;  %v483_v31 = vrot.slane %v336_v11, 1  ;;  %v385_v11 = vrot.slane %v338_v55, 7 }
  0xd5   : > { %v792_v32 = vpop.permute.xlu1 %791  ;;  %v547_v63 = vmul.f32 %v4575_v12, %v515_v37 }
  0xd6   : > { %v823_v25 = vpop.permute.xlu0 %822  ;;  %v1070_v42 = vsel %vm1058_vm9, %v1037_v16, %v792_v32  ;;  %v516_v43 = vsel %vm485_vm3, %v483_v31, %v467_v30  ;;  %v500_v8 = vsel %vm485_vm3, %v467_v30, %v483_v31 }
  0xd7   : > { %693 = vrot.lane.b32.xlu1 %v599_v6, %s4489_s13  ;;  %v1101_v0 = vsel %vm1091_vm10, %v1068_v3, %v823_v25  ;;  %v600_v19 = vpack.c.bf16 %v547_v63, %v499_v26 }
  0xd8   : > { %739 = vrot.lane.b32.xlu0 %v4996_v33, %s4490_s14 }
  0xd9   : > { %v825_v44 = vpop.permute.xlu1 %824 }
  0xda   : > { %v855_v40 = vpop.permute.xlu0 %854  ;;  %v1103_v27 = vsel %vm1091_vm10, %v1070_v42, %v825_v44  ;;  %v549_v44 = vmul.f32 %v4575_v12, %v516_v43 }
  0xdb   : > { %741 = vrot.lane.b32.xlu1 %v5033_v34, %s4490_s14  ;;  %v1134_v39 = vsel %vm1124_vm11, %v1101_v0, %v855_v40  ;;  %v337_v40 = vld [vmem:[%s4563_s11 + $0xf0] sm:$0xff] }
  0xdc   : > { %772 = vrot.lane.b32.xlu0 %v5005_v61, %s4488_s12  ;;  %v601_v3 = vpack.c.bf16 %v549_v44, %v500_v8  ;;  %v369_v18 = vrot.slane %v337_v40, 7  ;;  %v468_v16 = vrot.slane %v337_v40, 1 }
  0xdd   : > { %v857_v53 = vpop.permute.xlu1 %856 }
  0xde   : > { %v887_v54 = vpop.permute.xlu0 %886  ;;  %v1136_v38 = vsel %vm1124_vm11, %v1103_v27, %v857_v53  ;;  %v418_v58 = vsel %vm386_vm2, %v385_v11, %v369_v18 }
  0xdf   : > { %v1167_v48 = vsel %vm1157_vm12, %v1134_v39, %v887_v54  ;;  %774 = vrot.lane.b32.xlu1 %v5046_v57, %s4488_s12  ;;  %v451_v5 = vmul.f32 %v4585_v17, %v418_v58  ;;  %v402_v54 = vsel %vm386_vm2, %v369_v18, %v385_v11 }
  0xe0   : > { %805 = vrot.lane.b32.xlu0 %v599_v6, %s4491_s15  ;;  %4294 = vmatprep.mubr.msk.bf16.mxu0 %vm1217_vm13, %v1167_v48  ;;  %v5074_v6 = vpack.c.bf16 %v401_v10, %v449_v22  ;;  %v484_v48 = vrot.slane %v338_v55, 1 }
  0xe1   : > { %v632_v13 = vpop.permute.xlu1 %631  ;;  %v568_v27 = vpack.c.bf16 %v402_v54, %v451_v5 }
  0xe2   : > { %v889_v25 = vpop.permute.xlu0 %888  ;;  %v931_v39 = vsel %vm910_vm5, %v4737_v45, %v632_v13  ;;  %v517_v45 = vsel %vm485_vm3, %v484_v48, %v468_v16  ;;  %v501_v43 = vsel %vm485_vm3, %v468_v16, %v484_v48 }
  0xe3   : > { %v1169_v37 = vsel %vm1157_vm12, %v1136_v38, %v889_v25  ;;  %807 = vrot.lane.b32.xlu1 %v600_v19, %s4491_s15 }
  0xe4   : > { %838 = vrot.lane.b32.xlu0 %v5033_v34, %s4492_s16  ;;  %4295 = vmatmul.mubr.msk.bf16.gmra.mxu0 %vm1217_vm13, %v1169_v37  ;;  %v5120_v37 = vpack.c.bf16 %v338_v55, %v337_v40 }
  0xe5   : > { %v634_v32 = vpop.permute.xlu1 %633 }
  0xe6   : > { %v680_v47 = vpop.permute.xlu0 %679  ;;  %v934_v30 = vsel %vm910_vm5, %v4761_v60, %v634_v32  ;;  %6769 = vst [vmem:[#allocation6_spill] sm:$0xff] %v5120_v37  ;;  %v551_v60 = vmul.f32 %v4575_v12, %v517_v45 }
  0xe7   : > { %840 = vrot.lane.b32.xlu1 %v5074_v6, %s4492_s16  ;;  %v973_v10 = vsel %vm959_vm6, %v931_v39, %v680_v47 }
  0xe8   : > { %870 = vrot.lane.b32.xlu0 %v5046_v57, %s4493_s17  ;;  %v602_v18 = vpack.c.bf16 %v551_v60, %v501_v43 }
  0xe9   : > { %v682_v49 = vpop.permute.xlu1 %681 }
  0xea   : > { %v728_v63 = vpop.permute.xlu0 %727  ;;  %v975_v38 = vsel %vm959_vm6, %v934_v30, %v682_v49 }
  0xeb   : > { %872 = vrot.lane.b32.xlu1 %v5083_v35, %s4493_s17  ;;  %v1006_v13 = vsel %vm992_vm7, %v973_v10, %v728_v63 }
  0xec   : > { %902 = vrot.lane.b32.xlu0 %v600_v19, %s4494_s20 }
  0xed   : > { %v730_v26 = vpop.permute.xlu1 %729 }
  0xee   : > { %v761_v52 = vpop.permute.xlu0 %760  ;;  %v1008_v49 = vsel %vm992_vm7, %v975_v38, %v730_v26 }
  0xef   : > { %647 = vrot.lane.b32.xlu1 %v5046_v57, %s4486_s29  ;;  %v1039_v25 = vsel %vm1025_vm8, %v1006_v13, %v761_v52 }
  0xf0   : > { %904 = vrot.lane.b32.xlu0 %v601_v3, %s4494_s20 }
  0xf1   : > { %v763_v0 = vpop.permute.xlu1 %762 }
  0xf2   : > { %v794_v53 = vpop.permute.xlu0 %793  ;;  %v1041_v40 = vsel %vm1025_vm8, %v1008_v49, %v763_v0 }
  0xf3   : > { %649 = vrot.lane.b32.xlu1 %v5083_v35, %s4486_s29  ;;  %v1072_v32 = vsel %vm1058_vm9, %v1039_v25, %v794_v53  ;;  %s4495_s29 = smov 56  }
  0xf4   : > { %695 = vrot.lane.b32.xlu0 %v600_v19, %s4489_s13 }
  0xf5   : > { %v796_v22 = vpop.permute.xlu1 %795 }
  0xf6   : > { %v827_v42 = vpop.permute.xlu0 %826  ;;  %v1074_v11 = vsel %vm1058_vm9, %v1041_v40, %v796_v22 }
  0xf7   : > { %697 = vrot.lane.b32.xlu1 %v601_v3, %s4489_s13  ;;  %v1105_v47 = vsel %vm1091_vm10, %v1072_v32, %v827_v42 }
  0xf8   : > { %743 = vrot.lane.b32.xlu0 %v5074_v6, %s4490_s14 }
  0xf9   : > { %v829_v19 = vpop.permute.xlu1 %828 }
  0xfa   : > { %v859_v31 = vpop.permute.xlu0 %858  ;;  %v1107_v52 = vsel %vm1091_vm10, %v1074_v11, %v829_v19 }
  0xfb   : > { %745 = vrot.lane.b32.xlu1 %v568_v27, %s4490_s14  ;;  %v1138_v8 = vsel %vm1124_vm11, %v1105_v47, %v859_v31 }
  0xfc   : > { %776 = vrot.lane.b32.xlu0 %v5083_v35, %s4488_s12 }
  0xfd   : > { %v861_v44 = vpop.permute.xlu1 %860 }
  0xfe   : > { %v891_v63 = vpop.permute.xlu0 %890  ;;  %v1140_v58 = vsel %vm1124_vm11, %v1107_v52, %v861_v44 }
  0xff   : > { %v1171_v55 = vsel %vm1157_vm12, %v1138_v8, %v891_v63  ;;  %778 = vrot.lane.b32.xlu1 %v5120_v37, %s4488_s12 }
 0x100   : > { %809 = vrot.lane.b32.xlu0 %v601_v3, %s4491_s15  ;;  %4298 = vmatprep.mubr.msk.bf16.mxu0 %vm1217_vm13, %v1171_v55 }
 0x101   : > { %v636_v26 = vpop.permute.xlu1 %635 }
 0x102   : > { %v893_v53 = vpop.permute.xlu0 %892  ;;  %v937_v42 = vsel %vm910_vm5, %v4795_v23, %v636_v26 }
 0x103   : > { %v1173_v0 = vsel %vm1157_vm12, %v1140_v58, %v893_v53  ;;  %811 = vrot.lane.b32.xlu1 %v602_v18, %s4491_s15 }
 0x104   : > { %842 = vrot.lane.b32.xlu0 %v568_v27, %s4492_s16  ;;  %4299 = vmatmul.mubr.msk.bf16.gmra.mxu0 %vm1217_vm13, %v1173_v0 }
 0x105   : > { %v638_v5 = vpop.permute.xlu1 %637 }
 0x106   : > { %v684_v39 = vpop.permute.xlu0 %683  ;;  %v940_v45 = vsel %vm910_vm5, %v4819_v41, %v638_v5 }
 0x107   : > { %844 = vrot.lane.b32.xlu1 %v4851_v4, %s4492_s16  ;;  %v977_v27 = vsel %vm959_vm6, %v937_v42, %v684_v39 }
 0x108   : > { %874 = vrot.lane.b32.xlu0 %v5120_v37, %s4493_s17 }
 0x109   : > { %v686_v3 = vpop.permute.xlu1 %685 }
 0x10a   : > { %v732_v54 = vpop.permute.xlu0 %731  ;;  %v979_v31 = vsel %vm959_vm6, %v940_v45, %v686_v3 }
 0x10b   : > { %876 = vrot.lane.b32.xlu1 %v6760_v1, %s4493_s17  ;;  %v1010_v13 = vsel %vm992_vm7, %v977_v27, %v732_v54 }
 0x10c   : > { %906 = vrot.lane.b32.xlu0 %v602_v18, %s4494_s20 }
 0x10d   : > { %v734_v16 = vpop.permute.xlu1 %733 }
 0x10e   : > { %v765_v48 = vpop.permute.xlu0 %764  ;;  %v1012_v23 = vsel %vm992_vm7, %v979_v31, %v734_v16 }
 0x10f   : > { %908 = vrot.lane.b32.xlu1 %v4590_v21, %s4494_s20  ;;  %v1043_v60 = vsel %vm1025_vm8, %v1010_v13, %v765_v48 }
 0x110   : > { %1734 = vrot.lane.b32.xlu0 %v6760_v1, %s4489_s13 }
 0x111   : > { %v767_v22 = vpop.permute.xlu1 %766 }
 0x112   : > { %v798_v10 = vpop.permute.xlu0 %797  ;;  %v1045_v41 = vsel %vm1025_vm8, %v1012_v23, %v767_v22 }
 0x113   : > { %v1076_v32 = vsel %vm1058_vm9, %v1043_v60, %v798_v10 }
 0x114   : > { %1781 = vrot.lane.b32.xlu0 %v4590_v21, %s4488_s12 }
 0x115   : > { %v800_v30 = vpop.permute.xlu1 %799 }
 0x116   : > { %v831_v19 = vpop.permute.xlu0 %830  ;;  %v1078_v63 = vsel %vm1058_vm9, %v1045_v41, %v800_v30 }
 0x117   : > { %v1109_v43 = vsel %vm1091_vm10, %v1076_v32, %v831_v19 }
 0x119   : > { %v833_v38 = vpop.permute.xlu1 %832 }
 0x11a   : > { %v863_v25 = vpop.permute.xlu0 %862  ;;  %v1111_v40 = vsel %vm1091_vm10, %v1078_v63, %v833_v38 }
 0x11b   : > { %v1142_v44 = vsel %vm1124_vm11, %v1109_v43, %v863_v25 }
 0x11d   : > { %v865_v47 = vpop.permute.xlu1 %864 }
 0x11e   : > { %v895_v49 = vpop.permute.xlu0 %894  ;;  %v1144_v18 = vsel %vm1124_vm11, %v1111_v40, %v865_v47 }
 0x11f   : > { %v1175_v8 = vsel %vm1157_vm12, %v1142_v44, %v895_v49 }
 0x120   : > { %4302 = vmatprep.mubr.msk.bf16.mxu0 %vm1217_vm13, %v1175_v8 }
 0x121   : > { %v640_v55 = vpop.permute.xlu1 %639 }
 0x122   : > { %v897_v11 = vpop.permute.xlu0 %896  ;;  %v943_v54 = vsel %vm910_vm5, %v4870_v24, %v640_v55 }
 0x123   : > { %v1177_v52 = vsel %vm1157_vm12, %v1144_v18, %v897_v11 }
 0x124   : > { %4303 = vmatmul.mubr.msk.bf16.gmra.mxu0 %vm1217_vm13, %v1177_v52 }
 0x125   : > { %v642_v26 = vpop.permute.xlu1 %641 }
 0x126   : > { %v688_v58 = vpop.permute.xlu0 %687  ;;  %v946_v42 = vsel %vm910_vm5, %v4916_v56, %v642_v26 }
 0x127   : > { %v981_v48 = vsel %vm959_vm6, %v943_v54, %v688_v58 }
 0x129   : > { %v690_v53 = vpop.permute.xlu1 %689 }
 0x12a   : > { %v736_v0 = vpop.permute.xlu0 %735  ;;  %v983_v30 = vsel %vm959_vm6, %v946_v42, %v690_v53 }
 0x12b   : > { %v1014_v27 = vsel %vm992_vm7, %v981_v48, %v736_v0 }
 0x12d   : > { %v738_v5 = vpop.permute.xlu1 %737 }
 0x12e   : > { %v769_v39 = vpop.permute.xlu0 %768  ;;  %v1016_v31 = vsel %vm992_vm7, %v983_v30, %v738_v5 }
 0x12f   : > { %v1047_v13 = vsel %vm1025_vm8, %v1014_v27, %v769_v39 }
 0x131   : > { %v771_v3 = vpop.permute.xlu1 %770 }
 0x132   : > { %v802_v16 = vpop.permute.xlu0 %801  ;;  %v1049_v56 = vsel %vm1025_vm8, %v1016_v31, %v771_v3 }
 0x133   : > { %v1080_v24 = vsel %vm1058_vm9, %v1047_v13, %v802_v16 }
 0x135   : > { %v804_v22 = vpop.permute.xlu1 %803 }
 0x136   : > { %v835_v10 = vpop.permute.xlu0 %834  ;;  %v1082_v43 = vsel %vm1058_vm9, %v1049_v56, %v804_v22 }
 0x137   : > { %v1113_v38 = vsel %vm1091_vm10, %v1080_v24, %v835_v10 }
 0x139   : > { %v837_v45 = vpop.permute.xlu1 %836 }
 0x13a   : > { %v867_v19 = vpop.permute.xlu0 %866  ;;  %v1115_v47 = vsel %vm1091_vm10, %v1082_v43, %v837_v45 }
 0x13b   : > { %v1146_v60 = vsel %vm1124_vm11, %v1113_v38, %v867_v19 }
 0x13d   : > { %v869_v25 = vpop.permute.xlu1 %868 }
 0x13e   : > { %v899_v23 = vpop.permute.xlu0 %898  ;;  %v1148_v49 = vsel %vm1124_vm11, %v1115_v47, %v869_v25 }
 0x13f   : > { %v1179_v32 = vsel %vm1157_vm12, %v1146_v60, %v899_v23  ;;  %v5218_v23 = vld [vmem:[%s6756_s5] ss:$0 sm:$0xff] }
 0x140   : > { %4306 = vmatprep.mubr.msk.bf16.mxu0 %vm1217_vm13, %v1179_v32 }
 0x141   : > { %v644_v44 = vpop.permute.xlu1 %643 }
 0x142   : > { %v901_v41 = vpop.permute.xlu0 %900  ;;  %v949_v58 = vsel %vm910_vm5, %v4955_v59, %v644_v44 }
 0x143   : > { %v1181_v8 = vsel %vm1157_vm12, %v1148_v49, %v901_v41 }
 0x144   : > { %4307 = vmatmul.mubr.msk.bf16.gmra.mxu0 %vm1217_vm13, %v1181_v8 }
 0x145   : > { %v646_v63 = vpop.permute.xlu1 %645 }
 0x146   : > { %v692_v40 = vpop.permute.xlu0 %691  ;;  %v952_v39 = vsel %vm910_vm5, %v4996_v33, %v646_v63 }
 0x147   : > { %v985_v0 = vsel %vm959_vm6, %v949_v58, %v692_v40 }
 0x149   : > { %v694_v55 = vpop.permute.xlu1 %693 }
 0x14a   : > { %v740_v18 = vpop.permute.xlu0 %739  ;;  %v987_v16 = vsel %vm959_vm6, %v952_v39, %v694_v55 }
 0x14b   : > { %v1018_v54 = vsel %vm992_vm7, %v985_v0, %v740_v18 }
 0x14d   : > { %v742_v11 = vpop.permute.xlu1 %741 }
 0x14e   : > { %v773_v52 = vpop.permute.xlu0 %772  ;;  %v1020_v10 = vsel %vm992_vm7, %v987_v16, %v742_v11 }
 0x14f   : > { %v1051_v42 = vsel %vm1025_vm8, %v1018_v54, %v773_v52 }
 0x151   : > { %v775_v26 = vpop.permute.xlu1 %774 }
 0x152   : > { %v806_v53 = vpop.permute.xlu0 %805  ;;  %v1053_v33 = vsel %vm1025_vm8, %v1020_v10, %v775_v26 }
 0x153   : > { %v1084_v59 = vsel %vm1058_vm9, %v1051_v42, %v806_v53 }
 0x155   : > { %v808_v5 = vpop.permute.xlu1 %807 }
 0x156   : > { %v839_v3 = vpop.permute.xlu0 %838  ;;  %v1086_v31 = vsel %vm1058_vm9, %v1053_v33, %v808_v5 }
 0x157   : > { %v1117_v27 = vsel %vm1091_vm10, %v1084_v59, %v839_v3 }
 0x159   : > { %v841_v48 = vpop.permute.xlu1 %840 }
 0x15a   : > { %v871_v22 = vpop.permute.xlu0 %870  ;;  %v1119_v24 = vsel %vm1091_vm10, %v1086_v31, %v841_v48 }
 0x15b   : > { %v1150_v45 = vsel %vm1124_vm11, %v1117_v27, %v871_v22 }
 0x15d   : > { %v873_v30 = vpop.permute.xlu1 %872 }
 0x15e   : > { %v903_v19 = vpop.permute.xlu0 %902  ;;  %v1152_v25 = vsel %vm1124_vm11, %v1119_v24, %v873_v30 }
 0x15f   : > { %v1183_v13 = vsel %vm1157_vm12, %v1150_v45, %v903_v19 }
 0x160   : > { %4310 = vmatprep.mubr.msk.bf16.mxu0 %vm1217_vm13, %v1183_v13 }
 0x161   : > { %v648_v38 = vpop.permute.xlu1 %647 }
 0x162   : > { %v905_v60 = vpop.permute.xlu0 %904  ;;  %v955_v30 = vsel %vm910_vm5, %v5033_v34, %v648_v38 }
 0x163   : > { %v1185_v56 = vsel %vm1157_vm12, %v1152_v25, %v905_v60 }
 0x164   : > { %v4288_v32 = vpop.f32.mrf.mxu0  ;;  %4311 = vmatmul.mubr.msk.bf16.gmra.mxu0 %vm1217_vm13, %v1185_v56 }
 0x165   : > { %v1297_v43 = vadd.f32 %v4288_v32, %v5218_v23  ;;  %v650_v47 = vpop.permute.xlu1 %649 }
 0x166   : > { %v696_v44 = vpop.permute.xlu0 %695  ;;  %v1288_v49 = vpop.f32.mrf.mxu0  ;;  %v958_v24 = vsel %vm910_vm5, %v5074_v6, %v650_v47 }
 0x167   : > { %v1417_v41 = vmul.f32 0.1, %v1297_v43  ;;  %v1289_v63 = vadd.f32 %v5218_v23, %v1288_v49  ;;  %v989_v25 = vsel %vm959_vm6, %v955_v30, %v696_v44 }
 0x168   : > { %v4289_v8 = vpop.f32.mrf.mxu0 }
 0x169   : > { %v1300_v40 = vadd.f32 %v4289_v8, %v5218_v23  ;;  %v698_v55 = vpop.permute.xlu1 %697  ;;  %v1449_v52 = vmax.f32 %v1297_v43, %v1417_v41  ;;  %v1415_v53 = vmul.f32 0.1, %v1289_v63 }
 0x16a   : > { %v744_v18 = vpop.permute.xlu0 %743  ;;  %v1291_v11 = vpop.f32.mrf.mxu0  ;;  %v991_v43 = vsel %vm959_vm6, %v958_v24, %v698_v55 }
 0x16b   : > { %v1418_v26 = vmul.f32 0.1, %v1300_v40  ;;  %v1292_v58 = vadd.f32 %v5218_v23, %v1291_v11  ;;  %v1480_v54 = vrot.slane %v1449_v52, 7  ;;  %v1447_v10 = vmax.f32 %v1289_v63, %v1415_v53 }
 0x16c   : > { %v1576_v45 = vrot.slane %v1449_v52, 1  ;;  %v1022_v49 = vsel %vm992_vm7, %v989_v25, %v744_v18 }
 0x16d   : > { %v1450_v0 = vmax.f32 %v1300_v40, %v1418_v26  ;;  %v746_v5 = vpop.permute.xlu1 %745  ;;  %v1416_v39 = vmul.f32 0.1, %v1292_v58  ;;  %v1479_v41 = vrot.slane %v1447_v10, 7  ;;  %v1575_v8 = vrot.slane %v1447_v10, 1 }
 0x16e   : > { %v777_v3 = vpop.permute.xlu0 %776  ;;  %v1024_v55 = vsel %vm992_vm7, %v991_v43, %v746_v5  ;;  %vm2265_vm7 = vcmask 523264  }
 0x16f   : > { %v1496_v16 = vrot.slane %v1450_v0, 7  ;;  %v1688_v48 = vpack.c.bf16 %v1450_v0, %v1449_v52  ;;  %v1592_v22 = vrot.slane %v1450_v0, 1  ;;  %v5226_v42 = vmax.f32 %v1292_v58, %v1416_v39 }
 0x170   : > { %v1055_v18 = vsel %vm1025_vm8, %v1022_v49, %v777_v3 }
 0x171   : > { %1959 = vrot.lane.b32.xlu0 %v1688_v48, %s4495_s29  ;;  %1864 = vrot.lane.b32.xlu1 %v1688_v48, %s4494_s20  ;;  %v779_v59 = vpop.permute.xlu1 %778  ;;  %v1528_v27 = vsel %vm386_vm2, %v1496_v16, %v1480_v54  ;;  %v1687_v33 = vpack.c.bf16 %v5226_v42, %v1447_v10  ;;  %v1624_v31 = vsel %vm485_vm3, %v1592_v22, %v1576_v45  ;;  %v1495_v6 = vrot.slane %v5226_v42, 7 }
 0x172   : > { %v810_v19 = vpop.permute.xlu0 %809  ;;  %v1545_v13 = vmul.f32 %v4585_v17, %v1528_v27  ;;  %v1512_v38 = vsel %vm386_vm2, %v1480_v54, %v1496_v16  ;;  %v1642_v32 = vmul.f32 %v4575_v12, %v1624_v31  ;;  %v1591_v47 = vrot.slane %v5226_v42, 1 }
 0x173   : > { %v1608_v40 = vsel %vm485_vm3, %v1576_v45, %v1592_v22  ;;  %v1088_v52 = vsel %vm1058_vm9, %v1055_v18, %v810_v19  ;;  %v1527_v58 = vsel %vm386_vm2, %v1495_v6, %v1479_v41  ;;  %v1057_v5 = vsel %vm1025_vm8, %v1024_v55, %v779_v59 }
 0x174   : > { %v5245_v56 = vpack.c.bf16 %v1512_v38, %v1545_v13  ;;  %v1704_v11 = vpack.c.bf16 %v1642_v32, %v1608_v40  ;;  %v1623_v26 = vsel %vm485_vm3, %v1591_v47, %v1575_v8  ;;  %v1543_v22 = vmul.f32 %v4585_v17, %v1527_v58 }
 0x175   : > { %1738 = vrot.lane.b32.xlu1 %v1688_v48, %s4489_s13  ;;  %1862 = vrot.lane.b32.xlu0 %v1687_v33, %s4494_s20  ;;  %v812_v60 = vpop.permute.xlu1 %811  ;;  %v1640_v48 = vmul.f32 %v4575_v12, %v1623_v26  ;;  %v1607_v30 = vsel %vm485_vm3, %v1575_v8, %v1591_v47  ;;  %v1511_v45 = vsel %vm386_vm2, %v1479_v41, %v1495_v6  ;;  %v4465_v6 = vld [vmem:[%s6753_s2 + $0x20] ss:$0 sps:$4 sm:$0xff]  }
 0x176   : > { %v843_v34 = vpop.permute.xlu0 %842  ;;  %v1090_v54 = vsel %vm1058_vm9, %v1057_v5, %v812_v60  ;;  %4437 = vmatprep.subr.msk.bf16.mxu1 %vm2374_vm14, %v4465_v6  ;;  %v2376_v8 = vsel %vm2374_vm14, %v4465_v6, 0  ;;  %v4467_v5 = vld [vmem:[%s6753_s2 + $0x10] sm:$0xff]   ;;  %vm2341_vm9 = vcmask 588800  }
 0x177   : > { %v1121_v53 = vsel %vm1091_vm10, %v1088_v52, %v843_v34  ;;  %v1703_v19 = vpack.c.bf16 %v1640_v48, %v1607_v30  ;;  %4319 = vmatpush3.bf16.msra.mxu1 %v2376_v8  ;;  %v4469_v30 = vld [vmem:[%s6753_s2] sm:$0xff]  }
 0x179   : > { %1927 = vrot.lane.b32.xlu0 %v5245_v56, %s4496_s30  ;;  %1736 = vrot.lane.b32.xlu1 %v1687_v33, %s4489_s13  ;;  %v845_v44 = vpop.permute.xlu1 %844  ;;  %v5285_v33 = vpack.c.bf16 %v1511_v45, %v1543_v22 }
 0x17a   : > { %v875_v63 = vpop.permute.xlu0 %874  ;;  %v1123_v42 = vsel %vm1091_vm10, %v1090_v54, %v845_v44 }
 0x17b   : > { %v1154_v39 = vsel %vm1124_vm11, %v1121_v53, %v875_v63 }
 0x17d   : > { %1991 = vrot.lane.b32.xlu0 %v1704_v11, %s4497_s9  ;;  %1831 = vrot.lane.b32.xlu1 %v5245_v56, %s4492_s16  ;;  %v877_v0 = vpop.permute.xlu1 %876 }
 0x17e   : > { %v907_v3 = vpop.permute.xlu0 %906  ;;  %v1156_v10 = vsel %vm1124_vm11, %v1123_v42, %v877_v0 }
 0x17f   : > { %v1187_v16 = vsel %vm1157_vm12, %v1154_v39, %v907_v3 }
 0x180   : > { %4314 = vmatprep.mubr.msk.bf16.mxu0 %vm1217_vm13, %v1187_v16  ;;  %v4468_v16 = vld [vmem:[%s6753_s2 + $0x8] sm:$0xff]  }
 0x181   : > { %1785 = vrot.lane.b32.xlu0 %v1704_v11, %s4488_s12  ;;  %1897 = vrot.lane.b32.xlu1 %v1704_v11, %s4498_s10  ;;  %v909_v59 = vpop.permute.xlu1 %908  ;;  %v4466_v11 = vld [vmem:[%s6753_s2 + $0x18] sm:$0xff]  }
 0x182   : > { %v1189_v27 = vsel %vm1157_vm12, %v1156_v10, %v909_v59  ;;  %4320 = vmatprep.subr.bf16.mxu1 %v4466_v11 }
 0x183   : > { %4315 = vmatmul.mubr.msk.bf16.gmra.mxu0 %vm1217_vm13, %v1189_v27  ;;  %4321 = vmatpush3.bf16.msra.mxu1 %v4466_v11 }
 0x184   : > { %v4292_v13 = vpop.f32.mrf.mxu0  ;;  %4322 = vmatprep.subr.bf16.mxu1 %v4467_v5 }
 0x185   : > { %v1313_v31 = vadd.f32 %v4292_v13, %v5218_v23  ;;  %1783 = vrot.lane.b32.xlu1 %v1703_v19, %s4488_s12  ;;  %1829 = vrot.lane.b32.xlu0 %v5285_v33, %s4492_s16 }
 0x186   : > { %v1304_v24 = vpop.f32.mrf.mxu0 }
 0x187   : > { %v1421_v25 = vmul.f32 0.1, %v1313_v31  ;;  %v1305_v34 = vadd.f32 %v5218_v23, %v1304_v24  ;;  %4323 = vmatpush3.bf16.msra.mxu1 %v4467_v5 }
 0x188   : > { %v4293_v60 = vpop.f32.mrf.mxu0  ;;  %4324 = vmatprep.subr.bf16.mxu1 %v4468_v16 }
 0x189   : > { %v1316_v38 = vadd.f32 %v4293_v60, %v5218_v23  ;;  %1895 = vrot.lane.b32.xlu0 %v1703_v19, %s4498_s10  ;;  %v1453_v43 = vmax.f32 %v1313_v31, %v1421_v25  ;;  %v1419_v44 = vmul.f32 0.1, %v1305_v34 }
 0x18a   : > { %v1307_v32 = vpop.f32.mrf.mxu0 }
 0x18b   : > { %v1422_v49 = vmul.f32 0.1, %v1316_v38  ;;  %v1308_v47 = vadd.f32 %v5218_v23, %v1307_v32  ;;  %v1482_v40 = vrot.slane %v1453_v43, 7  ;;  %v1451_v58 = vmax.f32 %v1305_v34, %v1419_v44  ;;  %4325 = vmatpush3.bf16.msra.mxu1 %v4468_v16 }
 0x18c   : > { %v1578_v0 = vrot.slane %v1453_v43, 1  ;;  %4326 = vmatprep.subr.bf16.mxu1 %v4469_v30 }
 0x18d   : > { %v1454_v41 = vmax.f32 %v1316_v38, %v1422_v49  ;;  %v1420_v63 = vmul.f32 0.1, %v1308_v47  ;;  %v1577_v59 = vrot.slane %v1451_v58, 1  ;;  %v1481_v31 = vrot.slane %v1451_v58, 7 }
 0x18f   : > { %v1498_v55 = vrot.slane %v1454_v41, 7  ;;  %v1690_v18 = vpack.c.bf16 %v1454_v41, %v1453_v43  ;;  %v1594_v52 = vrot.slane %v1454_v41, 1  ;;  %v1452_v26 = vmax.f32 %v1308_v47, %v1420_v63  ;;  %4327 = vmatpush3.bf16.msra.mxu1 %v4469_v30 }
 0x191   : > { %1868 = vrot.lane.b32.xlu1 %v1690_v18, %s4494_s20  ;;  %1963 = vrot.lane.b32.xlu0 %v1690_v18, %s4495_s29  ;;  %v1530_v53 = vsel %vm386_vm2, %v1498_v55, %v1482_v40  ;;  %v1689_v39 = vpack.c.bf16 %v1452_v26, %v1451_v58  ;;  %v1626_v54 = vsel %vm485_vm3, %v1594_v52, %v1578_v0  ;;  %v1593_v10 = vrot.slane %v1452_v26, 1 }
 0x192   : > { %v1549_v3 = vmul.f32 %v4585_v17, %v1530_v53  ;;  %v1514_v48 = vsel %vm386_vm2, %v1482_v40, %v1498_v55  ;;  %v1646_v42 = vmul.f32 %v4575_v12, %v1626_v54  ;;  %v1610_v27 = vsel %vm485_vm3, %v1578_v0, %v1594_v52 }
 0x193   : > { %v1497_v19 = vrot.slane %v1452_v26, 7  ;;  %v1625_v13 = vsel %vm485_vm3, %v1593_v10, %v1577_v59  ;;  %v1609_v60 = vsel %vm485_vm3, %v1577_v59, %v1593_v10 }
 0x194   : > { %v5320_v22 = vpack.c.bf16 %v1514_v48, %v1549_v3  ;;  %v1706_v45 = vpack.c.bf16 %v1646_v42, %v1610_v27  ;;  %v1644_v24 = vmul.f32 %v4575_v12, %v1625_v13 }
 0x195   : > { %1742 = vrot.lane.b32.xlu1 %v1690_v18, %s4489_s13  ;;  %1866 = vrot.lane.b32.xlu0 %v1689_v39, %s4494_s20  ;;  %v1529_v25 = vsel %vm386_vm2, %v1497_v19, %v1481_v31  ;;  %v1513_v6 = vsel %vm386_vm2, %v1481_v31, %v1497_v19 }
 0x196   : > { %v1705_v34 = vpack.c.bf16 %v1644_v24, %v1609_v60  ;;  %v1547_v38 = vmul.f32 %v4585_v17, %v1529_v25 }
 0x198   : > { %v5349_v44 = vpack.c.bf16 %v1513_v6, %v1547_v38 }
 0x199   : > { %1961 = vrot.lane.b32.xlu1 %v1689_v39, %s4495_s29  ;;  %1931 = vrot.lane.b32.xlu0 %v5320_v22, %s4496_s30 }
 0x19d   : > { %1740 = vrot.lane.b32.xlu1 %v1689_v39, %s4489_s13  ;;  %1995 = vrot.lane.b32.xlu0 %v1706_v45, %s4497_s9 }
 0x1a1   : > { %1835 = vrot.lane.b32.xlu1 %v5320_v22, %s4492_s16  ;;  %1789 = vrot.lane.b32.xlu0 %v1706_v45, %s4488_s12 }
 0x1a4   : > { %v4296_v32 = vpop.f32.mrf.mxu0 }
 0x1a5   : > { %v1329_v43 = vadd.f32 %v4296_v32, %v5218_v23  ;;  %1901 = vrot.lane.b32.xlu1 %v1706_v45, %s4498_s10  ;;  %1993 = vrot.lane.b32.xlu0 %v1705_v34, %s4497_s9 }
 0x1a6   : > { %v1320_v49 = vpop.f32.mrf.mxu0 }
 0x1a7   : > { %v1425_v47 = vmul.f32 0.1, %v1329_v43  ;;  %v1321_v8 = vadd.f32 %v5218_v23, %v1320_v49 }
 0x1a8   : > { %v4297_v41 = vpop.f32.mrf.mxu0 }
 0x1a9   : > { %v1332_v63 = vadd.f32 %v4297_v41, %v5218_v23  ;;  %1929 = vrot.lane.b32.xlu1 %v5349_v44, %s4496_s30  ;;  %1833 = vrot.lane.b32.xlu0 %v5349_v44, %s4492_s16  ;;  %v1457_v55 = vmax.f32 %v1329_v43, %v1425_v47  ;;  %v1423_v52 = vmul.f32 0.1, %v1321_v8 }
 0x1aa   : > { %v1323_v40 = vpop.f32.mrf.mxu0 }
 0x1ab   : > { %v1426_v18 = vmul.f32 0.1, %v1332_v63  ;;  %v1324_v11 = vadd.f32 %v5218_v23, %v1323_v40  ;;  %v1484_v53 = vrot.slane %v1457_v55, 7  ;;  %v1455_v54 = vmax.f32 %v1321_v8, %v1423_v52 }
 0x1ac   : > { %v1580_v48 = vrot.slane %v1457_v55, 1 }
 0x1ad   : > { %v1458_v26 = vmax.f32 %v1332_v63, %v1426_v18  ;;  %1787 = vrot.lane.b32.xlu1 %v1705_v34, %s4488_s12  ;;  %1899 = vrot.lane.b32.xlu0 %v1705_v34, %s4498_s10  ;;  %v1424_v58 = vmul.f32 0.1, %v1324_v11  ;;  %v1579_v13 = vrot.slane %v1455_v54, 1  ;;  %v1483_v34 = vrot.slane %v1455_v54, 7 }
 0x1af   : > { %v1500_v0 = vrot.slane %v1458_v26, 7  ;;  %v1692_v5 = vpack.c.bf16 %v1458_v26, %v1457_v55  ;;  %v1596_v39 = vrot.slane %v1458_v26, 1  ;;  %v1456_v3 = vmax.f32 %v1324_v11, %v1424_v58 }
 0x1b1   : > { %1872 = vrot.lane.b32.xlu1 %v1692_v5, %s4494_s20  ;;  %1967 = vrot.lane.b32.xlu0 %v1692_v5, %s4495_s29  ;;  %v1532_v16 = vsel %vm386_vm2, %v1500_v0, %v1484_v53  ;;  %v1691_v42 = vpack.c.bf16 %v1456_v3, %v1455_v54  ;;  %v1628_v59 = vsel %vm485_vm3, %v1596_v39, %v1580_v48  ;;  %v1595_v19 = vrot.slane %v1456_v3, 1 }
 0x1b2   : > { %v1553_v10 = vmul.f32 %v4585_v17, %v1532_v16  ;;  %v1516_v27 = vsel %vm386_vm2, %v1484_v53, %v1500_v0  ;;  %v1650_v45 = vmul.f32 %v4575_v12, %v1628_v59  ;;  %v1612_v31 = vsel %vm485_vm3, %v1580_v48, %v1596_v39 }
 0x1b3   : > { %v1499_v25 = vrot.slane %v1456_v3, 7  ;;  %v1627_v60 = vsel %vm485_vm3, %v1595_v19, %v1579_v13  ;;  %v1611_v43 = vsel %vm485_vm3, %v1579_v13, %v1595_v19 }
 0x1b4   : > { %v5371_v30 = vpack.c.bf16 %v1516_v27, %v1553_v10  ;;  %v1708_v24 = vpack.c.bf16 %v1650_v45, %v1612_v31  ;;  %v1648_v38 = vmul.f32 %v4575_v12, %v1627_v60 }
 0x1b5   : > { %1746 = vrot.lane.b32.xlu1 %v1692_v5, %s4489_s13  ;;  %1870 = vrot.lane.b32.xlu0 %v1691_v42, %s4494_s20  ;;  %v1531_v32 = vsel %vm386_vm2, %v1499_v25, %v1483_v34  ;;  %v1515_v63 = vsel %vm386_vm2, %v1483_v34, %v1499_v25 }
 0x1b6   : > { %v1707_v49 = vpack.c.bf16 %v1648_v38, %v1611_v43  ;;  %v1551_v6 = vmul.f32 %v4585_v17, %v1531_v32 }
 0x1b8   : > { %v5398_v18 = vpack.c.bf16 %v1515_v63, %v1551_v6 }
 0x1b9   : > { %1965 = vrot.lane.b32.xlu1 %v1691_v42, %s4495_s29  ;;  %1935 = vrot.lane.b32.xlu0 %v5371_v30, %s4496_s30 }
 0x1bd   : > { %1744 = vrot.lane.b32.xlu1 %v1691_v42, %s4489_s13  ;;  %1999 = vrot.lane.b32.xlu0 %v1708_v24, %s4497_s9 }
 0x1c1   : > { %1839 = vrot.lane.b32.xlu1 %v5371_v30, %s4492_s16  ;;  %1793 = vrot.lane.b32.xlu0 %v1708_v24, %s4488_s12 }
 0x1c4   : > { %v4300_v47 = vpop.f32.mrf.mxu0 }
 0x1c5   : > { %v1345_v41 = vadd.f32 %v4300_v47, %v5218_v23  ;;  %1905 = vrot.lane.b32.xlu1 %v1708_v24, %s4498_s10  ;;  %1997 = vrot.lane.b32.xlu0 %v1707_v49, %s4497_s9 }
 0x1c6   : > { %v1336_v8 = vpop.f32.mrf.mxu0 }
 0x1c7   : > { %v1429_v40 = vmul.f32 0.1, %v1345_v41  ;;  %v1337_v55 = vadd.f32 %v5218_v23, %v1336_v8 }
 0x1c8   : > { %v4301_v11 = vpop.f32.mrf.mxu0 }
 0x1c9   : > { %v1348_v52 = vadd.f32 %v4301_v11, %v5218_v23  ;;  %1933 = vrot.lane.b32.xlu1 %v5398_v18, %s4496_s30  ;;  %1837 = vrot.lane.b32.xlu0 %v5398_v18, %s4492_s16  ;;  %v1427_v26 = vmul.f32 0.1, %v1337_v55  ;;  %v1461_v53 = vmax.f32 %v1345_v41, %v1429_v40 }
 0x1ca   : > { %v1339_v58 = vpop.f32.mrf.mxu0 }
 0x1cb   : > { %v1430_v0 = vmul.f32 0.1, %v1348_v52  ;;  %v1340_v5 = vadd.f32 %v5218_v23, %v1339_v58  ;;  %v1459_v3 = vmax.f32 %v1337_v55, %v1427_v26  ;;  %v1486_v16 = vrot.slane %v1461_v53, 7 }
 0x1cc   : > { %v1582_v32 = vrot.slane %v1461_v53, 1 }
 0x1cd   : > { %v1462_v39 = vmax.f32 %v1348_v52, %v1430_v0  ;;  %1791 = vrot.lane.b32.xlu1 %v1707_v49, %s4488_s12  ;;  %1903 = vrot.lane.b32.xlu0 %v1707_v49, %s4498_s10  ;;  %v1428_v54 = vmul.f32 0.1, %v1340_v5  ;;  %v1581_v27 = vrot.slane %v1459_v3, 1  ;;  %v1485_v38 = vrot.slane %v1459_v3, 7  ;;  %v1735_v49 = vpop.permute.xlu0 %1734 }
 0x1cf   : > { %v1502_v48 = vrot.slane %v1462_v39, 7  ;;  %v5408_v42 = vpack.c.bf16 %v1462_v39, %v1461_v53  ;;  %v1460_v10 = vmax.f32 %v1340_v5, %v1428_v54  ;;  %v1598_v25 = vrot.slane %v1462_v39, 1 }
 0x1d1   : > { %1876 = vrot.lane.b32.xlu1 %v5408_v42, %s4494_s20  ;;  %v1534_v59 = vsel %vm386_vm2, %v1502_v48, %v1486_v16  ;;  %v1597_v45 = vrot.slane %v1460_v10, 1  ;;  %v1693_v19 = vpack.c.bf16 %v1460_v10, %v1459_v3  ;;  %v1501_v31 = vrot.slane %v1460_v10, 7  ;;  %v1782_v55 = vpop.permute.xlu0 %1781 }
 0x1d2   : > { %v1557_v13 = vmul.f32 %v4585_v17, %v1534_v59  ;;  %v1518_v24 = vsel %vm386_vm2, %v1486_v16, %v1502_v48  ;;  %v1630_v47 = vsel %vm485_vm3, %v1598_v25, %v1582_v32  ;;  %v1614_v26 = vsel %vm485_vm3, %v1582_v32, %v1598_v25 }
 0x1d3   : > { %1874 = vrot.lane.b32.xlu0 %v1693_v19, %s4494_s20  ;;  %v1629_v34 = vsel %vm485_vm3, %v1597_v45, %v1581_v27  ;;  %v1533_v6 = vsel %vm386_vm2, %v1501_v31, %v1485_v38  ;;  %v1613_v41 = vsel %vm485_vm3, %v1581_v27, %v1597_v45  ;;  %v1654_v40 = vmul.f32 %v4575_v12, %v1630_v47 }
 0x1d4   : > { %v5418_v60 = vpack.c.bf16 %v1518_v24, %v1557_v13  ;;  %v1652_v43 = vmul.f32 %v4575_v12, %v1629_v34  ;;  %v1555_v63 = vmul.f32 %v4585_v17, %v1533_v6  ;;  %v1517_v11 = vsel %vm386_vm2, %v1485_v38, %v1501_v31 }
 0x1d5   : > { %1969 = vrot.lane.b32.xlu1 %v1693_v19, %s4495_s29  ;;  %v5444_v58 = vpack.c.bf16 %v1654_v40, %v1614_v26 }
 0x1d6   : > { %v1709_v8 = vpack.c.bf16 %v1652_v43, %v1613_v41  ;;  %v5440_v52 = vpack.c.bf16 %v1517_v11, %v1555_v63  ;;  %v2024_v11 = vsel %vm959_vm6, %v4851_v4, %v1735_v49 }
 0x1d7   : > { %1939 = vrot.lane.b32.xlu0 %v5418_v60, %s4496_s30 }
 0x1d9   : > { %1748 = vrot.lane.b32.xlu1 %v1693_v19, %s4489_s13 }
 0x1db   : > { %2001 = vrot.lane.b32.xlu0 %v1709_v8, %s4497_s9 }
 0x1dd   : > { %1843 = vrot.lane.b32.xlu1 %v5418_v60, %s4492_s16 }
 0x1df   : > { %1841 = vrot.lane.b32.xlu0 %v5440_v52, %s4492_s16 }
 0x1e1   : > { %1909 = vrot.lane.b32.xlu1 %v5444_v58, %s4498_s10 }
 0x1e3   : > { %v5450_v53 = vpop.permute.xlu0 %1959  ;;  %v5452_v0 = vpop.permute.xlu1 %1864  ;;  %1907 = vrot.lane.b32.xlu0 %v1709_v8, %s4498_s10 }
 0x1e4   : > { %v4304_v5 = vpop.f32.mrf.mxu0 }
 0x1e5   : > { %1937 = vrot.lane.b32.xlu1 %v5440_v52, %s4496_s30  ;;  %v1361_v38 = vadd.f32 %v4304_v5, %v5218_v23 }
 0x1e6   : > { %v1352_v39 = vpop.f32.mrf.mxu0 }
 0x1e7   : > { %v1353_v3 = vadd.f32 %v5218_v23, %v1352_v39  ;;  %v5458_v54 = vpop.permute.xlu1 %1738  ;;  %v1863_v16 = vpop.permute.xlu0 %1862  ;;  %1971 = vrot.lane.b32.xlu0 %v5408_v42, %s4495_s29  ;;  %v1433_v39 = vmul.f32 0.1, %v1361_v38 }
 0x1e8   : > { %v4305_v48 = vpop.f32.mrf.mxu0 }
 0x1e9   : > { %1795 = vrot.lane.b32.xlu1 %v1709_v8, %s4488_s12  ;;  %v1431_v10 = vmul.f32 0.1, %v1353_v3  ;;  %v1364_v24 = vadd.f32 %v4305_v48, %v5218_v23 }
 0x1ea   : > { %v1355_v59 = vpop.f32.mrf.mxu0 }
 0x1eb   : > { %v1928_v27 = vpop.permute.xlu0 %1927  ;;  %v1356_v45 = vadd.f32 %v5218_v23, %v1355_v59  ;;  %2003 = vrot.lane.b32.xlu0 %v5444_v58, %s4497_s9  ;;  %v5466_v19 = vpop.permute.xlu1 %1736  ;;  %v1463_v13 = vmax.f32 %v1353_v3, %v1431_v10  ;;  %v1434_v8 = vmul.f32 0.1, %v1364_v24  ;;  %v5486_v59 = vsel %vm1025_vm8, %v2024_v11, %v1782_v55 }
 0x1ec   : > { %6770 = vst [vmem:[#allocation7_spill] sm:$0xff] %v5486_v59 }
 0x1ed   : > { %v1432_v31 = vmul.f32 0.1, %v1356_v45  ;;  %v1583_v32 = vrot.slane %v1463_v13, 1  ;;  %v1487_v41 = vrot.slane %v1463_v13, 7  ;;  %v1466_v49 = vmax.f32 %v1364_v24, %v1434_v8 }
 0x1ef   : > { %v1992_v25 = vpop.permute.xlu0 %1991  ;;  %v1464_v34 = vmax.f32 %v1356_v45, %v1432_v31  ;;  %v5470_v63 = vpop.permute.xlu1 %1831  ;;  %v1504_v24 = vrot.slane %v1466_v49, 7 }
 0x1f1   : > { %v1503_v43 = vrot.slane %v1464_v34, 7  ;;  %v1599_v6 = vrot.slane %v1464_v34, 1  ;;  %v1695_v47 = vpack.c.bf16 %v1464_v34, %v1463_v13  ;;  %v1465_v34 = vmax.f32 %v1361_v38, %v1433_v39 }
 0x1f3   : > { %v5472_v40 = vpop.permute.xlu0 %1785  ;;  %1973 = vrot.lane.b32.xlu1 %v1695_v47, %s4495_s29  ;;  %v1631_v26 = vsel %vm485_vm3, %v1599_v6, %v1583_v32  ;;  %v1535_v3 = vsel %vm386_vm2, %v1503_v43, %v1487_v41  ;;  %v1615_v48 = vsel %vm485_vm3, %v1583_v32, %v1599_v6  ;;  %v1519_v32 = vsel %vm386_vm2, %v1487_v41, %v1503_v43 }
 0x1f4   : > { %v1656_v5 = vmul.f32 %v4575_v12, %v1631_v26  ;;  %v1559_v10 = vmul.f32 %v4585_v17, %v1535_v3  ;;  %v5492_v26 = vpop.permute.xlu1 %1897  ;;  %v1488_v38 = vrot.slane %v1465_v34, 7 }
 0x1f6   : > { %v1711_v13 = vpack.c.bf16 %v1656_v5, %v1615_v48  ;;  %v5497_v55 = vpack.c.bf16 %v1519_v32, %v1559_v10  ;;  %v1536_v39 = vsel %vm386_vm2, %v1504_v24, %v1488_v38  ;;  %v1520_v48 = vsel %vm386_vm2, %v1488_v38, %v1504_v24 }
 0x1f7   : > { %v1830_v45 = vpop.permute.xlu0 %1829  ;;  %1750 = vrot.lane.b32.xlu1 %v5408_v42, %s4489_s13 }
 0x1f8   : > { %v2103_v31 = vsel %vm1091_vm10, %v5486_v59, %v1830_v45  ;;  %2005 = vrot.lane.b32.xlu0 %v1711_v13, %s4497_s9  ;;  %v1784_v41 = vpop.permute.xlu1 %1783 }
 0x1f9   : > { %v2135_v6 = vsel %vm1157_vm12, %v2103_v31, %v1863_v16 }
 0x1fb   : > { %v1896_v8 = vpop.permute.xlu0 %1895  ;;  %1941 = vrot.lane.b32.xlu1 %v5497_v55, %s4496_s30 }
 0x1fc   : > { %v2168_v42 = vsel %vm2166_vm15, %v2135_v6, %v1896_v8  ;;  %1797 = vrot.lane.b32.xlu0 %v5444_v58, %s4488_s12  ;;  %v1600_v58 = vrot.slane %v1466_v49, 1 }
 0x1fd   : > { %v2201_v11 = vsel %vm2199_vm0, %v2168_v42, %v1928_v27  ;;  %v1561_v27 = vmul.f32 %v4585_v17, %v1536_v39 }
 0x1fe   : > { %v2234_v43 = vsel %vm2232_vm1, %v2201_v11, %v5450_v53 }
 0x1ff   : > { %v2267_v16 = vsel %vm2265_vm7, %v2234_v43, %v1992_v25  ;;  %1752 = vrot.lane.b32.xlu1 %v1695_v47, %s4489_s13  ;;  %v1584_v25 = vrot.slane %v1465_v34, 1  ;;  %v5524_v45 = vpack.c.bf16 %v1520_v48, %v1561_v27 }
 0x200   : > { %4328 = vmatprep.mubr.msk.bf16.mxu1 %vm2341_vm9, %v2267_v16  ;;  %1845 = vrot.lane.b32.xlu0 %v5497_v55, %s4492_s16 }
 0x201   : > { %v1632_v8 = vsel %vm485_vm3, %v1600_v58, %v1584_v25  ;;  %v1616_v27 = vsel %vm485_vm3, %v1584_v25, %v1600_v58 }
 0x202   : > { %v1658_v11 = vmul.f32 %v4575_v12, %v1632_v8 }
 0x203   : > { %v5516_v5 = vpop.permute.xlu1 %1868  ;;  %v5518_v3 = vpop.permute.xlu0 %1963  ;;  %1799 = vrot.lane.b32.xlu1 %v1711_v13, %s4488_s12 }
 0x204   : > { %v4308_v53 = vpop.f32.mrf.mxu0  ;;  %1878 = vrot.lane.b32.xlu0 %v1695_v47, %s4494_s20  ;;  %v5536_v47 = vpack.c.bf16 %v1466_v49, %v1465_v34  ;;  %v1712_v34 = vpack.c.bf16 %v1658_v11, %v1616_v27 }
 0x206   : > { %v1368_v10 = vpop.f32.mrf.mxu0 }
 0x207   : > { %v1369_v31 = vadd.f32 %v5218_v23, %v1368_v10  ;;  %v5527_v32 = vpop.permute.xlu1 %1742  ;;  %v5529_v6 = vpop.permute.xlu0 %1866  ;;  %1847 = vrot.lane.b32.xlu1 %v5524_v45, %s4492_s16 }
 0x208   : > { %v4309_v42 = vpop.f32.mrf.mxu0  ;;  %1911 = vrot.lane.b32.xlu0 %v1711_v13, %s4498_s10 }
 0x209   : > { %v1435_v24 = vmul.f32 0.1, %v1369_v31 }
 0x20a   : > { %v1371_v38 = vpop.f32.mrf.mxu0 }
 0x20b   : > { %v1962_v43 = vpop.permute.xlu1 %1961  ;;  %v1932_v16 = vpop.permute.xlu0 %1931  ;;  %v1372_v39 = vadd.f32 %v5218_v23, %v1371_v38  ;;  %1880 = vrot.lane.b32.xlu1 %v5536_v47, %s4494_s20  ;;  %v1467_v13 = vmax.f32 %v1369_v31, %v1435_v24  ;;  %v2027_v38 = vsel %vm959_vm6, %v5285_v33, %v5466_v19 }
 0x20c   : > { %1943 = vrot.lane.b32.xlu0 %v5524_v45, %s4496_s30  ;;  %v2073_v1 = vsel %vm1025_vm8, %v2027_v38, %v1784_v41 }
 0x20d   : > { %v1436_v49 = vmul.f32 0.1, %v1372_v39  ;;  %v1489_v59 = vrot.slane %v1467_v13, 7  ;;  %v1585_v31 = vrot.slane %v1467_v13, 1  ;;  %v2105_v33 = vsel %vm1091_vm10, %v2073_v1, %v5470_v63 }
 0x20e   : > { %v2137_v61 = vsel %vm1157_vm12, %v2105_v33, %v5452_v0 }
 0x20f   : > { %v5546_v48 = vpop.permute.xlu1 %1740  ;;  %v1996_v10 = vpop.permute.xlu0 %1995  ;;  %v1468_v8 = vmax.f32 %v1372_v39, %v1436_v49  ;;  %1913 = vrot.lane.b32.xlu1 %v1712_v34, %s4498_s10  ;;  %v1380_v39 = vadd.f32 %v4309_v42, %v5218_v23  ;;  %v1377_v49 = vadd.f32 %v4308_v53, %v5218_v23 }
 0x210   : > { %1975 = vrot.lane.b32.xlu0 %v5536_v47, %s4495_s29 }
 0x211   : > { %v1505_v58 = vrot.slane %v1468_v8, 7  ;;  %v1601_v25 = vrot.slane %v1468_v8, 1  ;;  %v1438_v63 = vmul.f32 0.1, %v1380_v39  ;;  %v1437_v53 = vmul.f32 0.1, %v1377_v49 }
 0x213   : > { %v5555_v24 = vpop.permute.xlu1 %1835  ;;  %v5557_v11 = vpop.permute.xlu0 %1789  ;;  %v1537_v27 = vsel %vm386_vm2, %v1505_v58, %v1489_v59  ;;  %v1633_v41 = vsel %vm485_vm3, %v1601_v25, %v1585_v31  ;;  %v1521_v38 = vsel %vm386_vm2, %v1489_v59, %v1505_v58  ;;  %v1617_v1 = vsel %vm485_vm3, %v1585_v31, %v1601_v25 }
 0x214   : > { %2007 = vrot.lane.b32.xlu0 %v1712_v34, %s4497_s9  ;;  %v1563_v19 = vmul.f32 %v4585_v17, %v1537_v27  ;;  %v1660_v42 = vmul.f32 %v4575_v12, %v1633_v41  ;;  %v2030_v59 = vsel %vm959_vm6, %v5245_v56, %v5458_v54  ;;  %v2170_v31 = vsel %vm2166_vm15, %v2137_v61, %v5492_v26 }
 0x215   : > { %v2075_v58 = vsel %vm1025_vm8, %v2030_v59, %v5472_v40  ;;  %v1470_v0 = vmax.f32 %v1380_v39, %v1438_v63  ;;  %v1469_v56 = vmax.f32 %v1377_v49, %v1437_v53 }
 0x216   : > { %v5574_v57 = vpack.c.bf16 %v1521_v38, %v1563_v19  ;;  %v1713_v27 = vpack.c.bf16 %v1660_v42, %v1617_v1  ;;  %v1697_v19 = vpack.c.bf16 %v1468_v8, %v1467_v13 }
 0x217   : > { %v5572_v37 = vpop.permute.xlu1 %1901  ;;  %v1994_v35 = vpop.permute.xlu0 %1993  ;;  %v1506_v26 = vrot.slane %v1470_v0, 7 }
 0x218   : > { %1945 = vrot.lane.b32.xlu1 %v5574_v57, %s4496_s30  ;;  %2009 = vrot.lane.b32.xlu0 %v1713_v27, %s4497_s9 }
 0x21b   : > { %v1930_v25 = vpop.permute.xlu1 %1929  ;;  %v1834_v41 = vpop.permute.xlu0 %1833 }
 0x21c   : > { %v2203_v33 = vsel %vm2199_vm0, %v2170_v31, %v1930_v25  ;;  %v2107_v38 = vsel %vm1091_vm10, %v2075_v58, %v1834_v41  ;;  %1977 = vrot.lane.b32.xlu1 %v1697_v19, %s4495_s29  ;;  %1801 = vrot.lane.b32.xlu0 %v1712_v34, %s4488_s12  ;;  %v1586_v25 = vrot.slane %v1469_v56, 1 }
 0x21d   : > { %v2236_v42 = vsel %vm2232_vm1, %v2203_v33, %v1962_v43  ;;  %v2139_v13 = vsel %vm1157_vm12, %v2107_v38, %v5529_v6  ;;  %v1490_v43 = vrot.slane %v1469_v56, 7 }
 0x21e   : > { %v2269_v54 = vsel %vm2265_vm7, %v2236_v42, %v1994_v35 }
 0x21f   : > { %v1788_v40 = vpop.permute.xlu1 %1787  ;;  %v1900_v61 = vpop.permute.xlu0 %1899  ;;  %4329 = vmatmul.mubr.msk.bf16.vlgmr.msra.gmra.mxu1 %vm2341_vm9, %v2269_v54 }
 0x220   : > { %v2172_v8 = vsel %vm2166_vm15, %v2139_v13, %v1900_v61  ;;  %1754 = vrot.lane.b32.xlu1 %v5536_v47, %s4489_s13  ;;  %1849 = vrot.lane.b32.xlu0 %v5574_v57, %s4492_s16 }
 0x221   : > { %v2205_v39 = vsel %vm2199_vm0, %v2172_v8, %v1932_v16  ;;  %v1538_v16 = vsel %vm386_vm2, %v1506_v26, %v1490_v43 }
 0x222   : > { %v2238_v35 = vsel %vm2232_vm1, %v2205_v39, %v5518_v3  ;;  %v1565_v53 = vmul.f32 %v4585_v17, %v1538_v16 }
 0x223   : > { %v5607_v34 = vpop.permute.xlu1 %1872  ;;  %v5609_v6 = vpop.permute.xlu0 %1967  ;;  %v2271_v49 = vsel %vm2265_vm7, %v2238_v35, %v1996_v10  ;;  %v1602_v10 = vrot.slane %v1470_v0, 1 }
 0x224   : > { %v4312_v1 = vpop.f32.mrf.mxu0  ;;  %4332 = vmatprep.mubr.msk.bf16.mxu1 %vm2341_vm9, %v2271_v49  ;;  %1756 = vrot.lane.b32.xlu1 %v1697_v19, %s4489_s13  ;;  %v2033_v49 = vsel %vm959_vm6, %v5349_v44, %v5546_v48 }
 0x225   : > { %1882 = vrot.lane.b32.xlu0 %v1697_v19, %s4494_s20  ;;  %v1522_v19 = vsel %vm386_vm2, %v1490_v43, %v1506_v26  ;;  %v1634_v13 = vsel %vm485_vm3, %v1602_v10, %v1586_v25  ;;  %v1618_v16 = vsel %vm485_vm3, %v1586_v25, %v1602_v10 }
 0x226   : > { %v1384_v47 = vpop.f32.mrf.mxu0  ;;  %v5629_v42 = vpack.c.bf16 %v1522_v19, %v1565_v53  ;;  %v1662_v43 = vmul.f32 %v4575_v12, %v1634_v13 }
 0x227   : > { %v1385_v63 = vadd.f32 %v5218_v23, %v1384_v47  ;;  %v5618_v3 = vpop.permute.xlu1 %1746  ;;  %v5620_v59 = vpop.permute.xlu0 %1870  ;;  %v2077_v47 = vsel %vm1025_vm8, %v2033_v49, %v1788_v40 }
 0x228   : > { %v4313_v58 = vpop.f32.mrf.mxu0  ;;  %1803 = vrot.lane.b32.xlu1 %v1713_v27, %s4488_s12  ;;  %v1714_v19 = vpack.c.bf16 %v1662_v43, %v1618_v16  ;;  %v2109_v10 = vsel %vm1091_vm10, %v2077_v47, %v5555_v24 }
 0x229   : > { %v1439_v31 = vmul.f32 0.1, %v1385_v63  ;;  %1915 = vrot.lane.b32.xlu0 %v1713_v27, %s4498_s10  ;;  %v1698_v27 = vpack.c.bf16 %v1470_v0, %v1469_v56  ;;  %v1396_v44 = vadd.f32 %v4313_v58, %v5218_v23 }
 0x22a   : > { %v1387_v41 = vpop.f32.mrf.mxu0 }
 0x22b   : > { %v1966_v33 = vpop.permute.xlu1 %1965  ;;  %v5627_v38 = vpop.permute.xlu0 %1935  ;;  %v1388_v54 = vadd.f32 %v5218_v23, %v1387_v41  ;;  %v1471_v61 = vmax.f32 %v1385_v63, %v1439_v31  ;;  %v1442_v16 = vmul.f32 0.1, %v1396_v44 }
 0x22c   : > { %1851 = vrot.lane.b32.xlu1 %v5629_v42, %s4492_s16 }
 0x22d   : > { %v1440_v8 = vmul.f32 0.1, %v1388_v54  ;;  %1947 = vrot.lane.b32.xlu0 %v5629_v42, %s4496_s30  ;;  %v1491_v63 = vrot.slane %v1471_v61, 7  ;;  %v1587_v53 = vrot.slane %v1471_v61, 1 }
 0x22f   : > { %v5638_v26 = vpop.permute.xlu1 %1744  ;;  %v5640_v39 = vpop.permute.xlu0 %1999  ;;  %v1472_v35 = vmax.f32 %v1388_v54, %v1440_v8  ;;  %v1393_v54 = vadd.f32 %v4312_v1, %v5218_v23  ;;  %v2141_v23 = vsel %vm1157_vm12, %v2109_v10, %v5516_v5  ;;  %v2036_v1 = vsel %vm959_vm6, %v5320_v22, %v5527_v32 }
 0x230   : > { %1884 = vrot.lane.b32.xlu1 %v1698_v27, %s4494_s20  ;;  %v5687_v5 = vmax.f32 %v1396_v44, %v1442_v16 }
 0x231   : > { %v1507_v0 = vrot.slane %v1472_v35, 7  ;;  %v1603_v56 = vrot.slane %v1472_v35, 1  ;;  %1979 = vrot.lane.b32.xlu0 %v1698_v27, %s4495_s29 }
 0x232   : > { %v1508_v44 = vrot.slane %v5687_v5, 7 }
 0x233   : > { %v5651_v31 = vpop.permute.xlu1 %1839  ;;  %v5653_v41 = vpop.permute.xlu0 %1793  ;;  %v1539_v48 = vsel %vm386_vm2, %v1507_v0, %v1491_v63  ;;  %v1635_v25 = vsel %vm485_vm3, %v1603_v56, %v1587_v53  ;;  %v1523_v58 = vsel %vm386_vm2, %v1491_v63, %v1507_v0  ;;  %v1619_v49 = vsel %vm485_vm3, %v1587_v53, %v1603_v56 }
 0x234   : > { %1917 = vrot.lane.b32.xlu1 %v1714_v19, %s4498_s10  ;;  %v1567_v40 = vmul.f32 %v4585_v17, %v1539_v48  ;;  %v1664_v13 = vmul.f32 %v4575_v12, %v1635_v25  ;;  %v1441_v63 = vmul.f32 0.1, %v1393_v54  ;;  %v2079_v0 = vsel %vm1025_vm8, %v2036_v1, %v5557_v11 }
 0x235   : > { %2011 = vrot.lane.b32.xlu0 %v1714_v19, %s4497_s9  ;;  %v1699_v48 = vpack.c.bf16 %v1472_v35, %v1471_v61  ;;  %v2174_v56 = vsel %vm2166_vm15, %v2141_v23, %v5572_v37 }
 0x236   : > { %v5671_v24 = vpack.c.bf16 %v1523_v58, %v1567_v40  ;;  %v1715_v47 = vpack.c.bf16 %v1664_v13, %v1619_v49  ;;  %v1473_v32 = vmax.f32 %v1393_v54, %v1441_v63  ;;  %v1604_v63 = vrot.slane %v5687_v5, 1 }
 0x237   : > { %v5669_v8 = vpop.permute.xlu1 %1905  ;;  %v1998_v43 = vpop.permute.xlu0 %1997 }
 0x238   : > { %1949 = vrot.lane.b32.xlu1 %v5671_v24, %s4496_s30  ;;  %v1492_v54 = vrot.slane %v1473_v32, 7 }
 0x239   : > { %2013 = vrot.lane.b32.xlu0 %v1715_v47, %s4497_s9 }
 0x23b   : > { %v1934_v53 = vpop.permute.xlu1 %1933  ;;  %v1838_v40 = vpop.permute.xlu0 %1837 }
 0x23c   : > { %v2207_v10 = vsel %vm2199_vm0, %v2174_v56, %v1934_v53  ;;  %v2111_v25 = vsel %vm1091_vm10, %v2079_v0, %v1838_v40  ;;  %1981 = vrot.lane.b32.xlu1 %v1699_v48, %s4495_s29  ;;  %v1588_v53 = vrot.slane %v1473_v32, 1  ;;  %v1524_v40 = vsel %vm386_vm2, %v1492_v54, %v1508_v44 }
 0x23d   : > { %v2240_v22 = vsel %vm2232_vm1, %v2207_v10, %v1966_v33  ;;  %1805 = vrot.lane.b32.xlu0 %v1714_v19, %s4488_s12  ;;  %v2143_v37 = vsel %vm1157_vm12, %v2111_v25, %v5620_v59 }
 0x23e   : > { %v2273_v11 = vsel %vm2265_vm7, %v2240_v22, %v1998_v43 }
 0x23f   : > { %v1792_v61 = vpop.permute.xlu1 %1791  ;;  %v1904_v35 = vpop.permute.xlu0 %1903  ;;  %4333 = vmatmul.mubr.msk.bf16.gmra.mxu1 %vm2341_vm9, %v2273_v11  ;;  %v1636_v11 = vsel %vm485_vm3, %v1604_v63, %v1588_v53 }
 0x240   : > { %v2176_v58 = vsel %vm2166_vm15, %v2143_v37, %v1904_v35  ;;  %1758 = vrot.lane.b32.xlu1 %v1698_v27, %s4489_s13  ;;  %v2039_v37 = vsel %vm959_vm6, %v5398_v18, %v5638_v26 }
 0x241   : > { %v2209_v33 = vsel %vm2199_vm0, %v2176_v58, %v5627_v38  ;;  %1853 = vrot.lane.b32.xlu0 %v5671_v24, %s4492_s16  ;;  %v1540_v38 = vsel %vm386_vm2, %v1508_v44, %v1492_v54 }
 0x242   : > { %v2242_v19 = vsel %vm2232_vm1, %v2209_v33, %v5609_v6  ;;  %v4475_v6 = vld [vmem:[%s6756_s5] ss:$0 sm:$0xff]  ;;  %v1700_v33 = vpack.c.bf16 %v5687_v5, %v1473_v32  ;;  %v1620_v5 = vsel %vm485_vm3, %v1588_v53, %v1604_v63  ;;  %v2042_v32 = vsel %vm959_vm6, %v5371_v30, %v5618_v3 }
 0x243   : > { %v5707_v59 = vpop.permute.xlu1 %1876  ;;  %v4316_v13 = vpop.f32.mrf.mxu0  ;;  %v2275_v43 = vsel %vm2265_vm7, %v2242_v19, %v5640_v39  ;;  %v1569_v39 = vmul.f32 %v4585_v17, %v1540_v38  ;;  %v2083_v63 = vsel %vm1025_vm8, %v2042_v32, %v5653_v41 }
 0x244   : > { %4336 = vmatprep.mubr.msk.bf16.mxu1 %vm2341_vm9, %v2275_v43  ;;  %1760 = vrot.lane.b32.xlu1 %v1699_v48, %s4489_s13  ;;  %v1666_v43 = vmul.f32 %v4575_v12, %v1636_v11  ;;  %v1409_v53 = vadd.f32 %v4475_v6, %v4316_v13 }
 0x245   : > { %v1400_v27 = vpop.f32.mrf.mxu0  ;;  %1886 = vrot.lane.b32.xlu0 %v1699_v48, %s4494_s20  ;;  %v1875_v49 = vpop.permute.xlu0 %1874  ;;  %v5727_v22 = vpack.c.bf16 %v1524_v40, %v1569_v39 }
 0x246   : > { %v1401_v16 = vadd.f32 %v4475_v6, %v1400_v27 }
 0x247   : > { %v1970_v23 = vpop.permute.xlu1 %1969  ;;  %v4317_v1 = vpop.f32.mrf.mxu0 }
 0x248   : > { %v1443_v0 = vmul.f32 0.1, %v1401_v16  ;;  %1807 = vrot.lane.b32.xlu1 %v1715_v47, %s4488_s12 }
 0x249   : > { %v1403_v56 = vpop.f32.mrf.mxu0  ;;  %1919 = vrot.lane.b32.xlu0 %v1715_v47, %s4498_s10  ;;  %v1940_v48 = vpop.permute.xlu0 %1939  ;;  %v2081_v47 = vsel %vm1025_vm8, %v2039_v37, %v1792_v61 }
 0x24a   : > { %v1404_v10 = vadd.f32 %v4475_v6, %v1403_v56  ;;  %v1475_v35 = vmax.f32 %v1401_v16, %v1443_v0  ;;  %v2113_v18 = vsel %vm1091_vm10, %v2081_v47, %v5651_v31  ;;  %v1716_v0 = vpack.c.bf16 %v1666_v43, %v1620_v5 }
 0x24b   : > { %v5725_v25 = vpop.permute.xlu1 %1748  ;;  %v1412_v56 = vadd.f32 %v4475_v6, %v4317_v1  ;;  %v2145_v40 = vsel %vm1157_vm12, %v2113_v18, %v5607_v34 }
 0x24c   : > { %v1444_v58 = vmul.f32 0.1, %v1404_v10  ;;  %1855 = vrot.lane.b32.xlu1 %v5727_v22, %s4492_s16  ;;  %v1493_v26 = vrot.slane %v1475_v35, 7  ;;  %v1589_v61 = vrot.slane %v1475_v35, 1  ;;  %v2178_v41 = vsel %vm2166_vm15, %v2145_v40, %v5669_v8 }
 0x24d   : > { %1951 = vrot.lane.b32.xlu0 %v5727_v22, %s4496_s30  ;;  %v2002_v44 = vpop.permute.xlu0 %2001  ;;  %v1446_v18 = vmul.f32 0.1, %v1412_v56 }
 0x24e   : > { %v1476_v54 = vmax.f32 %v1404_v10, %v1444_v58 }
 0x24f   : > { %v5740_v19 = vpop.permute.xlu1 %1843  ;;  %v1478_v5 = vmax.f32 %v1412_v56, %v1446_v18 }
 0x250   : > { %v1509_v38 = vrot.slane %v1476_v54, 7  ;;  %v1605_v27 = vrot.slane %v1476_v54, 1  ;;  %1888 = vrot.lane.b32.xlu1 %v1700_v33, %s4494_s20 }
 0x251   : > { %1983 = vrot.lane.b32.xlu0 %v1700_v33, %s4495_s29  ;;  %v1842_v16 = vpop.permute.xlu0 %1841 }
 0x252   : > { %v1541_v31 = vsel %vm386_vm2, %v1509_v38, %v1493_v26  ;;  %v1637_v11 = vsel %vm485_vm3, %v1605_v27, %v1589_v61  ;;  %v1525_v30 = vsel %vm386_vm2, %v1493_v26, %v1509_v38  ;;  %v2115_v1 = vsel %vm1091_vm10, %v2083_v63, %v1842_v16 }
 0x253   : > { %v5752_v39 = vpop.permute.xlu1 %1909  ;;  %v1571_v10 = vmul.f32 %v4585_v17, %v1541_v31  ;;  %v1668_v3 = vmul.f32 %v4575_v12, %v1637_v11  ;;  %v1621_v58 = vsel %vm485_vm3, %v1589_v61, %v1605_v27  ;;  %v2147_v13 = vsel %vm1157_vm12, %v2115_v1, %v1875_v49 }
 0x254   : > { %1921 = vrot.lane.b32.xlu1 %v1716_v0, %s4498_s10  ;;  %v1445_v38 = vmul.f32 0.1, %v1409_v53  ;;  %v1701_v61 = vpack.c.bf16 %v1476_v54, %v1475_v35  ;;  %v1606_v11 = vrot.slane %v1478_v5, 1 }
 0x255   : > { %2015 = vrot.lane.b32.xlu0 %v1716_v0, %s4497_s9  ;;  %v1908_v34 = vpop.permute.xlu0 %1907  ;;  %v5769_v37 = vpack.c.bf16 %v1525_v30, %v1571_v10  ;;  %v1717_v43 = vpack.c.bf16 %v1668_v3, %v1621_v58  ;;  %v1510_v10 = vrot.slane %v1478_v5, 7 }
 0x256   : > { %v2180_v16 = vsel %vm2166_vm15, %v2147_v13, %v1908_v34  ;;  %v1477_v49 = vmax.f32 %v1409_v53, %v1445_v38 }
 0x257   : > { %v1938_v47 = vpop.permute.xlu1 %1937  ;;  %v2213_v32 = vsel %vm2199_vm0, %v2180_v16, %v1940_v48  ;;  %v2045_v48 = vsel %vm959_vm6, %v5440_v52, %v5725_v25 }
 0x258   : > { %v2211_v26 = vsel %vm2199_vm0, %v2178_v41, %v1938_v47  ;;  %1953 = vrot.lane.b32.xlu1 %v5769_v37, %s4496_s30  ;;  %v1494_v35 = vrot.slane %v1477_v49, 7  ;;  %v1590_v30 = vrot.slane %v1477_v49, 1  ;;  %v1702_v41 = vpack.c.bf16 %v1478_v5, %v1477_v49 }
 0x259   : > { %v2244_v6 = vsel %vm2232_vm1, %v2211_v26, %v1970_v23  ;;  %2017 = vrot.lane.b32.xlu0 %v1717_v43, %s4497_s9  ;;  %v1972_v27 = vpop.permute.xlu0 %1971  ;;  %v6771_v5 = vmov 0.0|0.0  }
 0x25a   : > { %v2277_v8 = vsel %vm2265_vm7, %v2244_v6, %v2002_v44  ;;  %v2246_v23 = vsel %vm2232_vm1, %v2213_v32, %v1972_v27  ;;  %v1542_v54 = vsel %vm386_vm2, %v1510_v10, %v1494_v35  ;;  %v1526_v25 = vsel %vm386_vm2, %v1494_v35, %v1510_v10 }
 0x25b   : > { %4337 = vmatmul.mubr.msk.bf16.gmra.mxu1 %vm2341_vm9, %v2277_v8  ;;  %v1796_v44 = vpop.permute.xlu1 %1795  ;;  %v1638_v34 = vsel %vm485_vm3, %v1606_v11, %v1590_v30 }
 0x25c   : > { %1985 = vrot.lane.b32.xlu1 %v1701_v61, %s4495_s29  ;;  %v1670_v18 = vmul.f32 %v4575_v12, %v1638_v34 }
 0x25d   : > { %1809 = vrot.lane.b32.xlu0 %v1716_v0, %s4488_s12  ;;  %v2004_v31 = vpop.permute.xlu0 %2003  ;;  %v2085_v0 = vsel %vm1025_vm8, %v2045_v48, %v1796_v44 }
 0x25e   : > { %v2279_v40 = vsel %vm2265_vm7, %v2246_v23, %v2004_v31  ;;  %v2117_v63 = vsel %vm1091_vm10, %v2085_v0, %v5740_v19 }
 0x25f   : > { %4340 = vmatprep.mubr.msk.bf16.mxu1 %vm2341_vm9, %v2279_v40  ;;  %v2149_v1 = vsel %vm1157_vm12, %v2117_v63, %v5707_v59 }
 0x260   : > { %1762 = vrot.lane.b32.xlu1 %v1700_v33, %s4489_s13  ;;  %v1573_v33 = vmul.f32 %v4585_v17, %v1542_v54  ;;  %v2182_v19 = vsel %vm2166_vm15, %v2149_v1, %v5752_v39  ;;  %v1622_v39 = vsel %vm485_vm3, %v1590_v30, %v1606_v11 }
 0x261   : > { %1857 = vrot.lane.b32.xlu0 %v5769_v37, %s4492_s16  ;;  %v1718_v38 = vpack.c.bf16 %v1670_v18, %v1622_v39 }
 0x262   : > { %v1686_v53 = vpack.c.bf16 %v1526_v25, %v1573_v33 }
 0x264   : > { %1764 = vrot.lane.b32.xlu1 %v1701_v61, %s4489_s13 }
 0x265   : > { %1890 = vrot.lane.b32.xlu0 %v1701_v61, %s4494_s20  ;;  %v1974_v56 = vpop.permute.xlu1 %1973 }
 0x268   : > { %1811 = vrot.lane.b32.xlu1 %v1717_v43, %s4488_s12 }
 0x269   : > { %1923 = vrot.lane.b32.xlu0 %v1717_v43, %s4498_s10  ;;  %v1751_v52 = vpop.permute.xlu1 %1750 }
 0x26a   : > { %v2006_v3 = vpop.permute.xlu0 %2005  ;;  %v2048_v49 = vsel %vm959_vm6, %v5418_v60, %v1751_v52 }
 0x26c   : > { %1859 = vrot.lane.b32.xlu1 %v1686_v53, %s4492_s16 }
 0x26d   : > { %1955 = vrot.lane.b32.xlu0 %v1686_v53, %s4496_s30  ;;  %v1942_v58 = vpop.permute.xlu1 %1941 }
 0x26e   : > { %v2215_v47 = vsel %vm2199_vm0, %v2182_v19, %v1942_v58  ;;  %v1798_v43 = vpop.permute.xlu0 %1797 }
 0x26f   : > { %v2248_v26 = vsel %vm2232_vm1, %v2215_v47, %v1974_v56  ;;  %v2087_v31 = vsel %vm1025_vm8, %v2048_v49, %v1798_v43 }
 0x270   : > { %1892 = vrot.lane.b32.xlu1 %v1702_v41, %s4494_s20  ;;  %v2281_v59 = vsel %vm2265_vm7, %v2248_v26, %v2006_v3 }
 0x271   : > { %1987 = vrot.lane.b32.xlu0 %v1702_v41, %s4495_s29  ;;  %v1753_v13 = vpop.permute.xlu1 %1752  ;;  %4341 = vmatmul.mubr.msk.bf16.gmra.mxu1 %vm2341_vm9, %v2281_v59 }
 0x272   : > { %v1846_v6 = vpop.permute.xlu0 %1845 }
 0x273   : > { %v2119_v40 = vsel %vm1091_vm10, %v2087_v31, %v1846_v6 }
 0x274   : > { %1925 = vrot.lane.b32.xlu1 %v1718_v38, %s4498_s10 }
 0x275   : > { %2019 = vrot.lane.b32.xlu0 %v1718_v38, %s4497_s9  ;;  %v1800_v16 = vpop.permute.xlu1 %1799 }
 0x276   : > { %v1879_v27 = vpop.permute.xlu0 %1878 }
 0x278   : > { %1957 = vrot.lane.b32.xlu1 %v4851_v4, %s4496_s30  ;;  %v2151_v4 = vsel %vm1157_vm12, %v2119_v40, %v1879_v27 }
 0x279   : > { %v1848_v8 = vpop.permute.xlu1 %1847 }
 0x27a   : > { %v1912_v61 = vpop.permute.xlu0 %1911 }
 0x27b   : > { %v2184_v35 = vsel %vm2166_vm15, %v2151_v4, %v1912_v61 }
 0x27c   : > { %1989 = vrot.lane.b32.xlu1 %v6771_v5, %s4495_s29 }
 0x27d   : > { %v1881_v23 = vpop.permute.xlu1 %1880 }
 0x27e   : > { %v1944_v32 = vpop.permute.xlu0 %1943 }
 0x27f   : > { %v2217_v44 = vsel %vm2199_vm0, %v2184_v35, %v1944_v32 }
 0x280   : > { %2021 = vrot.lane.b32.xlu1 %v4590_v21, %s4497_s9  ;;  %v2051_v21 = vsel %vm959_vm6, %v5497_v55, %v1753_v13 }
 0x281   : > { %v1914_v48 = vpop.permute.xlu1 %1913  ;;  %v2089_v56 = vsel %vm1025_vm8, %v2051_v21, %v1800_v16 }
 0x282   : > { %v1976_v10 = vpop.permute.xlu0 %1975  ;;  %v2121_v11 = vsel %vm1091_vm10, %v2089_v56, %v1848_v8 }
 0x283   : > { %v2250_v54 = vsel %vm2232_vm1, %v2217_v44, %v1976_v10  ;;  %v2153_v30 = vsel %vm1157_vm12, %v2121_v11, %v1881_v23 }
 0x284   : > { %v2186_v52 = vsel %vm2166_vm15, %v2153_v30, %v1914_v48 }
 0x286   : > { %v2008_v0 = vpop.permute.xlu0 %2007 }
 0x287   : > { %v2283_v60 = vsel %vm2265_vm7, %v2250_v54, %v2008_v0 }
 0x288   : > { %4344 = vmatprep.mubr.msk.bf16.mxu1 %vm2341_vm9, %v2283_v60 }
 0x28a   : > { %v1946_v33 = vpop.permute.xlu1 %1945  ;;  %v2010_v63 = vpop.permute.xlu0 %2009 }
 0x28b   : > { %v2219_v25 = vsel %vm2199_vm0, %v2186_v52, %v1946_v33 }
 0x28e   : > { %v1978_v3 = vpop.permute.xlu1 %1977  ;;  %v1802_v1 = vpop.permute.xlu0 %1801 }
 0x28f   : > { %v2252_v53 = vsel %vm2232_vm1, %v2219_v25, %v1978_v3 }
 0x290   : > { %v2285_v34 = vsel %vm2265_vm7, %v2252_v53, %v2010_v63 }
 0x291   : > { %4345 = vmatmul.mubr.msk.bf16.gmra.mxu1 %vm2341_vm9, %v2285_v34 }
 0x292   : > { %v1755_v55 = vpop.permute.xlu1 %1754  ;;  %v1850_v19 = vpop.permute.xlu0 %1849 }
 0x293   : > { %v2054_v43 = vsel %vm959_vm6, %v5524_v45, %v1755_v55 }
 0x294   : > { %v2091_v26 = vsel %vm1025_vm8, %v2054_v43, %v1802_v1 }
 0x295   : > { %v2123_v39 = vsel %vm1091_vm10, %v2091_v26, %v1850_v19 }
 0x296   : > { %v1757_v58 = vpop.permute.xlu1 %1756 }
 0x297   : > { %v1883_v41 = vpop.permute.xlu0 %1882  ;;  %v2057_v49 = vsel %vm959_vm6, %v5574_v57, %v1757_v58 }
 0x298   : > { %v2155_v16 = vsel %vm1157_vm12, %v2123_v39, %v1883_v41 }
 0x29a   : > { %v1804_v47 = vpop.permute.xlu1 %1803 }
 0x29b   : > { %v1916_v18 = vpop.permute.xlu0 %1915  ;;  %v2093_v23 = vsel %vm1025_vm8, %v2057_v49, %v1804_v47 }
 0x29c   : > { %v2188_v27 = vsel %vm2166_vm15, %v2155_v16, %v1916_v18 }
 0x29e   : > { %v1852_v59 = vpop.permute.xlu1 %1851 }
 0x29f   : > { %v1948_v13 = vpop.permute.xlu0 %1947  ;;  %v2125_v40 = vsel %vm1091_vm10, %v2093_v23, %v1852_v59 }
 0x2a0   : > { %v2221_v8 = vsel %vm2199_vm0, %v2188_v27, %v1948_v13 }
 0x2a2   : > { %v1885_v6 = vpop.permute.xlu1 %1884 }
 0x2a3   : > { %v1980_v38 = vpop.permute.xlu0 %1979  ;;  %v2157_v4 = vsel %vm1157_vm12, %v2125_v40, %v1885_v6 }
 0x2a4   : > { %v2254_v5 = vsel %vm2232_vm1, %v2221_v8, %v1980_v38 }
 0x2a6   : > { %v1918_v61 = vpop.permute.xlu1 %1917 }
 0x2a7   : > { %v2012_v32 = vpop.permute.xlu0 %2011  ;;  %v2190_v35 = vsel %vm2166_vm15, %v2157_v4, %v1918_v61 }
 0x2a8   : > { %v2287_v45 = vsel %vm2265_vm7, %v2254_v5, %v2012_v32 }
 0x2a9   : > { %4348 = vmatprep.mubr.msk.bf16.mxu1 %vm2341_vm9, %v2287_v45 }
 0x2aa   : > { %v1950_v31 = vpop.permute.xlu1 %1949 }
 0x2ab   : > { %v2014_v10 = vpop.permute.xlu0 %2013  ;;  %v2223_v44 = vsel %vm2199_vm0, %v2190_v35, %v1950_v31 }
 0x2ae   : > { %v1982_v48 = vpop.permute.xlu1 %1981 }
 0x2af   : > { %v2256_v54 = vsel %vm2232_vm1, %v2223_v44, %v1982_v48  ;;  %v1806_v0 = vpop.permute.xlu0 %1805 }
 0x2b0   : > { %v2289_v57 = vsel %vm2265_vm7, %v2256_v54, %v2014_v10  ;;  %v5898_v10 = vld [vmem:[%s6757_s6] ss:$0 sm:$0xff] }
 0x2b1   : > { %4349 = vmatmul.mubr.msk.bf16.gmra.mxu1 %vm2341_vm9, %v2289_v57 }
 0x2b2   : > { %v1759_v60 = vpop.permute.xlu1 %1758 }
 0x2b3   : > { %v1854_v21 = vpop.permute.xlu0 %1853  ;;  %v2060_v63 = vsel %vm959_vm6, %v5629_v42, %v1759_v60 }
 0x2b4   : > { %v2095_v52 = vsel %vm1025_vm8, %v2060_v63, %v1806_v0 }
 0x2b5   : > { %v2127_v53 = vsel %vm1091_vm10, %v2095_v52, %v1854_v21 }
 0x2b6   : > { %v1761_v56 = vpop.permute.xlu1 %1760 }
 0x2b7   : > { %v1887_v33 = vpop.permute.xlu0 %1886  ;;  %v2063_v18 = vsel %vm959_vm6, %v5671_v24, %v1761_v56 }
 0x2b8   : > { %v2159_v55 = vsel %vm1157_vm12, %v2127_v53, %v1887_v33 }
 0x2ba   : > { %v1808_v11 = vpop.permute.xlu1 %1807 }
 0x2bb   : > { %v1920_v30 = vpop.permute.xlu0 %1919  ;;  %v2097_v26 = vsel %vm1025_vm8, %v2063_v18, %v1808_v11 }
 0x2bc   : > { %v2192_v19 = vsel %vm2166_vm15, %v2159_v55, %v1920_v30 }
 0x2be   : > { %v1856_v25 = vpop.permute.xlu1 %1855 }
 0x2bf   : > { %v1952_v3 = vpop.permute.xlu0 %1951  ;;  %v2129_v13 = vsel %vm1091_vm10, %v2097_v26, %v1856_v25 }
 0x2c0   : > { %v2225_v58 = vsel %vm2199_vm0, %v2192_v19, %v1952_v3 }
 0x2c2   : > { %v1889_v1 = vpop.permute.xlu1 %1888 }
 0x2c3   : > { %v1984_v34 = vpop.permute.xlu0 %1983  ;;  %v2161_v6 = vsel %vm1157_vm12, %v2129_v13, %v1889_v1 }
 0x2c4   : > { %v2258_v47 = vsel %vm2232_vm1, %v2225_v58, %v1984_v34 }
 0x2c6   : > { %v1922_v41 = vpop.permute.xlu1 %1921 }
 0x2c7   : > { %v2016_v43 = vpop.permute.xlu0 %2015  ;;  %v2194_v38 = vsel %vm2166_vm15, %v2161_v6, %v1922_v41 }
 0x2c8   : > { %v2291_v42 = vsel %vm2265_vm7, %v2258_v47, %v2016_v43 }
 0x2c9   : > { %4352 = vmatprep.mubr.msk.bf16.mxu1 %vm2341_vm9, %v2291_v42 }
 0x2ca   : > { %v1954_v59 = vpop.permute.xlu1 %1953 }
 0x2cb   : > { %v2018_v39 = vpop.permute.xlu0 %2017  ;;  %v2227_v16 = vsel %vm2199_vm0, %v2194_v38, %v1954_v59 }
 0x2ce   : > { %v1986_v27 = vpop.permute.xlu1 %1985 }
 0x2cf   : > { %v2260_v8 = vsel %vm2232_vm1, %v2227_v16, %v1986_v27  ;;  %v1810_v61 = vpop.permute.xlu0 %1809 }
 0x2d0   : > { %v2293_v24 = vsel %vm2265_vm7, %v2260_v8, %v2018_v39 }
 0x2d1   : > { %4353 = vmatmul.mubr.msk.bf16.gmra.mxu1 %vm2341_vm9, %v2293_v24 }
 0x2d2   : > { %v1763_v5 = vpop.permute.xlu1 %1762 }
 0x2d3   : > { %v1858_v32 = vpop.permute.xlu0 %1857  ;;  %v2066_v31 = vsel %vm959_vm6, %v5727_v22, %v1763_v5 }
 0x2d4   : > { %v2099_v4 = vsel %vm1025_vm8, %v2066_v31, %v1810_v61 }
 0x2d5   : > { %v2131_v57 = vsel %vm1091_vm10, %v2099_v4, %v1858_v32 }
 0x2d6   : > { %v1765_v45 = vpop.permute.xlu1 %1764 }
 0x2d7   : > { %v1891_v49 = vpop.permute.xlu0 %1890  ;;  %v2069_v16 = vsel %vm959_vm6, %v5769_v37, %v1765_v45 }
 0x2d8   : > { %v2163_v63 = vsel %vm1157_vm12, %v2131_v57, %v1891_v49 }
 0x2da   : > { %v1812_v23 = vpop.permute.xlu1 %1811 }
 0x2db   : > { %v1924_v40 = vpop.permute.xlu0 %1923  ;;  %v2101_v8 = vsel %vm1025_vm8, %v2069_v16, %v1812_v23 }
 0x2dc   : > { %v2196_v52 = vsel %vm2166_vm15, %v2163_v63, %v1924_v40 }
 0x2de   : > { %v1860_v35 = vpop.permute.xlu1 %1859 }
 0x2df   : > { %v4330_v44 = vpop.f32.mrf.mxu1  ;;  %v1956_v48 = vpop.permute.xlu0 %1955  ;;  %v2133_v5 = vsel %vm1091_vm10, %v2101_v8, %v1860_v35 }
 0x2e0   : > { %v2421_v54 = vadd.f32 %v4330_v44, %v5898_v10  ;;  %v2229_v53 = vsel %vm2199_vm0, %v2196_v52, %v1956_v48 }
 0x2e1   : > { %v2412_v0 = vpop.f32.mrf.mxu1 }
 0x2e2   : > { %v2541_v60 = vmul.f32 0.1, %v2421_v54  ;;  %v1893_v21 = vpop.permute.xlu1 %1892  ;;  %v2413_v22 = vadd.f32 %v5898_v10, %v2412_v0 }
 0x2e3   : > { %v4331_v56 = vpop.f32.mrf.mxu1  ;;  %v1988_v33 = vpop.permute.xlu0 %1987  ;;  %v2165_v40 = vsel %vm1157_vm12, %v2133_v5, %v1893_v21 }
 0x2e4   : > { %v2424_v11 = vadd.f32 %v4331_v56, %v5898_v10  ;;  %v2573_v25 = vmax.f32 %v2421_v54, %v2541_v60  ;;  %v2539_v55 = vmul.f32 0.1, %v2413_v22  ;;  %v2262_v19 = vsel %vm2232_vm1, %v2229_v53, %v1988_v33 }
 0x2e5   : > { %v2415_v30 = vpop.f32.mrf.mxu1 }
 0x2e6   : > { %v2542_v3 = vmul.f32 0.1, %v2424_v11  ;;  %v2416_v1 = vadd.f32 %v5898_v10, %v2415_v30  ;;  %v1926_v34 = vpop.permute.xlu1 %1925  ;;  %v2604_v42 = vrot.slane %v2573_v25, 7  ;;  %v2571_v6 = vmax.f32 %v2413_v22, %v2539_v55 }
 0x2e7   : > { %v2020_v41 = vpop.permute.xlu0 %2019  ;;  %v2700_v27 = vrot.slane %v2573_v25, 1  ;;  %v2198_v45 = vsel %vm2166_vm15, %v2165_v40, %v1926_v34 }
 0x2e8   : > { %v2574_v58 = vmax.f32 %v2424_v11, %v2542_v3  ;;  %v2540_v47 = vmul.f32 0.1, %v2416_v1  ;;  %v2295_v43 = vsel %vm2265_vm7, %v2262_v19, %v2020_v41  ;;  %v2699_v37 = vrot.slane %v2571_v6, 1  ;;  %v4470_v41 = vld [vmem:[%s6754_s3 + $0x20] ss:$0 sps:$4 sm:$0xff]  }
 0x2e9   : > { %4356 = vmatprep.mubr.msk.bf16.mxu1 %vm2341_vm9, %v2295_v43  ;;  %v2603_v33 = vrot.slane %v2571_v6, 7  ;;  %4438 = vmatprep.subr.msk.bf16.mxu0 %vm2374_vm14, %v4470_v41 }
 0x2ea   : > { %v2620_v18 = vrot.slane %v2574_v58, 7  ;;  %v2812_v26 = vpack.c.bf16 %v2574_v58, %v2573_v25  ;;  %v2716_v59 = vrot.slane %v2574_v58, 1  ;;  %v2572_v13 = vmax.f32 %v2416_v1, %v2540_v47  ;;  %v5912_v39 = vpop.permute.xlu1 %1957 }
 0x2eb   : > { %v2231_v4 = vsel %vm2199_vm0, %v2198_v45, %v5912_v39 }
 0x2ec   : > { %3077 = vrot.lane.b32.xlu0 %v2812_v26, %s4495_s29  ;;  %2984 = vrot.lane.b32.xlu1 %v2812_v26, %s4494_s20  ;;  %v2652_v38 = vsel %vm386_vm2, %v2620_v18, %v2604_v42  ;;  %v2811_v61 = vpack.c.bf16 %v2572_v13, %v2571_v6  ;;  %v2715_v32 = vrot.slane %v2572_v13, 1  ;;  %v2748_v31 = vsel %vm485_vm3, %v2716_v59, %v2700_v27  ;;  %v4471_v6 = vld [vmem:[%s6754_s3 + $0x18] sm:$0xff]  }
 0x2ed   : > { %v2669_v24 = vmul.f32 %v4585_v17, %v2652_v38  ;;  %v2636_v23 = vsel %vm386_vm2, %v2604_v42, %v2620_v18  ;;  %v2766_v44 = vmul.f32 %v4575_v12, %v2748_v31  ;;  %v2732_v60 = vsel %vm485_vm3, %v2700_v27, %v2716_v59  ;;  %v4472_v31 = vld [vmem:[%s6754_s3 + $0x10] sm:$0xff]  }
 0x2ee   : > { %v5923_v49 = vpop.permute.xlu1 %1989  ;;  %v2747_v0 = vsel %vm485_vm3, %v2715_v32, %v2699_v37  ;;  %v2619_v22 = vrot.slane %v2572_v13, 7  ;;  %v2731_v11 = vsel %vm485_vm3, %v2699_v37, %v2715_v32 }
 0x2ef   : > { %v5935_v35 = vpack.c.bf16 %v2636_v23, %v2669_v24  ;;  %v2264_v48 = vsel %vm2232_vm1, %v2231_v4, %v5923_v49  ;;  %v2828_v21 = vpack.c.bf16 %v2766_v44, %v2732_v60  ;;  %v2764_v56 = vmul.f32 %v4575_v12, %v2747_v0 }
 0x2f0   : > { %2860 = vrot.lane.b32.xlu1 %v2812_v26, %s4489_s13  ;;  %2858 = vrot.lane.b32.xlu0 %v2811_v61, %s4489_s13  ;;  %v2651_v30 = vsel %vm386_vm2, %v2619_v22, %v2603_v33  ;;  %v2635_v53 = vsel %vm386_vm2, %v2603_v33, %v2619_v22  ;;  %v3477_v26 = vsel %vm2374_vm14, %v4470_v41, 0 }
 0x2f1   : > { %v2827_v63 = vpack.c.bf16 %v2764_v56, %v2731_v11  ;;  %4361 = vmatpush3.bf16.msra.mxu0 %v3477_v26  ;;  %v4474_v11 = vld [vmem:[%s6754_s3] sm:$0xff]  }
 0x2f2   : > { %v5940_v54 = vpop.permute.xlu1 %2021  ;;  %4362 = vmatprep.subr.bf16.mxu0 %v4471_v6 }
 0x2f3   : > { %v2297_v57 = vsel %vm2265_vm7, %v2264_v48, %v5940_v54 }
 0x2f4   : > { %2951 = vrot.lane.b32.xlu1 %v5935_v35, %s4492_s16  ;;  %2982 = vrot.lane.b32.xlu0 %v2811_v61, %s4494_s20 }
 0x2f5   : > { %4357 = vmatmul.mubr.msk.bf16.gmra.mxu1 %vm2341_vm9, %v2297_v57  ;;  %4363 = vmatpush3.bf16.msra.mxu0 %v4471_v6  ;;  %v4473_v57 = vld [vmem:[%s6754_s3 + $0x8] sm:$0xff]  }
 0x2f6   : > { %4404 = vmatprep.mubr.msk.bf16.mxu1 %vm910_vm5, %v4577_v15  ;;  %v2667_v15 = vmul.f32 %v4585_v17, %v2651_v30  ;;  %4364 = vmatprep.subr.bf16.mxu0 %v4472_v31 }
 0x2f8   : > { %3017 = vrot.lane.b32.xlu1 %v2828_v21, %s4498_s10  ;;  %3047 = vrot.lane.b32.xlu0 %v5935_v35, %s4496_s30  ;;  %v5969_v34 = vpack.c.bf16 %v2635_v53, %v2667_v15 }
 0x2f9   : > { %4365 = vmatpush3.bf16.msra.mxu0 %v4472_v31 }
 0x2fa   : > { %4366 = vmatprep.subr.bf16.mxu0 %v4473_v57 }
 0x2fc   : > { %3107 = vrot.lane.b32.xlu0 %v2828_v21, %s4497_s9  ;;  %2903 = vrot.lane.b32.xlu1 %v2827_v63, %s4488_s12 }
 0x2fd   : > { %4367 = vmatpush3.bf16.msra.mxu0 %v4473_v57 }
 0x2fe   : > { %4368 = vmatprep.subr.bf16.mxu0 %v4474_v11 }
 0x2ff   : > { %v4334_v52 = vpop.f32.mrf.mxu1 }
 0x300   : > { %v2437_v25 = vadd.f32 %v4334_v52, %v5898_v10  ;;  %2905 = vrot.lane.b32.xlu0 %v2828_v21, %s4488_s12 }
 0x301   : > { %v2428_v3 = vpop.f32.mrf.mxu1  ;;  %4369 = vmatpush3.bf16.msra.mxu0 %v4474_v11 }
 0x302   : > { %v2545_v1 = vmul.f32 0.1, %v2437_v25  ;;  %v2429_v19 = vadd.f32 %v5898_v10, %v2428_v3 }
 0x303   : > { %v4335_v55 = vpop.f32.mrf.mxu1 }
 0x304   : > { %v2440_v58 = vadd.f32 %v4335_v55, %v5898_v10  ;;  %2949 = vrot.lane.b32.xlu0 %v5969_v34, %s4492_s16  ;;  %v2577_v43 = vmax.f32 %v2437_v25, %v2545_v1  ;;  %v2543_v59 = vmul.f32 0.1, %v2429_v19 }
 0x305   : > { %v2431_v47 = vpop.f32.mrf.mxu1 }
 0x306   : > { %v2546_v42 = vmul.f32 0.1, %v2440_v58  ;;  %v2432_v18 = vadd.f32 %v5898_v10, %v2431_v47  ;;  %v2606_v16 = vrot.slane %v2577_v43, 7  ;;  %v2575_v5 = vmax.f32 %v2429_v19, %v2543_v59 }
 0x307   : > { %v2702_v40 = vrot.slane %v2577_v43, 1 }
 0x308   : > { %v2578_v13 = vmax.f32 %v2440_v58, %v2546_v42  ;;  %3015 = vrot.lane.b32.xlu0 %v2827_v63, %s4498_s10  ;;  %v2544_v38 = vmul.f32 0.1, %v2432_v18  ;;  %v2701_v60 = vrot.slane %v2575_v5, 1  ;;  %v2605_v63 = vrot.slane %v2575_v5, 7  ;;  %v3704_v58 = vld [vmem:[%s6755_s4] sm:$0x3] }
 0x309   : > { %v3754_v47 = vsel %vm1250_vm4, %v3704_v58, 0  ;;  %4439 = vmatprep.subr.msk.bf16.mxu1 %vm1250_vm4, %v3704_v58 }
 0x30a   : > { %v2622_v27 = vrot.slane %v2578_v13, 7  ;;  %v2814_v8 = vpack.c.bf16 %v2578_v13, %v2577_v43  ;;  %v2718_v61 = vrot.slane %v2578_v13, 1  ;;  %v2576_v24 = vmax.f32 %v2432_v18, %v2544_v38  ;;  %4403 = vmatpush3.bf16.msra.mxu1 %v3754_v47 }
 0x30c   : > { %2988 = vrot.lane.b32.xlu1 %v2814_v8, %s4494_s20  ;;  %3081 = vrot.lane.b32.xlu0 %v2814_v8, %s4495_s29  ;;  %v2654_v32 = vsel %vm386_vm2, %v2622_v27, %v2606_v16  ;;  %v2813_v37 = vpack.c.bf16 %v2576_v24, %v2575_v5  ;;  %v2750_v23 = vsel %vm485_vm3, %v2718_v61, %v2702_v40  ;;  %v2717_v0 = vrot.slane %v2576_v24, 1 }
 0x30d   : > { %v2673_v45 = vmul.f32 %v4585_v17, %v2654_v32  ;;  %v2638_v4 = vsel %vm386_vm2, %v2606_v16, %v2622_v27  ;;  %v2770_v48 = vmul.f32 %v4575_v12, %v2750_v23  ;;  %v2734_v21 = vsel %vm485_vm3, %v2702_v40, %v2718_v61  ;;  %4405 = vmatmul.mubr.msk.bf16.vlgmr.msra.gmra.mxu1 %vm910_vm5, %v4571_v7 }
 0x30e   : > { %v2621_v22 = vrot.slane %v2576_v24, 7  ;;  %v2749_v33 = vsel %vm485_vm3, %v2717_v0, %v2701_v60  ;;  %v2733_v53 = vsel %vm485_vm3, %v2701_v60, %v2717_v0  ;;  %4408 = vmatprep.mubr.msk.bf16.mxu1 %vm910_vm5, %v4642_v50 }
 0x30f   : > { %v5999_v44 = vpack.c.bf16 %v2638_v4, %v2673_v45  ;;  %v2830_v56 = vpack.c.bf16 %v2770_v48, %v2734_v21  ;;  %v2768_v30 = vmul.f32 %v4575_v12, %v2749_v33 }
 0x310   : > { %2864 = vrot.lane.b32.xlu1 %v2814_v8, %s4489_s13  ;;  %2986 = vrot.lane.b32.xlu0 %v2813_v37, %s4494_s20  ;;  %v2653_v52 = vsel %vm386_vm2, %v2621_v22, %v2605_v63  ;;  %v2637_v18 = vsel %vm386_vm2, %v2605_v63, %v2621_v22 }
 0x311   : > { %v2829_v1 = vpack.c.bf16 %v2768_v30, %v2733_v53  ;;  %v2671_v55 = vmul.f32 %v4585_v17, %v2653_v52 }
 0x313   : > { %v6037_v59 = vpack.c.bf16 %v2637_v18, %v2671_v55 }
 0x314   : > { %3079 = vrot.lane.b32.xlu1 %v2813_v37, %s4495_s29  ;;  %3051 = vrot.lane.b32.xlu0 %v5999_v44, %s4496_s30 }
 0x315   : > { %4409 = vmatmul.mubr.msk.bf16.gmra.mxu1 %vm910_vm5, %v4687_v14 }
 0x316   : > { %4412 = vmatprep.mubr.msk.bf16.mxu1 %vm910_vm5, %v4711_v28 }
 0x318   : > { %2862 = vrot.lane.b32.xlu1 %v2813_v37, %s4489_s13  ;;  %3111 = vrot.lane.b32.xlu0 %v2830_v56, %s4497_s9 }
 0x31b   : > { %v4338_v15 = vpop.f32.mrf.mxu1 }
 0x31c   : > { %2955 = vrot.lane.b32.xlu1 %v5999_v44, %s4492_s16  ;;  %2909 = vrot.lane.b32.xlu0 %v2830_v56, %s4488_s12  ;;  %v2453_v25 = vadd.f32 %v4338_v15, %v5898_v10 }
 0x31d   : > { %v2444_v3 = vpop.f32.mrf.mxu1  ;;  %4413 = vmatmul.mubr.msk.bf16.gmra.mxu1 %vm910_vm5, %v4745_v51 }
 0x31e   : > { %v2549_v43 = vmul.f32 0.1, %v2453_v25  ;;  %v2445_v6 = vadd.f32 %v5898_v10, %v2444_v3  ;;  %4416 = vmatprep.mubr.msk.bf16.mxu1 %vm910_vm5, %v4769_v62 }
 0x31f   : > { %v4339_v19 = vpop.f32.mrf.mxu1 }
 0x320   : > { %v2456_v41 = vadd.f32 %v4339_v19, %v5898_v10  ;;  %3021 = vrot.lane.b32.xlu1 %v2830_v56, %s4498_s10  ;;  %3109 = vrot.lane.b32.xlu0 %v2829_v1, %s4497_s9  ;;  %v2581_v16 = vmax.f32 %v2453_v25, %v2549_v43  ;;  %v2547_v61 = vmul.f32 0.1, %v2445_v6 }
 0x321   : > { %v2447_v42 = vpop.f32.mrf.mxu1 }
 0x322   : > { %v2550_v26 = vmul.f32 0.1, %v2456_v41  ;;  %v2448_v13 = vadd.f32 %v5898_v10, %v2447_v42  ;;  %v2608_v24 = vrot.slane %v2581_v16, 7  ;;  %v2579_v37 = vmax.f32 %v2445_v6, %v2547_v61  ;;  %v6772_v61 = vld [vmem:[#allocation3_spill] sm:$0xff] }
 0x323   : > { %v2704_v7 = vrot.slane %v2581_v16, 1 }
 0x324   : > { %v2582_v38 = vmax.f32 %v2456_v41, %v2550_v26  ;;  %3049 = vrot.lane.b32.xlu1 %v6037_v59, %s4496_s30  ;;  %2953 = vrot.lane.b32.xlu0 %v6037_v59, %s4492_s16  ;;  %v2548_v27 = vmul.f32 0.1, %v2448_v13  ;;  %v2703_v28 = vrot.slane %v2579_v37, 1  ;;  %v2607_v63 = vrot.slane %v2579_v37, 7 }
 0x325   : > { %4417 = vmatmul.mubr.msk.bf16.gmra.mxu1 %vm910_vm5, %v4803_v29 }
 0x326   : > { %v2624_v8 = vrot.slane %v2582_v38, 7  ;;  %v2816_v5 = vpack.c.bf16 %v2582_v38, %v2581_v16  ;;  %v2580_v32 = vmax.f32 %v2448_v13, %v2548_v27  ;;  %v2720_v31 = vrot.slane %v2582_v38, 1  ;;  %4420 = vmatprep.mubr.msk.bf16.mxu1 %vm910_vm5, %v4829_v46 }
 0x328   : > { %2907 = vrot.lane.b32.xlu1 %v2829_v1, %s4488_s12  ;;  %3019 = vrot.lane.b32.xlu0 %v2829_v1, %s4498_s10  ;;  %v2656_v40 = vsel %vm386_vm2, %v2624_v8, %v2608_v24  ;;  %v2815_v50 = vpack.c.bf16 %v2580_v32, %v2579_v37  ;;  %v2752_v23 = vsel %vm485_vm3, %v2720_v31, %v2704_v7  ;;  %v2719_v57 = vrot.slane %v2580_v32, 1 }
 0x329   : > { %v2677_v45 = vmul.f32 %v4585_v17, %v2656_v40  ;;  %v2640_v4 = vsel %vm386_vm2, %v2608_v24, %v2624_v8  ;;  %v2774_v14 = vmul.f32 %v4575_v12, %v2752_v23  ;;  %v2736_v21 = vsel %vm485_vm3, %v2704_v7, %v2720_v31 }
 0x32a   : > { %v2623_v22 = vrot.slane %v2580_v32, 7  ;;  %v2751_v33 = vsel %vm485_vm3, %v2719_v57, %v2703_v28  ;;  %v2735_v52 = vsel %vm485_vm3, %v2703_v28, %v2719_v57 }
 0x32b   : > { %v6066_v0 = vpack.c.bf16 %v2640_v4, %v2677_v45  ;;  %v2832_v56 = vpack.c.bf16 %v2774_v14, %v2736_v21  ;;  %v2772_v30 = vmul.f32 %v4575_v12, %v2751_v33  ;;  %v6773_v45 = vld [vmem:[#allocation4_spill] sm:$0xff]  ;;  %v6774_v4 = vld [vmem:[#allocation5_spill] sm:$0xff] }
 0x32c   : > { %2992 = vrot.lane.b32.xlu1 %v2816_v5, %s4494_s20  ;;  %3085 = vrot.lane.b32.xlu0 %v2816_v5, %s4495_s29  ;;  %v2655_v51 = vsel %vm386_vm2, %v2623_v22, %v2607_v63  ;;  %v2639_v19 = vsel %vm386_vm2, %v2607_v63, %v2623_v22 }
 0x32d   : > { %v2831_v25 = vpack.c.bf16 %v2772_v30, %v2735_v52  ;;  %v2675_v3 = vmul.f32 %v4585_v17, %v2655_v51  ;;  %4421 = vmatmul.mubr.msk.bf16.gmra.mxu1 %vm910_vm5, %v4881_v36 }
 0x32e   : > { %4424 = vmatprep.mubr.msk.bf16.mxu1 %vm910_vm5, %v4927_v20 }
 0x32f   : > { %v6102_v41 = vpack.c.bf16 %v2639_v19, %v2675_v3 }
 0x330   : > { %2868 = vrot.lane.b32.xlu1 %v2816_v5, %s4489_s13  ;;  %2990 = vrot.lane.b32.xlu0 %v2815_v50, %s4494_s20 }
 0x331   : > { %v4342_v48 = vpop.f32.mrf.mxu1 }
 0x332   : > { %v2469_v62 = vadd.f32 %v4342_v48, %v5898_v10 }
 0x333   : > { %v2460_v60 = vpop.f32.mrf.mxu1 }
 0x334   : > { %3083 = vrot.lane.b32.xlu1 %v2815_v50, %s4495_s29  ;;  %3055 = vrot.lane.b32.xlu0 %v6066_v0, %s4496_s30  ;;  %v2553_v55 = vmul.f32 0.1, %v2469_v62  ;;  %v2461_v47 = vadd.f32 %v5898_v10, %v2460_v60 }
 0x335   : > { %v4343_v11 = vpop.f32.mrf.mxu1  ;;  %4425 = vmatmul.mubr.msk.bf16.gmra.mxu1 %vm910_vm5, %v4968_v9 }
 0x336   : > { %v2472_v15 = vadd.f32 %v4343_v11, %v5898_v10  ;;  %v2585_v46 = vmax.f32 %v2469_v62, %v2553_v55  ;;  %v2551_v18 = vmul.f32 0.1, %v2461_v47  ;;  %4428 = vmatprep.mubr.msk.bf16.mxu1 %vm910_vm5, %v6772_v61  ;;  %v6775_v11 = vld [vmem:[#allocation6_spill] sm:$0xff] }
 0x337   : > { %v2463_v1 = vpop.f32.mrf.mxu1 }
 0x338   : > { %2866 = vrot.lane.b32.xlu1 %v2815_v50, %s4489_s13  ;;  %3115 = vrot.lane.b32.xlu0 %v2832_v56, %s4497_s9  ;;  %v2554_v53 = vmul.f32 0.1, %v2472_v15  ;;  %v2464_v58 = vadd.f32 %v5898_v10, %v2463_v1  ;;  %v2610_v26 = vrot.slane %v2585_v46, 7  ;;  %v2583_v27 = vmax.f32 %v2461_v47, %v2551_v18 }
 0x339   : > { %v2706_v36 = vrot.slane %v2585_v46, 1 }
 0x33a   : > { %v2586_v29 = vmax.f32 %v2472_v15, %v2554_v53  ;;  %v2552_v43 = vmul.f32 0.1, %v2464_v58  ;;  %v2705_v7 = vrot.slane %v2583_v27, 1  ;;  %v2609_v60 = vrot.slane %v2583_v27, 7 }
 0x33c   : > { %2959 = vrot.lane.b32.xlu1 %v6066_v0, %s4492_s16  ;;  %2913 = vrot.lane.b32.xlu0 %v2832_v56, %s4488_s12  ;;  %v2626_v42 = vrot.slane %v2586_v29, 7  ;;  %v2818_v13 = vpack.c.bf16 %v2586_v29, %v2585_v46  ;;  %v2584_v6 = vmax.f32 %v2464_v58, %v2552_v43  ;;  %v2722_v38 = vrot.slane %v2586_v29, 1 }
 0x33d   : > { %4429 = vmatmul.mubr.msk.bf16.gmra.mxu1 %vm910_vm5, %v6773_v45 }
 0x33e   : > { %v2658_v16 = vsel %vm386_vm2, %v2626_v42, %v2610_v26  ;;  %v2817_v20 = vpack.c.bf16 %v2584_v6, %v2583_v27  ;;  %v2754_v24 = vsel %vm485_vm3, %v2722_v38, %v2706_v36  ;;  %v2642_v5 = vsel %vm386_vm2, %v2610_v26, %v2626_v42  ;;  %4432 = vmatprep.mubr.msk.bf16.mxu1 %vm910_vm5, %v6774_v4 }
 0x33f   : > { %v2681_v8 = vmul.f32 %v4585_v17, %v2658_v16  ;;  %v2778_v9 = vmul.f32 %v4575_v12, %v2754_v24  ;;  %v2721_v40 = vrot.slane %v2584_v6, 1  ;;  %v2738_v50 = vsel %vm485_vm3, %v2706_v36, %v2722_v38 }
 0x340   : > { %3025 = vrot.lane.b32.xlu1 %v2832_v56, %s4498_s10  ;;  %3113 = vrot.lane.b32.xlu0 %v2831_v25, %s4497_s9  ;;  %v2625_v48 = vrot.slane %v2584_v6, 7 }
 0x341   : > { %v6130_v31 = vpack.c.bf16 %v2642_v5, %v2681_v8  ;;  %v2834_v23 = vpack.c.bf16 %v2778_v9, %v2738_v50  ;;  %v2753_v14 = vsel %vm485_vm3, %v2721_v40, %v2705_v7  ;;  %v2737_v33 = vsel %vm485_vm3, %v2705_v7, %v2721_v40 }
 0x342   : > { %v2776_v28 = vmul.f32 %v4575_v12, %v2753_v14  ;;  %v2657_v56 = vsel %vm386_vm2, %v2625_v48, %v2609_v60 }
 0x343   : > { %v2679_v15 = vmul.f32 %v4585_v17, %v2657_v56 }
 0x344   : > { %3053 = vrot.lane.b32.xlu1 %v6102_v41, %s4496_s30  ;;  %2957 = vrot.lane.b32.xlu0 %v6102_v41, %s4492_s16  ;;  %v2833_v30 = vpack.c.bf16 %v2776_v28, %v2737_v33 }
 0x345   : > { %4433 = vmatmul.mubr.msk.bf16.gmra.mxu1 %vm910_vm5, %v6775_v11 }
 0x348   : > { %2911 = vrot.lane.b32.xlu1 %v2831_v25, %s4488_s12  ;;  %3023 = vrot.lane.b32.xlu0 %v2831_v25, %s4498_s10  ;;  %v2641_v25 = vsel %vm386_vm2, %v2609_v60, %v2625_v48 }
 0x349   : > { %v6170_v55 = vpack.c.bf16 %v2641_v25, %v2679_v15 }
 0x34c   : > { %2996 = vrot.lane.b32.xlu1 %v2818_v13, %s4494_s20  ;;  %3089 = vrot.lane.b32.xlu0 %v2818_v13, %s4495_s29 }
 0x350   : > { %2872 = vrot.lane.b32.xlu1 %v2818_v13, %s4489_s13  ;;  %2994 = vrot.lane.b32.xlu0 %v2817_v20, %s4494_s20 }
 0x351   : > { %v4346_v32 = vpop.f32.mrf.mxu1 }
 0x352   : > { %v2485_v22 = vadd.f32 %v4346_v32, %v5898_v10 }
 0x353   : > { %v2476_v37 = vpop.f32.mrf.mxu1 }
 0x354   : > { %3087 = vrot.lane.b32.xlu1 %v2817_v20, %s4495_s29  ;;  %3059 = vrot.lane.b32.xlu0 %v6130_v31, %s4496_s30  ;;  %v2557_v52 = vmul.f32 0.1, %v2485_v22  ;;  %v2477_v58 = vadd.f32 %v5898_v10, %v2476_v37 }
 0x355   : > { %v4347_v57 = vpop.f32.mrf.mxu1 }
 0x356   : > { %v2488_v21 = vadd.f32 %v4347_v57, %v5898_v10  ;;  %v2589_v29 = vmax.f32 %v2485_v22, %v2557_v52  ;;  %v2555_v42 = vmul.f32 0.1, %v2477_v58 }
 0x357   : > { %v2479_v62 = vpop.f32.mrf.mxu1 }
 0x358   : > { %2870 = vrot.lane.b32.xlu1 %v2817_v20, %s4489_s13  ;;  %3119 = vrot.lane.b32.xlu0 %v2834_v23, %s4497_s9  ;;  %v2558_v51 = vmul.f32 0.1, %v2488_v21  ;;  %v2480_v3 = vadd.f32 %v5898_v10, %v2479_v62  ;;  %v2612_v26 = vrot.slane %v2589_v29, 7  ;;  %v2587_v36 = vmax.f32 %v2477_v58, %v2555_v42 }
 0x359   : > { %v2708_v20 = vrot.slane %v2589_v29, 1 }
 0x35a   : > { %v2590_v19 = vmax.f32 %v2488_v21, %v2558_v51  ;;  %v2556_v47 = vmul.f32 0.1, %v2480_v3  ;;  %v2707_v48 = vrot.slane %v2587_v36, 1  ;;  %v6776_v21 = vld [vmem:[#allocation7_spill] sm:$0xff]  ;;  %v2611_v11 = vrot.slane %v2587_v36, 7 }
 0x35c   : > { %2963 = vrot.lane.b32.xlu1 %v6130_v31, %s4492_s16  ;;  %2917 = vrot.lane.b32.xlu0 %v2834_v23, %s4488_s12  ;;  %v2628_v43 = vrot.slane %v2590_v19, 7  ;;  %v2820_v13 = vpack.c.bf16 %v2590_v19, %v2589_v29  ;;  %v2588_v6 = vmax.f32 %v2480_v3, %v2556_v47  ;;  %v2724_v16 = vrot.slane %v2590_v19, 1 }
 0x35e   : > { %v6158_v63 = vpop.permute.xlu0 %3077  ;;  %v6166_v53 = vpop.permute.xlu1 %2984  ;;  %v2660_v27 = vsel %vm386_vm2, %v2628_v43, %v2612_v26  ;;  %v2819_v8 = vpack.c.bf16 %v2588_v6, %v2587_v36  ;;  %v2756_v32 = vsel %vm485_vm3, %v2724_v16, %v2708_v20  ;;  %v2644_v9 = vsel %vm386_vm2, %v2612_v26, %v2628_v43 }
 0x35f   : > { %v2685_v5 = vmul.f32 %v4585_v17, %v2660_v27  ;;  %v2782_v50 = vmul.f32 %v4575_v12, %v2756_v32  ;;  %v2723_v45 = vrot.slane %v2588_v6, 1  ;;  %v2740_v14 = vsel %vm485_vm3, %v2708_v20, %v2724_v16 }
 0x360   : > { %3029 = vrot.lane.b32.xlu1 %v2834_v23, %s4498_s10  ;;  %3117 = vrot.lane.b32.xlu0 %v2833_v30, %s4497_s9  ;;  %v2627_v28 = vrot.slane %v2588_v6, 7 }
 0x361   : > { %v6196_v7 = vpack.c.bf16 %v2644_v9, %v2685_v5  ;;  %v2836_v60 = vpack.c.bf16 %v2782_v50, %v2740_v14  ;;  %v2755_v22 = vsel %vm485_vm3, %v2723_v45, %v2707_v48  ;;  %v2739_v47 = vsel %vm485_vm3, %v2707_v48, %v2723_v45 }
 0x362   : > { %v6168_v1 = vpop.permute.xlu0 %2858  ;;  %v6177_v18 = vpop.permute.xlu1 %2860  ;;  %v2780_v62 = vmul.f32 %v4575_v12, %v2755_v22  ;;  %v2659_v3 = vsel %vm386_vm2, %v2627_v28, %v2611_v11  ;;  %v2643_v16 = vsel %vm386_vm2, %v2611_v11, %v2627_v28 }
 0x363   : > { %v3139_v22 = vsel %vm959_vm6, %v5969_v34, %v6168_v1 }
 0x364   : > { %3057 = vrot.lane.b32.xlu1 %v6170_v55, %s4496_s30  ;;  %2961 = vrot.lane.b32.xlu0 %v6170_v55, %s4492_s16  ;;  %v2835_v26 = vpack.c.bf16 %v2780_v62, %v2739_v47 }
 0x366   : > { %v2983_v46 = vpop.permute.xlu0 %2982  ;;  %v6185_v61 = vpop.permute.xlu1 %2951 }
 0x368   : > { %2915 = vrot.lane.b32.xlu1 %v2833_v30, %s4488_s12  ;;  %3027 = vrot.lane.b32.xlu0 %v2833_v30, %s4498_s10 }
 0x36a   : > { %v3048_v38 = vpop.permute.xlu0 %3047  ;;  %v6199_v23 = vpop.permute.xlu1 %3017 }
 0x36c   : > { %3000 = vrot.lane.b32.xlu1 %v2820_v13, %s4494_s20  ;;  %3093 = vrot.lane.b32.xlu0 %v2820_v13, %s4495_s29 }
 0x36e   : > { %v3108_v24 = vpop.permute.xlu0 %3107  ;;  %v2904_v30 = vpop.permute.xlu1 %2903 }
 0x36f   : > { %v3183_v11 = vsel %vm1025_vm8, %v3139_v22, %v2904_v30 }
 0x370   : > { %2876 = vrot.lane.b32.xlu1 %v2820_v13, %s4489_s13  ;;  %2998 = vrot.lane.b32.xlu0 %v2819_v8, %s4494_s20  ;;  %v2683_v13 = vmul.f32 %v4585_v17, %v2659_v3  ;;  %v3215_v1 = vsel %vm1091_vm10, %v3183_v11, %v6185_v61 }
 0x371   : > { %v4350_v40 = vpop.f32.mrf.mxu1 }
 0x372   : > { %v6194_v37 = vpop.permute.xlu0 %2905  ;;  %v2501_v58 = vadd.f32 %v4350_v40, %v5898_v10 }
 0x373   : > { %v2492_v4 = vpop.f32.mrf.mxu1 }
 0x374   : > { %3091 = vrot.lane.b32.xlu1 %v2819_v8, %s4495_s29  ;;  %3063 = vrot.lane.b32.xlu0 %v6196_v7, %s4496_s30  ;;  %v2493_v5 = vadd.f32 %v5898_v10, %v2492_v4 }
 0x375   : > { %v4351_v33 = vpop.f32.mrf.mxu1 }
 0x376   : > { %v2950_v57 = vpop.permute.xlu0 %2949  ;;  %v2504_v52 = vadd.f32 %v4351_v33, %v5898_v10  ;;  %v2559_v48 = vmul.f32 0.1, %v2493_v5 }
 0x377   : > { %v3213_v56 = vsel %vm1091_vm10, %v6776_v21, %v2950_v57 }
 0x378   : > { %2874 = vrot.lane.b32.xlu1 %v2819_v8, %s4489_s13  ;;  %3123 = vrot.lane.b32.xlu0 %v2836_v60, %s4497_s9  ;;  %v3245_v15 = vsel %vm1157_vm12, %v3213_v56, %v2983_v46  ;;  %v2562_v6 = vmul.f32 0.1, %v2504_v52  ;;  %v6243_v8 = vpack.c.bf16 %v2643_v16, %v2683_v13  ;;  %v6265_v33 = vmax.f32 %v2493_v5, %v2559_v48 }
 0x37a   : > { %v3016_v51 = vpop.permute.xlu0 %3015 }
 0x37b   : > { %v3277_v25 = vsel %vm2166_vm15, %v3245_v15, %v3016_v51 }
 0x37c   : > { %v3309_v19 = vsel %vm2199_vm0, %v3277_v25, %v3048_v38  ;;  %2967 = vrot.lane.b32.xlu1 %v6196_v7, %s4492_s16  ;;  %2921 = vrot.lane.b32.xlu0 %v2836_v60, %s4488_s12  ;;  %v2495_v38 = vpop.f32.mrf.mxu1 }
 0x37d   : > { %v3340_v29 = vsel %vm2232_vm1, %v3309_v19, %v6158_v63  ;;  %v2561_v63 = vmul.f32 0.1, %v2501_v58  ;;  %v2496_v27 = vadd.f32 %v5898_v10, %v2495_v38  ;;  %v2709_v38 = vrot.slane %v6265_v33, 1 }
 0x37e   : > { %v6227_v46 = vpop.permute.xlu1 %2988  ;;  %v6229_v43 = vpop.permute.xlu0 %3081  ;;  %v3371_v42 = vsel %vm2265_vm7, %v3340_v29, %v3108_v24  ;;  %v2594_v24 = vmax.f32 %v2504_v52, %v2562_v6  ;;  %v3142_v6 = vsel %vm959_vm6, %v5935_v35, %v6177_v18  ;;  %v2613_v18 = vrot.slane %v6265_v33, 7 }
 0x37f   : > { %4370 = vmatprep.mubr.msk.bf16.mxu0 %vm2341_vm9, %v3371_v42  ;;  %v2593_v32 = vmax.f32 %v2501_v58, %v2561_v63  ;;  %v2560_v9 = vmul.f32 0.1, %v2496_v27  ;;  %v3247_v42 = vsel %vm1157_vm12, %v3215_v1, %v6166_v53 }
 0x380   : > { %3033 = vrot.lane.b32.xlu1 %v2836_v60, %s4498_s10  ;;  %3121 = vrot.lane.b32.xlu0 %v2835_v26, %s4497_s9  ;;  %v2630_v45 = vrot.slane %v2594_v24, 7  ;;  %v2726_v21 = vrot.slane %v2594_v24, 1  ;;  %v3279_v53 = vsel %vm2166_vm15, %v3247_v42, %v6199_v23 }
 0x381   : > { %v2614_v14 = vrot.slane %v2593_v32, 7  ;;  %v2822_v57 = vpack.c.bf16 %v2594_v24, %v2593_v32  ;;  %v6254_v4 = vmax.f32 %v2496_v27, %v2560_v9  ;;  %v2710_v15 = vrot.slane %v2593_v32, 1 }
 0x382   : > { %v6239_v36 = vpop.permute.xlu1 %2864  ;;  %v6241_v20 = vpop.permute.xlu0 %2986  ;;  %v3185_v27 = vsel %vm1025_vm8, %v3142_v6, %v6194_v37 }
 0x383   : > { %v2662_v56 = vsel %vm386_vm2, %v2630_v45, %v2614_v14  ;;  %v2821_v51 = vpack.c.bf16 %v6254_v4, %v6265_v33  ;;  %v2758_v34 = vsel %vm485_vm3, %v2726_v21, %v2710_v15  ;;  %v2646_v30 = vsel %vm386_vm2, %v2614_v14, %v2630_v45 }
 0x384   : > { %3061 = vrot.lane.b32.xlu1 %v6243_v8, %s4496_s30  ;;  %2965 = vrot.lane.b32.xlu0 %v6243_v8, %s4492_s16  ;;  %v2689_v25 = vmul.f32 %v4585_v17, %v2662_v56  ;;  %v2786_v29 = vmul.f32 %v4575_v12, %v2758_v34  ;;  %v2725_v61 = vrot.slane %v6254_v4, 1  ;;  %v2742_v13 = vsel %vm485_vm3, %v2710_v15, %v2726_v21 }
 0x385   : > { %v2629_v24 = vrot.slane %v6254_v4, 7 }
 0x386   : > { %v3080_v40 = vpop.permute.xlu1 %3079  ;;  %v6250_v50 = vpop.permute.xlu0 %3051  ;;  %v6287_v58 = vpack.c.bf16 %v2646_v30, %v2689_v25  ;;  %v2838_v16 = vpack.c.bf16 %v2786_v29, %v2742_v13  ;;  %v2757_v35 = vsel %vm485_vm3, %v2725_v61, %v2709_v38  ;;  %v2741_v15 = vsel %vm485_vm3, %v2709_v38, %v2725_v61 }
 0x387   : > { %v2661_v4 = vsel %vm386_vm2, %v2629_v24, %v2613_v18 }
 0x388   : > { %2919 = vrot.lane.b32.xlu1 %v2835_v26, %s4488_s12  ;;  %3031 = vrot.lane.b32.xlu0 %v2835_v26, %s4498_s10 }
 0x38a   : > { %v6256_v60 = vpop.permute.xlu1 %2862  ;;  %v6258_v28 = vpop.permute.xlu0 %3111 }
 0x38c   : > { %3004 = vrot.lane.b32.xlu1 %v2822_v57, %s4494_s20  ;;  %3097 = vrot.lane.b32.xlu0 %v2822_v57, %s4495_s29 }
 0x38e   : > { %v6272_v62 = vpop.permute.xlu1 %2955  ;;  %v6274_v52 = vpop.permute.xlu0 %2909 }
 0x390   : > { %2880 = vrot.lane.b32.xlu1 %v2822_v57, %s4489_s13  ;;  %3002 = vrot.lane.b32.xlu0 %v2821_v51, %s4494_s20 }
 0x391   : > { %v4354_v3 = vpop.f32.mrf.mxu1 }
 0x392   : > { %v6285_v19 = vpop.permute.xlu1 %3021  ;;  %v3110_v47 = vpop.permute.xlu0 %3109  ;;  %v2517_v22 = vadd.f32 %v4354_v3, %v5898_v10 }
 0x393   : > { %v2508_v26 = vpop.f32.mrf.mxu1 }
 0x394   : > { %3095 = vrot.lane.b32.xlu1 %v2821_v51, %s4495_s29  ;;  %3067 = vrot.lane.b32.xlu0 %v6287_v58, %s4496_s30  ;;  %v2565_v3 = vmul.f32 0.1, %v2517_v22  ;;  %v2509_v13 = vadd.f32 %v5898_v10, %v2508_v26  ;;  %v3145_v26 = vsel %vm959_vm6, %v6037_v59, %v6256_v60 }
 0x395   : > { %v4355_v23 = vpop.f32.mrf.mxu1 }
 0x396   : > { %v3050_v63 = vpop.permute.xlu1 %3049  ;;  %v2954_v32 = vpop.permute.xlu0 %2953  ;;  %v2520_v21 = vadd.f32 %v4355_v23, %v5898_v10  ;;  %v2597_v6 = vmax.f32 %v2517_v22, %v2565_v3 }
 0x397   : > { %v3311_v5 = vsel %vm2199_vm0, %v3279_v53, %v3050_v63  ;;  %v3217_v45 = vsel %vm1091_vm10, %v3185_v27, %v2954_v32  ;;  %v2563_v27 = vmul.f32 0.1, %v2509_v13 }
 0x398   : > { %v3342_v9 = vsel %vm2232_vm1, %v3311_v5, %v3080_v40  ;;  %2878 = vrot.lane.b32.xlu1 %v2821_v51, %s4489_s13  ;;  %3127 = vrot.lane.b32.xlu0 %v2838_v16, %s4497_s9  ;;  %v3249_v14 = vsel %vm1157_vm12, %v3217_v45, %v6241_v20  ;;  %v2784_v40 = vmul.f32 %v4575_v12, %v2757_v35  ;;  %v2566_v30 = vmul.f32 0.1, %v2520_v21 }
 0x399   : > { %v3373_v37 = vsel %vm2265_vm7, %v3342_v9, %v3110_v47  ;;  %v2687_v51 = vmul.f32 %v4585_v17, %v2661_v4 }
 0x39a   : > { %v2908_v48 = vpop.permute.xlu1 %2907  ;;  %v3020_v57 = vpop.permute.xlu0 %3019  ;;  %4371 = vmatmul.mubr.msk.bf16.vlgmr.msra.gmra.mxu0 %vm2341_vm9, %v3373_v37  ;;  %v2837_v1 = vpack.c.bf16 %v2784_v40, %v2741_v15  ;;  %v2598_v61 = vmax.f32 %v2520_v21, %v2566_v30  ;;  %v2712_v37 = vrot.slane %v2597_v6, 1 }
 0x39b   : > { %v3281_v56 = vsel %vm2166_vm15, %v3249_v14, %v3020_v57  ;;  %v3187_v23 = vsel %vm1025_vm8, %v3145_v26, %v2908_v48 }
 0x39c   : > { %2971 = vrot.lane.b32.xlu1 %v6287_v58, %s4492_s16  ;;  %2925 = vrot.lane.b32.xlu0 %v2838_v16, %s4488_s12  ;;  %v3313_v20 = vsel %vm2199_vm0, %v3281_v56, %v6250_v50  ;;  %v2511_v50 = vpop.f32.mrf.mxu1  ;;  %v2824_v5 = vpack.c.bf16 %v2598_v61, %v2597_v6  ;;  %v2728_v45 = vrot.slane %v2598_v61, 1  ;;  %v3219_v60 = vsel %vm1091_vm10, %v3187_v23, %v6272_v62 }
 0x39d   : > { %v3344_v11 = vsel %vm2232_vm1, %v3313_v20, %v6229_v43  ;;  %v2645_v43 = vsel %vm386_vm2, %v2613_v18, %v2629_v24  ;;  %v2512_v42 = vadd.f32 %v5898_v10, %v2511_v50  ;;  %v2616_v24 = vrot.slane %v2597_v6, 7 }
 0x39e   : > { %v6330_v33 = vpop.permute.xlu1 %2992  ;;  %v6337_v25 = vpop.permute.xlu0 %3085  ;;  %v3375_v34 = vsel %vm2265_vm7, %v3344_v11, %v6258_v28  ;;  %v6348_v47 = vpack.c.bf16 %v2645_v43, %v2687_v51  ;;  %v6374_v18 = vmax.f32 %v2509_v13, %v2563_v27  ;;  %v2760_v48 = vsel %vm485_vm3, %v2728_v45, %v2712_v37 }
 0x39f   : > { %4374 = vmatprep.mubr.msk.bf16.mxu0 %vm2341_vm9, %v3375_v34  ;;  %v2564_v63 = vmul.f32 0.1, %v2512_v42  ;;  %v3251_v62 = vsel %vm1157_vm12, %v3219_v60, %v6227_v46  ;;  %v2790_v11 = vmul.f32 %v4575_v12, %v2760_v48  ;;  %v3148_v34 = vsel %vm959_vm6, %v5999_v44, %v6239_v36  ;;  %v4476_v36 = vld [vmem:[%s6757_s6] ss:$0 sm:$0xff] }
 0x3a0   : > { %3037 = vrot.lane.b32.xlu1 %v2838_v16, %s4498_s10  ;;  %3125 = vrot.lane.b32.xlu0 %v2837_v1, %s4497_s9  ;;  %v2632_v16 = vrot.slane %v2598_v61, 7  ;;  %v2711_v15 = vrot.slane %v6374_v18, 1  ;;  %v2744_v46 = vsel %vm485_vm3, %v2712_v37, %v2728_v45  ;;  %v3189_v44 = vsel %vm1025_vm8, %v3148_v34, %v6274_v52 }
 0x3a1   : > { %v6364_v9 = vmax.f32 %v2512_v42, %v2564_v63  ;;  %v2840_v61 = vpack.c.bf16 %v2790_v11, %v2744_v46  ;;  %v2615_v63 = vrot.slane %v6374_v18, 7 }
 0x3a2   : > { %v6346_v29 = vpop.permute.xlu1 %2868  ;;  %v6351_v28 = vpop.permute.xlu0 %2990  ;;  %v2664_v35 = vsel %vm386_vm2, %v2632_v16, %v2616_v24  ;;  %v2648_v21 = vsel %vm386_vm2, %v2616_v24, %v2632_v16 }
 0x3a3   : > { %v2823_v57 = vpack.c.bf16 %v6364_v9, %v6374_v18  ;;  %v2693_v59 = vmul.f32 %v4585_v17, %v2664_v35  ;;  %v2727_v56 = vrot.slane %v6364_v9, 1  ;;  %v2631_v50 = vrot.slane %v6364_v9, 7 }
 0x3a4   : > { %3065 = vrot.lane.b32.xlu1 %v6348_v47, %s4496_s30  ;;  %2969 = vrot.lane.b32.xlu0 %v6348_v47, %s4492_s16 }
 0x3a5   : > { %v6396_v22 = vpack.c.bf16 %v2648_v21, %v2693_v59  ;;  %v2759_v13 = vsel %vm485_vm3, %v2727_v56, %v2711_v15  ;;  %v2663_v35 = vsel %vm386_vm2, %v2631_v50, %v2615_v63  ;;  %v2743_v59 = vsel %vm485_vm3, %v2711_v15, %v2727_v56 }
 0x3a6   : > { %v3084_v38 = vpop.permute.xlu1 %3083  ;;  %v6358_v53 = vpop.permute.xlu0 %3055  ;;  %v2788_v52 = vmul.f32 %v4575_v12, %v2759_v13  ;;  %v2647_v15 = vsel %vm386_vm2, %v2615_v63, %v2631_v50 }
 0x3a8   : > { %2923 = vrot.lane.b32.xlu1 %v2837_v1, %s4488_s12  ;;  %3035 = vrot.lane.b32.xlu0 %v2837_v1, %s4498_s10  ;;  %v3283_v1 = vsel %vm2166_vm15, %v3251_v62, %v6285_v19  ;;  %v2839_v21 = vpack.c.bf16 %v2788_v52, %v2743_v59 }
 0x3aa   : > { %v6362_v32 = vpop.permute.xlu1 %2866  ;;  %v6366_v10 = vpop.permute.xlu0 %3115 }
 0x3ac   : > { %3008 = vrot.lane.b32.xlu1 %v2824_v5, %s4494_s20  ;;  %3101 = vrot.lane.b32.xlu0 %v2824_v5, %s4495_s29 }
 0x3ae   : > { %v6378_v14 = vpop.permute.xlu1 %2959  ;;  %v6382_v40 = vpop.permute.xlu0 %2913 }
 0x3b0   : > { %2884 = vrot.lane.b32.xlu1 %v2824_v5, %s4489_s13  ;;  %3006 = vrot.lane.b32.xlu0 %v2823_v57, %s4494_s20 }
 0x3b2   : > { %v6391_v4 = vpop.permute.xlu1 %3025  ;;  %v3114_v20 = vpop.permute.xlu0 %3113 }
 0x3b4   : > { %3099 = vrot.lane.b32.xlu1 %v2823_v57, %s4495_s29  ;;  %3071 = vrot.lane.b32.xlu0 %v6396_v22, %s4496_s30 }
 0x3b5   : > { %v4358_v51 = vpop.f32.mrf.mxu1 }
 0x3b6   : > { %v3054_v30 = vpop.permute.xlu1 %3053  ;;  %v2958_v42 = vpop.permute.xlu0 %2957  ;;  %v2533_v23 = vadd.f32 %v4476_v36, %v4358_v51 }
 0x3b7   : > { %v2524_v43 = vpop.f32.mrf.mxu1  ;;  %v3315_v3 = vsel %vm2199_vm0, %v3283_v1, %v3054_v30  ;;  %v3221_v16 = vsel %vm1091_vm10, %v3189_v44, %v2958_v42 }
 0x3b8   : > { %v2525_v19 = vadd.f32 %v4476_v36, %v2524_v43  ;;  %v3346_v6 = vsel %vm2232_vm1, %v3315_v3, %v3084_v38  ;;  %2882 = vrot.lane.b32.xlu1 %v2823_v57, %s4489_s13  ;;  %3131 = vrot.lane.b32.xlu0 %v2840_v61, %s4497_s9  ;;  %v3253_v18 = vsel %vm1157_vm12, %v3221_v16, %v6351_v28  ;;  %v2569_v56 = vmul.f32 0.1, %v2533_v23 }
 0x3b9   : > { %v4359_v27 = vpop.f32.mrf.mxu1  ;;  %v3377_v24 = vsel %vm2265_vm7, %v3346_v6, %v3114_v20  ;;  %v2691_v28 = vmul.f32 %v4585_v17, %v2663_v35  ;;  %v3151_v35 = vsel %vm959_vm6, %v6102_v41, %v6362_v32 }
 0x3ba   : > { %v2912_v5 = vpop.permute.xlu1 %2911  ;;  %4375 = vmatmul.mubr.msk.bf16.gmra.mxu0 %vm2341_vm9, %v3377_v24  ;;  %v2567_v9 = vmul.f32 0.1, %v2525_v19  ;;  %v2536_v26 = vadd.f32 %v4476_v36, %v4359_v27  ;;  %v3024_v38 = vpop.permute.xlu0 %3023 }
 0x3bb   : > { %v2527_v45 = vpop.f32.mrf.mxu1  ;;  %v3285_v57 = vsel %vm2166_vm15, %v3253_v18, %v3024_v38  ;;  %v6457_v46 = vpack.c.bf16 %v2647_v15, %v2691_v28  ;;  %v3191_v18 = vsel %vm1025_vm8, %v3151_v35, %v2912_v5 }
 0x3bc   : > { %2975 = vrot.lane.b32.xlu1 %v6396_v22, %s4492_s16  ;;  %v2528_v37 = vadd.f32 %v4476_v36, %v2527_v45  ;;  %2929 = vrot.lane.b32.xlu0 %v2840_v61, %s4488_s12  ;;  %v3317_v60 = vsel %vm2199_vm0, %v3285_v57, %v6358_v53  ;;  %v2599_v20 = vmax.f32 %v2525_v19, %v2567_v9  ;;  %v2570_v62 = vmul.f32 0.1, %v2536_v26 }
 0x3bd   : > { %v3348_v34 = vsel %vm2232_vm1, %v3317_v60, %v6337_v25 }
 0x3be   : > { %v6441_v48 = vpop.permute.xlu1 %2996  ;;  %v2568_v11 = vmul.f32 0.1, %v2528_v37  ;;  %v6444_v51 = vpop.permute.xlu0 %3089  ;;  %v3379_v1 = vsel %vm2265_vm7, %v3348_v34, %v6366_v10  ;;  %v2713_v43 = vrot.slane %v2599_v20, 1  ;;  %v6459_v25 = vmax.f32 %v2536_v26, %v2570_v62 }
 0x3bf   : > { %4378 = vmatprep.mubr.msk.bf16.mxu0 %vm2341_vm9, %v3379_v1  ;;  %v2617_v13 = vrot.slane %v2599_v20, 7 }
 0x3c0   : > { %3041 = vrot.lane.b32.xlu1 %v2840_v61, %s4498_s10  ;;  %v2600_v53 = vmax.f32 %v2528_v37, %v2568_v11  ;;  %3129 = vrot.lane.b32.xlu0 %v2839_v21, %s4497_s9  ;;  %v6463_v61 = vmax.f32 %v2533_v23, %v2569_v56  ;;  %v2634_v36 = vrot.slane %v6459_v25, 7 }
 0x3c2   : > { %v6455_v30 = vpop.permute.xlu1 %2872  ;;  %v2729_v3 = vrot.slane %v2600_v53, 1  ;;  %v2995_v10 = vpop.permute.xlu0 %2994  ;;  %v2633_v42 = vrot.slane %v2600_v53, 7  ;;  %v2618_v16 = vrot.slane %v6463_v61, 7  ;;  %v2825_v27 = vpack.c.bf16 %v2600_v53, %v2599_v20 }
 0x3c3   : > { %v2730_v20 = vrot.slane %v6459_v25, 1  ;;  %v2714_v62 = vrot.slane %v6463_v61, 1 }
 0x3c4   : > { %3069 = vrot.lane.b32.xlu1 %v6457_v46, %s4496_s30  ;;  %2973 = vrot.lane.b32.xlu0 %v6457_v46, %s4492_s16  ;;  %v2761_v50 = vsel %vm485_vm3, %v2729_v3, %v2713_v43  ;;  %v2665_v63 = vsel %vm386_vm2, %v2633_v42, %v2617_v13  ;;  %v2745_v52 = vsel %vm485_vm3, %v2713_v43, %v2729_v3 }
 0x3c5   : > { %v2792_v6 = vmul.f32 %v4575_v12, %v2761_v50  ;;  %v2695_v45 = vmul.f32 %v4585_v17, %v2665_v63  ;;  %v2666_v38 = vsel %vm386_vm2, %v2634_v36, %v2618_v16  ;;  %v2649_v37 = vsel %vm386_vm2, %v2617_v13, %v2633_v42 }
 0x3c6   : > { %v3088_v44 = vpop.permute.xlu1 %3087  ;;  %v3060_v19 = vpop.permute.xlu0 %3059  ;;  %v2697_v57 = vmul.f32 %v4585_v17, %v2666_v38  ;;  %v2650_v41 = vsel %vm386_vm2, %v2618_v16, %v2634_v36  ;;  %v2826_v13 = vpack.c.bf16 %v6459_v25, %v6463_v61 }
 0x3c7   : > { %v2841_v26 = vpack.c.bf16 %v2792_v6, %v2745_v52  ;;  %v6494_v60 = vpack.c.bf16 %v2649_v37, %v2695_v45 }
 0x3c8   : > { %2927 = vrot.lane.b32.xlu1 %v2839_v21, %s4488_s12  ;;  %3039 = vrot.lane.b32.xlu0 %v2839_v21, %s4498_s10  ;;  %v3223_v21 = vsel %vm1091_vm10, %v3191_v18, %v6378_v14  ;;  %v2810_v5 = vpack.c.bf16 %v2650_v41, %v2697_v57  ;;  %v3154_v14 = vsel %vm959_vm6, %v6066_v0, %v6346_v29 }
 0x3c9   : > { %v3255_v17 = vsel %vm1157_vm12, %v3223_v21, %v6330_v33  ;;  %v3193_v1 = vsel %vm1025_vm8, %v3154_v14, %v6382_v40  ;;  %v2762_v0 = vsel %vm485_vm3, %v2730_v20, %v2714_v62  ;;  %v3160_v57 = vsel %vm959_vm6, %v6130_v31, %v6455_v30 }
 0x3ca   : > { %v6476_v24 = vpop.permute.xlu1 %2870  ;;  %v3120_v9 = vpop.permute.xlu0 %3119  ;;  %v3287_v11 = vsel %vm2166_vm15, %v3255_v17, %v6391_v4  ;;  %v2794_v3 = vmul.f32 %v4575_v12, %v2762_v0 }
 0x3cb   : > { %v3157_v52 = vsel %vm959_vm6, %v6170_v55, %v6476_v24 }
 0x3cc   : > { %3103 = vrot.lane.b32.xlu1 %v2825_v27, %s4495_s29  ;;  %3133 = vrot.lane.b32.xlu0 %v2841_v26, %s4497_s9 }
 0x3ce   : > { %v2964_v23 = vpop.permute.xlu1 %2963  ;;  %v6492_v59 = vpop.permute.xlu0 %2917 }
 0x3cf   : > { %v3197_v55 = vsel %vm1025_vm8, %v3160_v57, %v6492_v59 }
 0x3d0   : > { %2886 = vrot.lane.b32.xlu1 %v2825_v27, %s4489_s13  ;;  %2977 = vrot.lane.b32.xlu0 %v6494_v60, %s4492_s16 }
 0x3d2   : > { %v3030_v32 = vpop.permute.xlu1 %3029  ;;  %v3118_v28 = vpop.permute.xlu0 %3117 }
 0x3d4   : > { %2979 = vrot.lane.b32.xlu1 %v2810_v5, %s4492_s16  ;;  %3010 = vrot.lane.b32.xlu0 %v2825_v27, %s4494_s20  ;;  %s4201_s16 = sshll.u32 %s6778_s28, 6 }
 0x3d6   : > { %v3058_v34 = vpop.permute.xlu1 %3057  ;;  %v2962_v56 = vpop.permute.xlu0 %2961 }
 0x3d7   : > { %v3319_v33 = vsel %vm2199_vm0, %v3287_v11, %v3058_v34  ;;  %v3225_v15 = vsel %vm1091_vm10, %v3193_v1, %v2962_v56 }
 0x3d8   : > { %v3350_v53 = vsel %vm2232_vm1, %v3319_v33, %v3088_v44  ;;  %3073 = vrot.lane.b32.xlu1 %v6494_v60, %s4496_s30  ;;  %3043 = vrot.lane.b32.xlu0 %v2841_v26, %s4498_s10  ;;  %v3257_v40 = vsel %vm1157_vm12, %v3225_v15, %v2995_v10  ;;  %v2746_v10 = vsel %vm485_vm3, %v2714_v62, %v2730_v20 }
 0x3d9   : > { %v3381_v29 = vsel %vm2265_vm7, %v3350_v53, %v3118_v28  ;;  %v2842_v63 = vpack.c.bf16 %v2794_v3, %v2746_v10 }
 0x3da   : > { %v2916_v4 = vpop.permute.xlu1 %2915  ;;  %4379 = vmatmul.mubr.msk.bf16.gmra.mxu0 %vm2341_vm9, %v3381_v29  ;;  %v3028_v43 = vpop.permute.xlu0 %3027 }
 0x3db   : > { %v3289_v42 = vsel %vm2166_vm15, %v3257_v40, %v3028_v43 }
 0x3dc   : > { %2931 = vrot.lane.b32.xlu1 %v2841_v26, %s4488_s12  ;;  %v3321_v50 = vsel %vm2199_vm0, %v3289_v42, %v3060_v19  ;;  %3075 = vrot.lane.b32.xlu0 %v2810_v5, %s4496_s30  ;;  %s6660_s30 = scalar_lea.vmem %s6759_s8, %s4201_s16 }
 0x3dd   : > { %v3352_v36 = vsel %vm2232_vm1, %v3321_v50, %v6444_v51 }
 0x3de   : > { %v3001_v44 = vpop.permute.xlu1 %3000  ;;  %v3094_v6 = vpop.permute.xlu0 %3093  ;;  %v3383_v12 = vsel %vm2265_vm7, %v3352_v36, %v3120_v9  ;;  %v3195_v9 = vsel %vm1025_vm8, %v3157_v52, %v2916_v4 }
 0x3df   : > { %4382 = vmatprep.mubr.msk.bf16.mxu0 %vm2341_vm9, %v3383_v12  ;;  %v3227_v38 = vsel %vm1091_vm10, %v3195_v9, %v2964_v23 }
 0x3e0   : > { %3012 = vrot.lane.b32.xlu1 %v2826_v13, %s4494_s20  ;;  %3135 = vrot.lane.b32.xlu0 %v2842_v63, %s4497_s9  ;;  %v3259_v37 = vsel %vm1157_vm12, %v3227_v38, %v6441_v48 }
 0x3e1   : > { %v3291_v21 = vsel %vm2166_vm15, %v3259_v37, %v3030_v32 }
 0x3e2   : > { %v2877_v19 = vpop.permute.xlu1 %2876  ;;  %v2999_v16 = vpop.permute.xlu0 %2998 }
 0x3e4   : > { %3045 = vrot.lane.b32.xlu1 %v2842_v63, %s4498_s10 }
 0x3e6   : > { %v3092_v25 = vpop.permute.xlu1 %3091  ;;  %v3064_v61 = vpop.permute.xlu0 %3063 }
 0x3e8   : > { %3105 = vrot.lane.b32.xlu1 %v2826_v13, %s4495_s29  ;;  %v3166_v13 = vsel %vm959_vm6, %v6196_v7, %v2877_v19 }
 0x3ea   : > { %v2875_v51 = vpop.permute.xlu1 %2874  ;;  %v3124_v27 = vpop.permute.xlu0 %3123 }
 0x3eb   : > { %v3163_v0 = vsel %vm959_vm6, %v6243_v8, %v2875_v51 }
 0x3ee   : > { %v2968_v26 = vpop.permute.xlu1 %2967  ;;  %v2922_v45 = vpop.permute.xlu0 %2921 }
 0x3f2   : > { %v3034_v35 = vpop.permute.xlu1 %3033  ;;  %v3122_v18 = vpop.permute.xlu0 %3121 }
 0x3f6   : > { %v3062_v41 = vpop.permute.xlu1 %3061  ;;  %v2966_v5 = vpop.permute.xlu0 %2965 }
 0x3f7   : > { %v3323_v24 = vsel %vm2199_vm0, %v3291_v21, %v3062_v41  ;;  %v3229_v28 = vsel %vm1091_vm10, %v3197_v55, %v2966_v5 }
 0x3f8   : > { %v3354_v23 = vsel %vm2232_vm1, %v3323_v24, %v3092_v25  ;;  %v3261_v31 = vsel %vm1157_vm12, %v3229_v28, %v2999_v16 }
 0x3f9   : > { %v3385_v17 = vsel %vm2265_vm7, %v3354_v23, %v3122_v18 }
 0x3fa   : > { %v2920_v48 = vpop.permute.xlu1 %2919  ;;  %4383 = vmatmul.mubr.msk.bf16.gmra.mxu0 %vm2341_vm9, %v3385_v17  ;;  %v3032_v30 = vpop.permute.xlu0 %3031 }
 0x3fb   : > { %v3293_v32 = vsel %vm2166_vm15, %v3261_v31, %v3032_v30  ;;  %v3199_v29 = vsel %vm1025_vm8, %v3163_v0, %v2920_v48 }
 0x3fc   : > { %v3325_v20 = vsel %vm2199_vm0, %v3293_v32, %v3064_v61  ;;  %v3231_v43 = vsel %vm1091_vm10, %v3199_v29, %v2968_v26 }
 0x3fd   : > { %v3356_v14 = vsel %vm2232_vm1, %v3325_v20, %v3094_v6  ;;  %v3263_v50 = vsel %vm1157_vm12, %v3231_v43, %v3001_v44  ;;  %v3201_v6 = vsel %vm1025_vm8, %v3166_v13, %v2922_v45 }
 0x3fe   : > { %v3005_v59 = vpop.permute.xlu1 %3004  ;;  %v3098_v62 = vpop.permute.xlu0 %3097  ;;  %v3387_v11 = vsel %vm2265_vm7, %v3356_v14, %v3124_v27  ;;  %v3295_v36 = vsel %vm2166_vm15, %v3263_v50, %v3034_v35 }
 0x3ff   : > { %4386 = vmatprep.mubr.msk.bf16.mxu0 %vm2341_vm9, %v3387_v11 }
 0x402   : > { %v2881_v34 = vpop.permute.xlu1 %2880  ;;  %v3003_v1 = vpop.permute.xlu0 %3002 }
 0x403   : > { %v3172_v48 = vsel %vm959_vm6, %v6287_v58, %v2881_v34 }
 0x406   : > { %v3096_v33 = vpop.permute.xlu1 %3095  ;;  %v3068_v56 = vpop.permute.xlu0 %3067 }
 0x40a   : > { %v2879_v53 = vpop.permute.xlu1 %2878  ;;  %v3128_v15 = vpop.permute.xlu0 %3127 }
 0x40b   : > { %v3169_v21 = vsel %vm959_vm6, %v6348_v47, %v2879_v53 }
 0x40e   : > { %v2972_v4 = vpop.permute.xlu1 %2971  ;;  %v2926_v40 = vpop.permute.xlu0 %2925 }
 0x40f   : > { %v3205_v32 = vsel %vm1025_vm8, %v3172_v48, %v2926_v40 }
 0x412   : > { %v3038_v3 = vpop.permute.xlu1 %3037  ;;  %v3126_v42 = vpop.permute.xlu0 %3125 }
 0x416   : > { %v3066_v10 = vpop.permute.xlu1 %3065  ;;  %v2970_v12 = vpop.permute.xlu0 %2969 }
 0x417   : > { %v3327_v8 = vsel %vm2199_vm0, %v3295_v36, %v3066_v10  ;;  %v3233_v16 = vsel %vm1091_vm10, %v3201_v6, %v2970_v12 }
 0x418   : > { %v3358_v63 = vsel %vm2232_vm1, %v3327_v8, %v3096_v33  ;;  %v3265_v44 = vsel %vm1157_vm12, %v3233_v16, %v3003_v1 }
 0x419   : > { %v3389_v25 = vsel %vm2265_vm7, %v3358_v63, %v3126_v42 }
 0x41a   : > { %v2924_v61 = vpop.permute.xlu1 %2923  ;;  %4387 = vmatmul.mubr.msk.bf16.gmra.mxu0 %vm2341_vm9, %v3389_v25  ;;  %v3036_v7 = vpop.permute.xlu0 %3035 }
 0x41b   : > { %v3297_v19 = vsel %vm2166_vm15, %v3265_v44, %v3036_v7  ;;  %v3203_v41 = vsel %vm1025_vm8, %v3169_v21, %v2924_v61 }
 0x41c   : > { %v3329_v51 = vsel %vm2199_vm0, %v3297_v19, %v3068_v56  ;;  %v3235_v5 = vsel %vm1091_vm10, %v3203_v41, %v2972_v4 }
 0x41d   : > { %v3360_v52 = vsel %vm2232_vm1, %v3329_v51, %v3098_v62  ;;  %v3267_v17 = vsel %vm1157_vm12, %v3235_v5, %v3005_v59 }
 0x41e   : > { %v3009_v27 = vpop.permute.xlu1 %3008  ;;  %v3102_v9 = vpop.permute.xlu0 %3101  ;;  %v3391_v26 = vsel %vm2265_vm7, %v3360_v52, %v3128_v15  ;;  %v3299_v31 = vsel %vm2166_vm15, %v3267_v17, %v3038_v3 }
 0x41f   : > { %4390 = vmatprep.mubr.msk.bf16.mxu0 %vm2341_vm9, %v3391_v26 }
 0x422   : > { %v2885_v45 = vpop.permute.xlu1 %2884  ;;  %v3007_v38 = vpop.permute.xlu0 %3006 }
 0x423   : > { %v3178_v44 = vsel %vm959_vm6, %v6396_v22, %v2885_v45  ;;  %v6635_v22 = vld [vmem:[%s6758_s7] ss:$0 sm:$0xff]  ;;  %v4406_v45 = vpop.f32.mrf.mxu1 }
 0x426   : > { %v3100_v35 = vpop.permute.xlu1 %3099  ;;  %v3072_v18 = vpop.permute.xlu0 %3071 }
 0x42a   : > { %v2883_v37 = vpop.permute.xlu1 %2882  ;;  %v3132_v57 = vpop.permute.xlu0 %3131 }
 0x42b   : > { %v3175_v29 = vsel %vm959_vm6, %v6457_v46, %v2883_v37 }
 0x42e   : > { %v2976_v55 = vpop.permute.xlu1 %2975  ;;  %v2930_v24 = vpop.permute.xlu0 %2929 }
 0x42f   : > { %v3209_v51 = vsel %vm1025_vm8, %v3178_v44, %v2930_v24 }
 0x432   : > { %v3042_v23 = vpop.permute.xlu1 %3041  ;;  %v3130_v28 = vpop.permute.xlu0 %3129 }
 0x436   : > { %v3070_v30 = vpop.permute.xlu1 %3069  ;;  %v2974_v20 = vpop.permute.xlu0 %2973 }
 0x437   : > { %v3331_v47 = vsel %vm2199_vm0, %v3299_v31, %v3070_v30  ;;  %v3237_v62 = vsel %vm1091_vm10, %v3205_v32, %v2974_v20 }
 0x438   : > { %v3362_v14 = vsel %vm2232_vm1, %v3331_v47, %v3100_v35  ;;  %v3269_v59 = vsel %vm1157_vm12, %v3237_v62, %v3007_v38 }
 0x439   : > { %v3393_v11 = vsel %vm2265_vm7, %v3362_v14, %v3130_v28  ;;  %v3790_v28 = vpop.f32.mrf.mxu1 }
 0x43a   : > { %v2928_v1 = vpop.permute.xlu1 %2927  ;;  %4391 = vmatmul.mubr.msk.bf16.gmra.mxu0 %vm2341_vm9, %v3393_v11  ;;  %v3040_v58 = vpop.permute.xlu0 %3039 }
 0x43b   : > { %v3301_v34 = vsel %vm2166_vm15, %v3269_v59, %v3040_v58  ;;  %v3207_v4 = vsel %vm1025_vm8, %v3175_v29, %v2928_v1  ;;  %v4407_v47 = vpop.f32.mrf.mxu1 }
 0x43c   : > { %v3333_v33 = vsel %vm2199_vm0, %v3301_v34, %v3072_v18  ;;  %v3239_v3 = vsel %vm1091_vm10, %v3207_v4, %v2976_v55 }
 0x43d   : > { %v3364_v53 = vsel %vm2232_vm1, %v3333_v33, %v3102_v9  ;;  %v3271_v50 = vsel %vm1157_vm12, %v3239_v3, %v3009_v27  ;;  %v3793_v58 = vpop.f32.mrf.mxu1 }
 0x43e   : > { %v3104_v56 = vpop.permute.xlu1 %3103  ;;  %v3134_v15 = vpop.permute.xlu0 %3133  ;;  %v3395_v0 = vsel %vm2265_vm7, %v3364_v53, %v3132_v57  ;;  %v3303_v36 = vsel %vm2166_vm15, %v3271_v50, %v3042_v23 }
 0x43f   : > { %4394 = vmatprep.mubr.msk.bf16.mxu0 %vm2341_vm9, %v3395_v0 }
 0x442   : > { %v2887_v40 = vpop.permute.xlu1 %2886  ;;  %v2978_v43 = vpop.permute.xlu0 %2977 }
 0x443   : > { %v3181_v16 = vsel %vm959_vm6, %v6494_v60, %v2887_v40  ;;  %v3241_v9 = vsel %vm1091_vm10, %v3209_v51, %v2978_v43 }
 0x446   : > { %v2980_v42 = vpop.permute.xlu1 %2979  ;;  %v3011_v13 = vpop.permute.xlu0 %3010 }
 0x447   : > { %v3273_v60 = vsel %vm1157_vm12, %v3241_v9, %v3011_v13  ;;  %v4410_v13 = vpop.f32.mrf.mxu1 }
 0x44a   : > { %v3074_v10 = vpop.permute.xlu1 %3073  ;;  %v3044_v63 = vpop.permute.xlu0 %3043 }
 0x44b   : > { %v3335_v6 = vsel %vm2199_vm0, %v3303_v36, %v3074_v10  ;;  %v3305_v35 = vsel %vm2166_vm15, %v3273_v60, %v3044_v63 }
 0x44c   : > { %v3366_v8 = vsel %vm2232_vm1, %v3335_v6, %v3104_v56 }
 0x44d   : > { %v3397_v46 = vsel %vm2265_vm7, %v3366_v8, %v3134_v15  ;;  %v3806_v8 = vpop.f32.mrf.mxu1 }
 0x44e   : > { %v2932_v12 = vpop.permute.xlu1 %2931  ;;  %4395 = vmatmul.mubr.msk.bf16.gmra.mxu0 %vm2341_vm9, %v3397_v46  ;;  %v3076_v7 = vpop.permute.xlu0 %3075 }
 0x44f   : > { %v3211_v25 = vsel %vm1025_vm8, %v3181_v16, %v2932_v12  ;;  %v3337_v18 = vsel %vm2199_vm0, %v3305_v35, %v3076_v7  ;;  %v4411_v44 = vpop.f32.mrf.mxu1 }
 0x450   : > { %v3243_v19 = vsel %vm1091_vm10, %v3211_v25, %v2980_v42 }
 0x451   : > { %v3809_v60 = vpop.f32.mrf.mxu1 }
 0x452   : > { %v3013_v61 = vpop.permute.xlu1 %3012  ;;  %v3136_v21 = vpop.permute.xlu0 %3135 }
 0x453   : > { %v3275_v27 = vsel %vm1157_vm12, %v3243_v19, %v3013_v61 }
 0x456   : > { %v3046_v52 = vpop.permute.xlu1 %3045 }
 0x457   : > { %v3307_v26 = vsel %vm2166_vm15, %v3275_v27, %v3046_v52 }
 0x458   : > { %v3338_v38 = vsel %vm2199_vm0, %v3307_v26, %v5912_v39 }
 0x459   : > { %v3369_v57 = vsel %vm2232_vm1, %v3338_v38, %v5923_v49 }
 0x45a   : > { %v3106_v37 = vpop.permute.xlu1 %3105  ;;  %v4372_v55 = vpop.f32.mrf.mxu0  ;;  %v3400_v23 = vsel %vm2265_vm7, %v3369_v57, %v5940_v54 }
 0x45b   : > { %v3368_v41 = vsel %vm2232_vm1, %v3337_v18, %v3106_v37  ;;  %v3522_v39 = vadd.f32 %v4372_v55, %v6635_v22 }
 0x45c   : > { %v3399_v24 = vsel %vm2265_vm7, %v3368_v41, %v3136_v21  ;;  %v3513_v5 = vpop.f32.mrf.mxu0 }
 0x45d   : > { %4398 = vmatprep.mubr.msk.bf16.mxu0 %vm2341_vm9, %v3399_v24  ;;  %v3642_v17 = vmul.f32 0.1, %v3522_v39  ;;  %v3514_v48 = vadd.f32 %v6635_v22, %v3513_v5 }
 0x45e   : > { %4399 = vmatmul.mubr.msk.bf16.gmra.mxu0 %vm2341_vm9, %v3400_v23  ;;  %v4373_v49 = vpop.f32.mrf.mxu0 }
 0x45f   : > { %v3640_v31 = vmul.f32 0.1, %v3514_v48  ;;  %v3525_v30 = vadd.f32 %v4373_v49, %v6635_v22  ;;  %v3674_v62 = vmax.f32 %v3522_v39, %v3642_v17 }
 0x460   : > { %v3516_v32 = vpop.f32.mrf.mxu0 }
 0x461   : > { %v3643_v20 = vmul.f32 0.1, %v3525_v30  ;;  %v3517_v14 = vadd.f32 %v6635_v22, %v3516_v32  ;;  %v3672_v11 = vmax.f32 %v3514_v48, %v3640_v31  ;;  %v3919_v34 = vadd.f32 %v4406_v45, %v3674_v62 }
 0x463   : > { %v3641_v1 = vmul.f32 0.1, %v3517_v14  ;;  %v3917_v59 = vadd.f32 %v3790_v28, %v3672_v11  ;;  %v3675_v54 = vmax.f32 %v3525_v30, %v3643_v20  ;;  %v4414_v28 = vpop.f32.mrf.mxu1 }
 0x465   : > { %v3673_v33 = vmax.f32 %v3517_v14, %v3641_v1  ;;  %v3949_v56 = vmax.f32 %v3917_v59, %v3919_v34  ;;  %v3920_v53 = vadd.f32 %v4407_v47, %v3675_v54  ;;  %v3822_v31 = vpop.f32.mrf.mxu1 }
 0x467   : > { %v3918_v15 = vadd.f32 %v3793_v58, %v3673_v33  ;;  %v3965_v29 = vrot.slane %v3949_v56, 1  ;;  %v4415_v11 = vpop.f32.mrf.mxu1 }
 0x469   : > { %v3950_v0 = vmax.f32 %v3918_v15, %v3920_v53  ;;  %v3825_v53 = vpop.f32.mrf.mxu1 }
 0x46b   : > { %v3973_v4 = vrot.slane %v3950_v0, 1 }
 0x46d   : > { %v3981_v40 = vsel %vm485_vm3, %v3965_v29, %v3973_v4  ;;  %v3989_v43 = vsel %vm485_vm3, %v3973_v4, %v3965_v29 }
 0x46e   : > { %v3997_v3 = vmax.f32 %v3949_v56, %v3981_v40  ;;  %v3998_v42 = vmax.f32 %v3950_v0, %v3989_v43 }
 0x470   : > { %4013 = vst.msk [vmem:[#allocation2] sm:$0xff] %vm959_vm6, %v3997_v3  ;;  %4014 = vst.msk [vmem:[#allocation2 + $0x8] sm:$0xff] %vm959_vm6, %v3998_v42 }
 0x477   : > { %v4029_v50 = vld [vmem:[#allocation2] ss:$2 sm:$0xff] }
 0x478   : > { %4044 = vst.msk [vmem:[%s6660_s30] sm:$0xff] %vm959_vm6, %v4029_v50 }
 0x47a   : > { %v4376_v36 = vpop.f32.mrf.mxu0 }
 0x47b   : > { %v3538_v10 = vadd.f32 %v4376_v36, %v6635_v22 }
 0x47c   : > { %v3529_v6 = vpop.f32.mrf.mxu0 }
 0x47d   : > { %v3646_v46 = vmul.f32 0.1, %v3538_v10  ;;  %v3530_v12 = vadd.f32 %v6635_v22, %v3529_v6 }
 0x47e   : > { %v4377_v63 = vpop.f32.mrf.mxu0 }
 0x47f   : > { %v3644_v16 = vmul.f32 0.1, %v3530_v12  ;;  %v3541_v25 = vadd.f32 %v4377_v63, %v6635_v22  ;;  %v3678_v51 = vmax.f32 %v3538_v10, %v3646_v46 }
 0x480   : > { %v3532_v61 = vpop.f32.mrf.mxu0 }
 0x481   : > { %v3647_v7 = vmul.f32 0.1, %v3541_v25  ;;  %v3533_v19 = vadd.f32 %v6635_v22, %v3532_v61  ;;  %v3676_v27 = vmax.f32 %v3530_v12, %v3644_v16  ;;  %v3923_v38 = vadd.f32 %v4410_v13, %v3678_v51 }
 0x483   : > { %v3645_v52 = vmul.f32 0.1, %v3533_v19  ;;  %v3921_v9 = vadd.f32 %v3806_v8, %v3676_v27  ;;  %v3679_v26 = vmax.f32 %v3541_v25, %v3647_v7  ;;  %v4418_v8 = vpop.f32.mrf.mxu1 }
 0x485   : > { %v3677_v35 = vmax.f32 %v3533_v19, %v3645_v52  ;;  %v3951_v45 = vmax.f32 %v3921_v9, %v3923_v38  ;;  %v3924_v18 = vadd.f32 %v4411_v44, %v3679_v26  ;;  %v3838_v16 = vpop.f32.mrf.mxu1 }
 0x487   : > { %v3922_v37 = vadd.f32 %v3809_v60, %v3677_v35  ;;  %v3966_v21 = vrot.slane %v3951_v45, 1  ;;  %v4419_v27 = vpop.f32.mrf.mxu1 }
 0x489   : > { %v3952_v57 = vmax.f32 %v3922_v37, %v3924_v18  ;;  %v3841_v18 = vpop.f32.mrf.mxu1 }
 0x48b   : > { %v3974_v41 = vrot.slane %v3952_v57, 1 }
 0x48d   : > { %v3982_v55 = vsel %vm485_vm3, %v3966_v21, %v3974_v41  ;;  %v3990_v39 = vsel %vm485_vm3, %v3974_v41, %v3966_v21 }
 0x48e   : > { %v3999_v24 = vmax.f32 %v3951_v45, %v3982_v55  ;;  %v4000_v5 = vmax.f32 %v3952_v57, %v3990_v39 }
 0x490   : > { %4015 = vst.msk [vmem:[#allocation2 + $0x10] sm:$0xff] %vm959_vm6, %v3999_v24  ;;  %4016 = vst.msk [vmem:[#allocation2 + $0x18] sm:$0xff] %vm959_vm6, %v4000_v5 }
 0x497   : > { %v4031_v23 = vld [vmem:[#allocation2 + $0x10] ss:$2 sm:$0xff] }
 0x498   : > { %4045 = vst.msk [vmem:[%s6660_s30 + $0x8] sm:$0xff] %vm959_vm6, %v4031_v23 }
 0x49a   : > { %v4380_v17 = vpop.f32.mrf.mxu0 }
 0x49b   : > { %v3554_v48 = vadd.f32 %v4380_v17, %v6635_v22 }
 0x49c   : > { %v3545_v49 = vpop.f32.mrf.mxu0 }
 0x49d   : > { %v3650_v30 = vmul.f32 0.1, %v3554_v48  ;;  %v3546_v32 = vadd.f32 %v6635_v22, %v3545_v49 }
 0x49e   : > { %v4381_v47 = vpop.f32.mrf.mxu0 }
 0x49f   : > { %v3648_v20 = vmul.f32 0.1, %v3546_v32  ;;  %v3557_v14 = vadd.f32 %v4381_v47, %v6635_v22  ;;  %v3682_v54 = vmax.f32 %v3554_v48, %v3650_v30 }
 0x4a0   : > { %v3548_v62 = vpop.f32.mrf.mxu0 }
 0x4a1   : > { %v3651_v1 = vmul.f32 0.1, %v3557_v14  ;;  %v3549_v59 = vadd.f32 %v6635_v22, %v3548_v62  ;;  %v3680_v58 = vmax.f32 %v3546_v32, %v3648_v20  ;;  %v3927_v15 = vadd.f32 %v4414_v28, %v3682_v54 }
 0x4a3   : > { %v3649_v34 = vmul.f32 0.1, %v3549_v59  ;;  %v3925_v33 = vadd.f32 %v3822_v31, %v3680_v58  ;;  %v3683_v56 = vmax.f32 %v3557_v14, %v3651_v1  ;;  %v4422_v31 = vpop.f32.mrf.mxu1 }
 0x4a5   : > { %v3681_v0 = vmax.f32 %v3549_v59, %v3649_v34  ;;  %v3953_v29 = vmax.f32 %v3925_v33, %v3927_v15  ;;  %v3928_v4 = vadd.f32 %v4415_v11, %v3683_v56  ;;  %v3854_v20 = vpop.f32.mrf.mxu1 }
 0x4a7   : > { %v3926_v40 = vadd.f32 %v3825_v53, %v3681_v0  ;;  %v3967_v3 = vrot.slane %v3953_v29, 1  ;;  %v4423_v58 = vpop.f32.mrf.mxu1 }
 0x4a9   : > { %v3954_v43 = vmax.f32 %v3926_v40, %v3928_v4  ;;  %v3857_v4 = vpop.f32.mrf.mxu1 }
 0x4ab   : > { %v3975_v42 = vrot.slane %v3954_v43, 1 }
 0x4ad   : > { %v3983_v50 = vsel %vm485_vm3, %v3967_v3, %v3975_v42  ;;  %v3991_v13 = vsel %vm485_vm3, %v3975_v42, %v3967_v3 }
 0x4ae   : > { %v4001_v36 = vmax.f32 %v3953_v29, %v3983_v50  ;;  %v4002_v10 = vmax.f32 %v3954_v43, %v3991_v13 }
 0x4b0   : > { %4017 = vst.msk [vmem:[#allocation2 + $0x20] sm:$0xff] %vm959_vm6, %v4001_v36  ;;  %4018 = vst.msk [vmem:[#allocation2 + $0x28] sm:$0xff] %vm959_vm6, %v4002_v10 }
 0x4b7   : > { %v4033_v6 = vld [vmem:[#allocation2 + $0x20] ss:$2 sm:$0xff] }
 0x4b8   : > { %4046 = vst.msk [vmem:[%s6660_s30 + $0x10] sm:$0xff] %vm959_vm6, %v4033_v6 }
 0x4ba   : > { %v4384_v46 = vpop.f32.mrf.mxu0 }
 0x4bb   : > { %v3570_v12 = vadd.f32 %v4384_v46, %v6635_v22 }
 0x4bc   : > { %v3561_v63 = vpop.f32.mrf.mxu0 }
 0x4bd   : > { %v3654_v25 = vmul.f32 0.1, %v3570_v12  ;;  %v3562_v61 = vadd.f32 %v6635_v22, %v3561_v63 }
 0x4be   : > { %v4385_v44 = vpop.f32.mrf.mxu0 }
 0x4bf   : > { %v3652_v7 = vmul.f32 0.1, %v3562_v61  ;;  %v3573_v19 = vadd.f32 %v4385_v44, %v6635_v22  ;;  %v3686_v26 = vmax.f32 %v3570_v12, %v3654_v25 }
 0x4c0   : > { %v3564_v51 = vpop.f32.mrf.mxu0 }
 0x4c1   : > { %v3655_v52 = vmul.f32 0.1, %v3573_v19  ;;  %v3565_v9 = vadd.f32 %v6635_v22, %v3564_v51  ;;  %v3684_v60 = vmax.f32 %v3562_v61, %v3652_v7  ;;  %v3931_v37 = vadd.f32 %v4418_v8, %v3686_v26 }
 0x4c3   : > { %v3653_v38 = vmul.f32 0.1, %v3565_v9  ;;  %v3929_v35 = vadd.f32 %v3838_v16, %v3684_v60  ;;  %v3687_v45 = vmax.f32 %v3573_v19, %v3655_v52  ;;  %v4426_v16 = vpop.f32.mrf.mxu1 }
 0x4c5   : > { %v3685_v57 = vmax.f32 %v3565_v9, %v3653_v38  ;;  %v3955_v21 = vmax.f32 %v3929_v35, %v3931_v37  ;;  %v3932_v41 = vadd.f32 %v4419_v27, %v3687_v45  ;;  %v3870_v7 = vpop.f32.mrf.mxu1 }
 0x4c7   : > { %v3930_v55 = vadd.f32 %v3841_v18, %v3685_v57  ;;  %v3968_v24 = vrot.slane %v3955_v21, 1  ;;  %v4427_v60 = vpop.f32.mrf.mxu1 }
 0x4c9   : > { %v3956_v39 = vmax.f32 %v3930_v55, %v3932_v41  ;;  %v3873_v41 = vpop.f32.mrf.mxu1 }
 0x4cb   : > { %v3976_v5 = vrot.slane %v3956_v39, 1 }
 0x4cd   : > { %v3984_v23 = vsel %vm485_vm3, %v3968_v24, %v3976_v5  ;;  %v3992_v28 = vsel %vm485_vm3, %v3976_v5, %v3968_v24 }
 0x4ce   : > { %v4003_v17 = vmax.f32 %v3955_v21, %v3984_v23  ;;  %v4004_v48 = vmax.f32 %v3956_v39, %v3992_v28 }
 0x4d0   : > { %4019 = vst.msk [vmem:[#allocation2 + $0x30] sm:$0xff] %vm959_vm6, %v4003_v17  ;;  %4020 = vst.msk [vmem:[#allocation2 + $0x38] sm:$0xff] %vm959_vm6, %v4004_v48 }
 0x4d7   : > { %v4035_v49 = vld [vmem:[#allocation2 + $0x30] ss:$2 sm:$0xff] }
 0x4d8   : > { %4047 = vst.msk [vmem:[%s6660_s30 + $0x18] sm:$0xff] %vm959_vm6, %v4035_v49  ;;  %v4430_v49 = vpop.f32.mrf.mxu1 }
 0x4da   : > { %v4388_v30 = vpop.f32.mrf.mxu0 }
 0x4db   : > { %v3586_v32 = vadd.f32 %v4388_v30, %v6635_v22 }
 0x4dc   : > { %v3577_v47 = vpop.f32.mrf.mxu0 }
 0x4dd   : > { %v3658_v14 = vmul.f32 0.1, %v3586_v32  ;;  %v3578_v62 = vadd.f32 %v6635_v22, %v3577_v47 }
 0x4de   : > { %v4389_v11 = vpop.f32.mrf.mxu0 }
 0x4df   : > { %v3656_v1 = vmul.f32 0.1, %v3578_v62  ;;  %v3589_v59 = vadd.f32 %v4389_v11, %v6635_v22  ;;  %v3690_v56 = vmax.f32 %v3586_v32, %v3658_v14  ;;  %v3886_v11 = vpop.f32.mrf.mxu1 }
 0x4e0   : > { %v3580_v54 = vpop.f32.mrf.mxu0 }
 0x4e1   : > { %v3659_v34 = vmul.f32 0.1, %v3589_v59  ;;  %v3581_v33 = vadd.f32 %v6635_v22, %v3580_v54  ;;  %v3688_v53 = vmax.f32 %v3578_v62, %v3656_v1  ;;  %v3935_v40 = vadd.f32 %v4422_v31, %v3690_v56  ;;  %v4431_v56 = vpop.f32.mrf.mxu1 }
 0x4e3   : > { %v3657_v15 = vmul.f32 0.1, %v3581_v33  ;;  %v3933_v0 = vadd.f32 %v3854_v20, %v3688_v53  ;;  %v3691_v29 = vmax.f32 %v3589_v59, %v3659_v34 }
 0x4e5   : > { %v3689_v43 = vmax.f32 %v3581_v33, %v3657_v15  ;;  %v3957_v3 = vmax.f32 %v3933_v0, %v3935_v40  ;;  %v3936_v42 = vadd.f32 %v4423_v58, %v3691_v29 }
 0x4e7   : > { %v3934_v50 = vadd.f32 %v3857_v4, %v3689_v43  ;;  %v3969_v36 = vrot.slane %v3957_v3, 1 }
 0x4e9   : > { %v3958_v13 = vmax.f32 %v3934_v50, %v3936_v42  ;;  %v3889_v42 = vpop.f32.mrf.mxu1 }
 0x4eb   : > { %v3977_v10 = vrot.slane %v3958_v13, 1 }
 0x4ed   : > { %v3985_v6 = vsel %vm485_vm3, %v3969_v36, %v3977_v10  ;;  %v3993_v8 = vsel %vm485_vm3, %v3977_v10, %v3969_v36 }
 0x4ee   : > { %v4005_v46 = vmax.f32 %v3957_v3, %v3985_v6  ;;  %v4006_v12 = vmax.f32 %v3958_v13, %v3993_v8 }
 0x4f0   : > { %4021 = vst.msk [vmem:[#allocation2 + $0x40] sm:$0xff] %vm959_vm6, %v4005_v46  ;;  %4022 = vst.msk [vmem:[#allocation2 + $0x48] sm:$0xff] %vm959_vm6, %v4006_v12  ;;  %v4434_v12 = vpop.f32.mrf.mxu1 }
 0x4f7   : > { %v4037_v63 = vld [vmem:[#allocation2 + $0x40] ss:$2 sm:$0xff] }
 0x4f8   : > { %4048 = vst.msk [vmem:[%s6660_s30 + $0x20] sm:$0xff] %vm959_vm6, %v4037_v63 }
 0x4fa   : > { %v4392_v25 = vpop.f32.mrf.mxu0 }
 0x4fb   : > { %v3602_v61 = vadd.f32 %v4392_v25, %v6635_v22 }
 0x4fc   : > { %v3593_v44 = vpop.f32.mrf.mxu0 }
 0x4fd   : > { %v3662_v19 = vmul.f32 0.1, %v3602_v61  ;;  %v3594_v51 = vadd.f32 %v6635_v22, %v3593_v44 }
 0x4fe   : > { %v4393_v27 = vpop.f32.mrf.mxu0 }
 0x4ff   : > { %v3660_v52 = vmul.f32 0.1, %v3594_v51  ;;  %v3605_v9 = vadd.f32 %v4393_v27, %v6635_v22  ;;  %v3694_v45 = vmax.f32 %v3602_v61, %v3662_v19 }
 0x500   : > { %v3596_v26 = vpop.f32.mrf.mxu0 }
 0x501   : > { %v3663_v38 = vmul.f32 0.1, %v3605_v9  ;;  %v3597_v35 = vadd.f32 %v6635_v22, %v3596_v26  ;;  %v3692_v18 = vmax.f32 %v3594_v51, %v3660_v52  ;;  %v3939_v55 = vadd.f32 %v4426_v16, %v3694_v45 }
 0x503   : > { %v3661_v37 = vmul.f32 0.1, %v3597_v35  ;;  %v3937_v57 = vadd.f32 %v3870_v7, %v3692_v18  ;;  %v3695_v21 = vmax.f32 %v3605_v9, %v3663_v38  ;;  %v3902_v9 = vpop.f32.mrf.mxu1 }
 0x505   : > { %v3693_v39 = vmax.f32 %v3597_v35, %v3661_v37  ;;  %v3959_v24 = vmax.f32 %v3937_v57, %v3939_v55  ;;  %v3940_v5 = vadd.f32 %v4427_v60, %v3695_v21  ;;  %v4435_v21 = vpop.f32.mrf.mxu1 }
 0x507   : > { %v3938_v23 = vadd.f32 %v3873_v41, %v3693_v39  ;;  %v3970_v17 = vrot.slane %v3959_v24, 1 }
 0x509   : > { %v3960_v28 = vmax.f32 %v3938_v23, %v3940_v5  ;;  %v3905_v23 = vpop.f32.mrf.mxu1 }
 0x50b   : > { %v3978_v48 = vrot.slane %v3960_v28, 1 }
 0x50d   : > { %v3986_v31 = vsel %vm485_vm3, %v3970_v17, %v3978_v48  ;;  %v3994_v30 = vsel %vm485_vm3, %v3978_v48, %v3970_v17 }
 0x50e   : > { %v4007_v32 = vmax.f32 %v3959_v24, %v3986_v31  ;;  %v4008_v47 = vmax.f32 %v3960_v28, %v3994_v30  ;;  %v4396_v20 = vpop.f32.mrf.mxu0 }
 0x50f   : > { %v3618_v14 = vadd.f32 %v4396_v20, %v6635_v22 }
 0x510   : > { %4023 = vst.msk [vmem:[#allocation2 + $0x50] sm:$0xff] %vm959_vm6, %v4007_v32  ;;  %4024 = vst.msk [vmem:[#allocation2 + $0x58] sm:$0xff] %vm959_vm6, %v4008_v47  ;;  %v3609_v62 = vpop.f32.mrf.mxu0 }
 0x511   : > { %v3666_v1 = vmul.f32 0.1, %v3618_v14  ;;  %v3610_v59 = vadd.f32 %v6635_v22, %v3609_v62 }
 0x512   : > { %v4397_v54 = vpop.f32.mrf.mxu0 }
 0x513   : > { %v3664_v58 = vmul.f32 0.1, %v3610_v59  ;;  %v3621_v34 = vadd.f32 %v4397_v54, %v6635_v22  ;;  %v3698_v0 = vmax.f32 %v3618_v14, %v3666_v1 }
 0x514   : > { %v3612_v33 = vpop.f32.mrf.mxu0 }
 0x515   : > { %v3667_v53 = vmul.f32 0.1, %v3621_v34  ;;  %v3613_v15 = vadd.f32 %v6635_v22, %v3612_v33  ;;  %v3696_v29 = vmax.f32 %v3610_v59, %v3664_v58  ;;  %v3943_v50 = vadd.f32 %v4430_v49, %v3698_v0 }
 0x517   : > { %v4039_v4 = vld [vmem:[#allocation2 + $0x50] ss:$2 sm:$0xff]  ;;  %v3665_v40 = vmul.f32 0.1, %v3613_v15  ;;  %v3941_v43 = vadd.f32 %v3886_v11, %v3696_v29  ;;  %v3699_v3 = vmax.f32 %v3621_v34, %v3667_v53 }
 0x518   : > { %4049 = vst.msk [vmem:[%s6660_s30 + $0x28] sm:$0xff] %vm959_vm6, %v4039_v4 }
 0x519   : > { %v3697_v13 = vmax.f32 %v3613_v15, %v3665_v40  ;;  %v3961_v36 = vmax.f32 %v3941_v43, %v3943_v50  ;;  %v3944_v10 = vadd.f32 %v4431_v56, %v3699_v3 }
 0x51b   : > { %v3942_v6 = vadd.f32 %v3889_v42, %v3697_v13  ;;  %v3971_v63 = vrot.slane %v3961_v36, 1 }
 0x51d   : > { %v3962_v8 = vmax.f32 %v3942_v6, %v3944_v10 }
 0x51e   : > { %v4400_v46 = vpop.f32.mrf.mxu0 }
 0x51f   : > { %v3979_v16 = vrot.slane %v3962_v8, 1  ;;  %v3634_v25 = vadd.f32 %v4400_v46, %v6635_v22 }
 0x520   : > { %v3625_v61 = vpop.f32.mrf.mxu0 }
 0x521   : > { %v3987_v44 = vsel %vm485_vm3, %v3971_v63, %v3979_v16  ;;  %v3995_v7 = vsel %vm485_vm3, %v3979_v16, %v3971_v63  ;;  %v3670_v19 = vmul.f32 0.1, %v3634_v25  ;;  %v3626_v51 = vadd.f32 %v6635_v22, %v3625_v61 }
 0x522   : > { %v4009_v27 = vmax.f32 %v3961_v36, %v3987_v44  ;;  %v4010_v52 = vmax.f32 %v3962_v8, %v3995_v7  ;;  %v4401_v26 = vpop.f32.mrf.mxu0 }
 0x523   : > { %v3668_v60 = vmul.f32 0.1, %v3626_v51  ;;  %v3637_v38 = vadd.f32 %v4401_v26, %v6635_v22  ;;  %v3702_v45 = vmax.f32 %v3634_v25, %v3670_v19 }
 0x524   : > { %4025 = vst.msk [vmem:[#allocation2 + $0x60] sm:$0xff] %vm959_vm6, %v4009_v27  ;;  %4026 = vst.msk [vmem:[#allocation2 + $0x68] sm:$0xff] %vm959_vm6, %v4010_v52  ;;  %v3628_v35 = vpop.f32.mrf.mxu0 }
 0x525   : > { %v3700_v18 = vmax.f32 %v3626_v51, %v3668_v60  ;;  %v3671_v37 = vmul.f32 0.1, %v3637_v38  ;;  %v3629_v57 = vadd.f32 %v6635_v22, %v3628_v35  ;;  %v3947_v24 = vadd.f32 %v4434_v12, %v3702_v45 }
 0x527   : > { %v3945_v41 = vadd.f32 %v3902_v9, %v3700_v18  ;;  %v3703_v55 = vmax.f32 %v3637_v38, %v3671_v37  ;;  %v3669_v39 = vmul.f32 0.1, %v3629_v57 }
 0x529   : > { %v3701_v5 = vmax.f32 %v3629_v57, %v3669_v39  ;;  %v3963_v17 = vmax.f32 %v3945_v41, %v3947_v24  ;;  %v3948_v48 = vadd.f32 %v4435_v21, %v3703_v55 }
 0x52b   : > { %v4041_v28 = vld [vmem:[#allocation2 + $0x60] ss:$2 sm:$0xff]  ;;  %v3946_v49 = vadd.f32 %v3905_v23, %v3701_v5  ;;  %v3972_v30 = vrot.slane %v3963_v17, 1 }
 0x52c   : > { %4050 = vst.msk [vmem:[%s6660_s30 + $0x30] sm:$0xff] %vm959_vm6, %v4041_v28 }
 0x52d   : > { %v3964_v31 = vmax.f32 %v3946_v49, %v3948_v48 }
 0x52f   : > { %v3980_v32 = vrot.slane %v3964_v31, 1 }
 0x531   : > { %v3988_v22 = vsel %vm485_vm3, %v3972_v30, %v3980_v32  ;;  %v3996_v47 = vsel %vm485_vm3, %v3980_v32, %v3972_v30 }
 0x532   : > { %v4011_v20 = vmax.f32 %v3963_v17, %v3988_v22  ;;  %v4012_v14 = vmax.f32 %v3964_v31, %v3996_v47 }
 0x534   : > { %4027 = vst.msk [vmem:[#allocation2 + $0x70] sm:$0xff] %vm959_vm6, %v4011_v20  ;;  %4028 = vst.msk [vmem:[#allocation2 + $0x78] sm:$0xff] %vm959_vm6, %v4012_v14 }
 0x53b   : > { %v4043_v62 = vld [vmem:[#allocation2 + $0x70] ss:$2 sm:$0xff] }
 0x53c   : > { %4051 = vst.msk [vmem:[%s6660_s30 + $0x38] sm:$0xff] %vm959_vm6, %v4043_v62 }
 0x53d PF: > { %s18_s27 = sadd.s32 1, %s4483_s27  }
 0x53e   : > { %p15_p4 = scmp.ge.s32.totalorder %s18_s27, 4  }
 0x540   :  { %17 = sbr.rel (!%p15_p4) target bundleno = 1 (0x1), region = 89 }

</bundles_post_ra>
